<compile_context>
chip_gen: v5e
topology: v5e:2x2
jax: 0.10.0
libtpu: 0.0.40
codegen_flags: <defaults>
</compile_context>

<pallas_src>
import functools

import jax
import jax.numpy as jnp
from jax import lax
from jax.experimental import pallas as pl
from jax.experimental.pallas import tpu as pltpu


def _ru(x, m):
    return (x + m - 1) // m * m


_TM = 256  # row tile for M-parallel grids (VMEM-safe on v7x's 64 MiB)


def _row_tiling(M):
    Mp8 = _ru(M, 8)
    tm = Mp8 if Mp8 <= _TM else _TM
    Mp = _ru(M, tm)
    return Mp, tm


# --------------------------------------------------------------------------
# Kernel 1: dense linear  Y = X @ W + b  (+ optional ReLU), bf16 MXU, f32 acc
# --------------------------------------------------------------------------
def _linear_kernel(x_ref, w_ref, b_ref, o_ref, *, relu):
    acc = jnp.dot(x_ref[...], w_ref[...], preferred_element_type=jnp.float32)
    acc = acc + b_ref[...]
    if relu:
        acc = jnp.maximum(acc, 0.0)
    o_ref[...] = acc


def pallas_linear(x, wp, bp, n_out, relu=False):
    """x: (M, K); wp: (Kp, Np) bf16 pre-padded; bp: (1, Np) f32 -> (M, n_out)."""
    M, K = x.shape
    Kp, Np = wp.shape
    Mp, tm = _row_tiling(M)
    xp = jnp.pad(x.astype(jnp.bfloat16), ((0, Mp - M), (0, Kp - K)))
    out = pl.pallas_call(
        functools.partial(_linear_kernel, relu=relu),
        out_shape=jax.ShapeDtypeStruct((Mp, Np), jnp.float32),
        grid=(Mp // tm,),
        in_specs=[pl.BlockSpec((tm, Kp), lambda i: (i, 0)),
                  pl.BlockSpec((Kp, Np), lambda i: (0, 0)),
                  pl.BlockSpec((1, Np), lambda i: (0, 0))],
        out_specs=pl.BlockSpec((tm, Np), lambda i: (i, 0)),
        compiler_params=pltpu.CompilerParams(dimension_semantics=("parallel",)),
    )(xp, wp, bp)
    return out[:M, :n_out]


# --------------------------------------------------------------------------
# Kernel 2: fused  LayerNorm(res + X @ W + b)   (attention out-proj + LN1)
# --------------------------------------------------------------------------
def _linear_res_ln_kernel(x_ref, w_ref, b_ref, r_ref, g_ref, be_ref, o_ref, *, eps):
    y = jnp.dot(x_ref[...], w_ref[...], preferred_element_type=jnp.float32)
    y = y + b_ref[...] + r_ref[...]
    mu = jnp.mean(y, axis=-1, keepdims=True)
    yc = y - mu
    var = jnp.mean(yc * yc, axis=-1, keepdims=True)
    o_ref[...] = yc * lax.rsqrt(var + eps) * g_ref[...] + be_ref[...]


def pallas_linear_res_ln(x, wp, bp, res, g, b_ln, eps=1e-5):
    M, K = x.shape
    Kp, E = wp.shape                      # E unpadded (LayerNorm over true width)
    Mp, tm = _row_tiling(M)
    xp = jnp.pad(x.astype(jnp.bfloat16), ((0, Mp - M), (0, Kp - K)))
    rp = jnp.pad(res.astype(jnp.float32), ((0, Mp - M), (0, 0)))
    gp = g.astype(jnp.float32).reshape(1, E)
    bep = b_ln.astype(jnp.float32).reshape(1, E)
    out = pl.pallas_call(
        functools.partial(_linear_res_ln_kernel, eps=eps),
        out_shape=jax.ShapeDtypeStruct((Mp, E), jnp.float32),
        grid=(Mp // tm,),
        in_specs=[pl.BlockSpec((tm, Kp), lambda i: (i, 0)),
                  pl.BlockSpec((Kp, E), lambda i: (0, 0)),
                  pl.BlockSpec((1, E), lambda i: (0, 0)),
                  pl.BlockSpec((tm, E), lambda i: (i, 0)),
                  pl.BlockSpec((1, E), lambda i: (0, 0)),
                  pl.BlockSpec((1, E), lambda i: (0, 0))],
        out_specs=pl.BlockSpec((tm, E), lambda i: (i, 0)),
        compiler_params=pltpu.CompilerParams(dimension_semantics=("parallel",)),
    )(xp, wp, bp, rp, gp, bep)
    return out[:M]


# --------------------------------------------------------------------------
# Kernel 3: fused FFN block  LayerNorm(x + relu(x@W1+b1)@W2 + b2)
#           ((M, dff) intermediate stays in VMEM; two MXU matmuls, one launch)
# --------------------------------------------------------------------------
def _ffn_res_ln_kernel(x_ref, w1_ref, b1_ref, w2_ref, b2_ref, g_ref, be_ref,
                       o_ref, *, eps):
    x = x_ref[...]                                            # f32 residual
    h = jnp.dot(x.astype(jnp.bfloat16), w1_ref[...],
                preferred_element_type=jnp.float32) + b1_ref[...]
    h = jnp.maximum(h, 0.0)
    y = jnp.dot(h.astype(jnp.bfloat16), w2_ref[...],
                preferred_element_type=jnp.float32) + b2_ref[...]
    y = y + x
    mu = jnp.mean(y, axis=-1, keepdims=True)
    yc = y - mu
    var = jnp.mean(yc * yc, axis=-1, keepdims=True)
    o_ref[...] = yc * lax.rsqrt(var + eps) * g_ref[...] + be_ref[...]


def pallas_ffn_res_ln(x, w1p, b1p, w2p, b2p, g, b_ln, eps=1e-5):
    M, E = x.shape
    dffp = w1p.shape[1]
    assert w2p.shape[0] == dffp
    Mp, tm = _row_tiling(M)
    xp = jnp.pad(x.astype(jnp.float32), ((0, Mp - M), (0, 0)))
    gp = g.astype(jnp.float32).reshape(1, E)
    bep = b_ln.astype(jnp.float32).reshape(1, E)
    out = pl.pallas_call(
        functools.partial(_ffn_res_ln_kernel, eps=eps),
        out_shape=jax.ShapeDtypeStruct((Mp, E), jnp.float32),
        grid=(Mp // tm,),
        in_specs=[pl.BlockSpec((tm, E), lambda i: (i, 0)),
                  pl.BlockSpec((E, dffp), lambda i: (0, 0)),
                  pl.BlockSpec((1, dffp), lambda i: (0, 0)),
                  pl.BlockSpec((dffp, E), lambda i: (0, 0)),
                  pl.BlockSpec((1, E), lambda i: (0, 0)),
                  pl.BlockSpec((1, E), lambda i: (0, 0)),
                  pl.BlockSpec((1, E), lambda i: (0, 0))],
        out_specs=pl.BlockSpec((tm, E), lambda i: (i, 0)),
        compiler_params=pltpu.CompilerParams(dimension_semantics=("parallel",)),
    )(xp, w1p, b1p, w2p, b2p, gp, bep)
    return out[:M]


# --------------------------------------------------------------------------
# Kernel 4: multi-head scaled-dot-product attention, all heads of one batch
#           element per grid step (lane-denser tiles, 4x fewer grid steps)
# --------------------------------------------------------------------------
def _mha_kernel(q_ref, k_ref, v_ref, o_ref, *, seq_len):
    q = q_ref[0]                                    # (nh, Lp, hd) bf16
    k = k_ref[0]
    v = v_ref[0]
    s = jnp.einsum('hqd,hkd->hqk', q, k, preferred_element_type=jnp.float32)
    Lp = s.shape[-1]
    col = lax.broadcasted_iota(jnp.int32, (Lp, Lp), 1)
    s = jnp.where(col[None, :, :] < seq_len, s, -1e30)   # mask padded keys
    s = s - jnp.max(s, axis=-1, keepdims=True)
    e = jnp.exp(s)
    p = e * pl.reciprocal(jnp.sum(e, axis=-1, keepdims=True), approx=True)
    out = jnp.einsum('hqk,hkd->hqd', p.astype(v.dtype), v,
                     preferred_element_type=jnp.float32)
    o_ref[...] = out[None, :, :, :]


def pallas_mha_attention(q, k, v, seq_len):
    """q, k, v: (B, nh, L, hd) (q pre-scaled) -> (B, nh, L, hd) f32."""
    B, nh, L, hd = q.shape
    Lp = _ru(L, 8)
    pad = lambda t: jnp.pad(t.astype(jnp.bfloat16),
                            ((0, 0), (0, 0), (0, Lp - L), (0, 0)))
    qp, kp, vp = pad(q), pad(k), pad(v)
    out = pl.pallas_call(
        functools.partial(_mha_kernel, seq_len=seq_len),
        out_shape=jax.ShapeDtypeStruct((B, nh, Lp, hd), jnp.float32),
        grid=(B,),
        in_specs=[pl.BlockSpec((1, nh, Lp, hd), lambda i: (i, 0, 0, 0)),
                  pl.BlockSpec((1, nh, Lp, hd), lambda i: (i, 0, 0, 0)),
                  pl.BlockSpec((1, nh, Lp, hd), lambda i: (i, 0, 0, 0))],
        out_specs=pl.BlockSpec((1, nh, Lp, hd), lambda i: (i, 0, 0, 0)),
        compiler_params=pltpu.CompilerParams(dimension_semantics=("parallel",)),
    )(qp, kp, vp)
    return out[:, :, :L, :]


# --------------------------------------------------------------------------
# Kernel 5: GNN per-node attention softmax + neighbor aggregation
#           (GraphLayer message/softmax/aggregate + bias + BN(eval) + ReLU)
# --------------------------------------------------------------------------
def _gnn_agg_kernel(ai_ref, ajg_ref, mask_ref, xjg_ref, bias_ref, sc_ref, sh_ref,
                    o_ref, *, heads, nbrs, neg_slope):
    mask = mask_ref[...]
    acc = jnp.zeros(o_ref.shape, jnp.float32)
    for h in range(heads):
        a = ai_ref[:, h:h + 1] + ajg_ref[h]                  # (tm, K)
        a = jnp.where(a >= 0, a, neg_slope * a)              # LeakyReLU(0.2)
        a = jnp.where(mask > 0.5, a, -1e30)                  # drop removed self-loops
        a = a - jnp.max(a, axis=-1, keepdims=True)
        e = jnp.exp(a)
        p = e * pl.reciprocal(jnp.sum(e, axis=-1, keepdims=True), approx=True)
        for kk in range(nbrs):                               # K small: VPU FMAs,
            acc = acc + p[:, kk:kk + 1] * xjg_ref[h, kk]     # no cross-sublane reduce
    acc = acc * (1.0 / heads) + bias_ref[...]                # head mean + bias
    acc = acc * sc_ref[...] + sh_ref[...]                    # BatchNorm1d (eval, folded)
    o_ref[...] = jnp.maximum(acc, 0.0)                       # ReLU


def pallas_gnn_agg(a_i, a_j_g, mask, x_j_g, bias, bn_scale, bn_shift,
                   heads, neg_slope=0.2):
    """a_i: (M,H); a_j_g: (H,M,K); mask: (M,K); x_j_g: (H,K,M,D) -> (M,D)."""
    M, H = a_i.shape
    K = mask.shape[1]
    D = x_j_g.shape[-1]
    Mp, tm = _row_tiling(M)
    dM = Mp - M
    a_i = jnp.pad(a_i.astype(jnp.float32), ((0, dM), (0, 0)))
    a_j_g = jnp.pad(a_j_g.astype(jnp.float32), ((0, 0), (0, dM), (0, 0)))
    mask = jnp.pad(mask.astype(jnp.float32), ((0, dM), (0, 0)))
    x_j_g = jnp.pad(x_j_g.astype(jnp.float32), ((0, 0), (0, 0), (0, dM), (0, 0)))
    bias = bias.astype(jnp.float32).reshape(1, D)
    sc = bn_scale.astype(jnp.float32).reshape(1, D)
    sh = bn_shift.astype(jnp.float32).reshape(1, D)
    out = pl.pallas_call(
        functools.partial(_gnn_agg_kernel, heads=heads, nbrs=K, neg_slope=neg_slope),
        out_shape=jax.ShapeDtypeStruct((Mp, D), jnp.float32),
        grid=(Mp // tm,),
        in_specs=[pl.BlockSpec((tm, H), lambda i: (i, 0)),
                  pl.BlockSpec((H, tm, K), lambda i: (0, i, 0)),
                  pl.BlockSpec((tm, K), lambda i: (i, 0)),
                  pl.BlockSpec((H, K, tm, D), lambda i: (0, 0, i, 0)),
                  pl.BlockSpec((1, D), lambda i: (0, 0)),
                  pl.BlockSpec((1, D), lambda i: (0, 0)),
                  pl.BlockSpec((1, D), lambda i: (0, 0))],
        out_specs=pl.BlockSpec((tm, D), lambda i: (i, 0)),
        compiler_params=pltpu.CompilerParams(dimension_semantics=("parallel",)),
    )(a_i, a_j_g, mask, x_j_g, bias, sc, sh)
    return out[:M]


# --------------------------------------------------------------------------
# Parameter init (deterministic, synthetic — PyTorch (out,in) layouts)
# --------------------------------------------------------------------------
def init_params(key, cfg):
    N, dim, Fd = cfg["node_num"], cfg["dim"], cfg["input_dim"]
    H, E, dff = cfg["heads"], cfg["node_num"], cfg["dff"]
    C, nlayers = cfg["classes_num"], cfg["nlayers"]
    keys = iter(jax.random.split(key, 64))
    rnd = lambda s, sc: (jax.random.normal(next(keys), s) * sc).astype(jnp.float32)

    params = {}
    params["embedding"] = rnd((N, dim), 1.0 / jnp.sqrt(dim))
    params["bn_out"] = dict(w=jnp.ones(dim), b=jnp.zeros(dim),
                            rm=jnp.zeros(dim), rv=jnp.ones(dim))
    params["gnn"] = [dict(
        lin_w=rnd((H * dim, Fd), 1.0 / jnp.sqrt(Fd)),        # Linear(F, H*dim), no bias
        att_i=rnd((H, dim), 1.0 / jnp.sqrt(dim)),
        att_j=rnd((H, dim), 1.0 / jnp.sqrt(dim)),
        att_em_i=jnp.zeros((H, dim), jnp.float32),
        att_em_j=jnp.zeros((H, dim), jnp.float32),
        bias=jnp.zeros((dim,), jnp.float32),
        bn_w=jnp.ones(dim), bn_b=jnp.zeros(dim),
        bn_rm=jnp.zeros(dim), bn_rv=jnp.ones(dim))]
    params["out_layer_w"] = rnd((Fd, dim), 1.0 / jnp.sqrt(dim))
    params["out_layer_b"] = jnp.zeros((Fd,), jnp.float32)
    layers = []
    for _ in range(nlayers):
        layers.append(dict(
            in_w=rnd((3 * E, E), 1.0 / jnp.sqrt(E)), in_b=jnp.zeros((3 * E,)),
            out_w=rnd((E, E), 1.0 / jnp.sqrt(E)), out_b=jnp.zeros((E,)),
            ff1_w=rnd((dff, E), 1.0 / jnp.sqrt(E)), ff1_b=jnp.zeros((dff,)),
            ff2_w=rnd((E, dff), 1.0 / jnp.sqrt(dff)), ff2_b=jnp.zeros((E,)),
            ln1_w=jnp.ones((E,)), ln1_b=jnp.zeros((E,)),
            ln2_w=jnp.ones((E,)), ln2_b=jnp.zeros((E,))))
    params["encoder_layers"] = layers
    params["fc_w"] = rnd((C, E), 1.0 / jnp.sqrt(E))
    params["fc_b"] = jnp.zeros((C,), jnp.float32)
    return params


# --------------------------------------------------------------------------
# One-time host-side prep: pre-transpose / pre-pad / bf16-cast weights, fold BN
# --------------------------------------------------------------------------
def prepare_params(raw, cfg):
    dff = cfg["dff"]

    def packed_linear(w_out_in, b=None, pad_n=True, k_mult=8):
        n, k = w_out_in.shape
        kp = _ru(k, k_mult)
        np_ = _ru(n, 128) if pad_n else n
        w = jnp.zeros((kp, np_), jnp.float32).at[:k, :n].set(
            jnp.asarray(w_out_in, jnp.float32).T)
        bb = jnp.zeros((1, np_), jnp.float32)
        if b is not None:
            bb = bb.at[0, :n].set(jnp.asarray(b, jnp.float32))
        return dict(w=w.astype(jnp.bfloat16), b=bb, n=n)

    def bn_fold(w, b, rm, rv, eps=1e-5):
        scale = jnp.asarray(w, jnp.float32) / jnp.sqrt(jnp.asarray(rv, jnp.float32) + eps)
        shift = jnp.asarray(b, jnp.float32) - jnp.asarray(rm, jnp.float32) * scale
        return scale, shift

    p = {}
    p["embedding"] = jnp.asarray(raw["embedding"], jnp.float32)
    p["bn_out_scale"], p["bn_out_shift"] = bn_fold(**raw["bn_out"], eps=1e-5) \
        if False else bn_fold(raw["bn_out"]["w"], raw["bn_out"]["b"],
                              raw["bn_out"]["rm"], raw["bn_out"]["rv"])
    g = raw["gnn"][0]
    p["gnn_lin"] = packed_linear(g["lin_w"])                    # Fd -> H*dim
    p["gnn_att_i"] = jnp.asarray(g["att_i"], jnp.float32)
    p["gnn_att_j"] = jnp.asarray(g["att_j"], jnp.float32)
    p["gnn_att_em_i"] = jnp.asarray(g["att_em_i"], jnp.float32)
    p["gnn_att_em_j"] = jnp.asarray(g["att_em_j"], jnp.float32)
    p["gnn_bias"] = jnp.asarray(g["bias"], jnp.float32)
    p["gnn_bn_scale"], p["gnn_bn_shift"] = bn_fold(g["bn_w"], g["bn_b"],
                                                   g["bn_rm"], g["bn_rv"])
    p["out_layer"] = packed_linear(raw["out_layer_w"], raw["out_layer_b"])
    layers = []
    for lyr in raw["encoder_layers"]:
        layers.append(dict(
            qkv=packed_linear(lyr["in_w"], lyr["in_b"]),                   # E -> 3E
            out=packed_linear(lyr["out_w"], lyr["out_b"], pad_n=False),    # E -> E
            ff1=packed_linear(lyr["ff1_w"], lyr["ff1_b"]),                 # E -> dff
            ff2=packed_linear(lyr["ff2_w"], lyr["ff2_b"], pad_n=False,
                              k_mult=128),                                 # dff -> E
            ln1_w=jnp.asarray(lyr["ln1_w"], jnp.float32),
            ln1_b=jnp.asarray(lyr["ln1_b"], jnp.float32),
            ln2_w=jnp.asarray(lyr["ln2_w"], jnp.float32),
            ln2_b=jnp.asarray(lyr["ln2_b"], jnp.float32)))
    p["encoder_layers"] = layers
    p["fc"] = packed_linear(raw["fc_w"], raw["fc_b"])
    return p


# --------------------------------------------------------------------------
# Learned top-k graph from embedding cosine similarity.
# Depends only on the (fixed) embedding -> computed once, outside the jit.
# --------------------------------------------------------------------------
def build_graph(embedding, batch_num, topk):
    emb = jnp.asarray(embedding, jnp.float32)
    N = emb.shape[0]
    norms = jnp.sqrt(jnp.sum(emb * emb, axis=-1))
    cos = (emb @ emb.T) / jnp.maximum(norms[:, None] * norms[None, :], 1e-12)
    _, topk_idx = lax.top_k(cos, topk)                                   # (N, topk)
    ar = jnp.arange(N)
    neigh = jnp.concatenate([topk_idx, ar[:, None]], axis=1)             # (N, K) + self-loop
    valid = jnp.concatenate([topk_idx != ar[:, None],
                             jnp.ones((N, 1), bool)], axis=1)            # remove_self_loops
    neigh_b = neigh[None] + (jnp.arange(batch_num) * N)[:, None, None]   # batch offsets
    neigh_flat = neigh_b.reshape(batch_num * N, -1).astype(jnp.int32)
    mask_flat = jnp.tile(valid[None], (batch_num, 1, 1)).reshape(batch_num * N, -1)
    return neigh_flat, mask_flat.astype(jnp.float32)


# --------------------------------------------------------------------------
# GDN forward (eval mode)
# --------------------------------------------------------------------------
def gdn_forward(p, cfg, time_in, data, neigh_flat, mask_flat, org_edge_index=None):
    # org_edge_index only feeds the (unused) cached batch_edge_index in the
    # reference forward, so it does not affect the output.
    del org_edge_index
    B, N, Fd = data.shape
    dim, H, nh = cfg["dim"], cfg["heads"], cfg["nhead"]
    D = dim
    M = B * N
    E = N                    # transformer d_model = node_num
    L = Fd                   # transformer seq len  = input_dim
    K = neigh_flat.shape[1]

    x = data.reshape(M, Fd).astype(jnp.float32)
    emb = p["embedding"]                                        # (N, dim)

    # ---- GraphLayer (heads=2, concat=False) ----
    lin = p["gnn_lin"]
    x_lin = pallas_linear(x, lin["w"], lin["b"], lin["n"])      # (M, H*D)
    x_lin_h = x_lin.reshape(M, H, D)
    all_emb = jnp.tile(emb, (B, 1))                             # (M, dim)
    # per-node attention logits: tiny VPU reductions, XLA-fused (no blockdiag
    # matmuls with >96%-zero weights)
    a_i = (jnp.einsum('mhd,hd->mh', x_lin_h, p["gnn_att_i"])
           + all_emb @ p["gnn_att_em_i"].T)                     # (M, H)
    a_j = (jnp.einsum('mhd,hd->mh', x_lin_h, p["gnn_att_j"])
           + all_emb @ p["gnn_att_em_j"].T)                     # (M, H)

    # TODO(synk): for large node_num*topk, move this dense neighbor gather into
    # the Pallas kernel via PrefetchScalarGridSpec scalar-prefetched indices.
    a_j_g = jnp.transpose(a_j[neigh_flat], (2, 0, 1))                        # (H, M, K)
    x_j_g = jnp.transpose(x_lin[neigh_flat].reshape(M, K, H, D), (2, 1, 0, 3))  # (H,K,M,D)

    gcn_out = pallas_gnn_agg(a_i, a_j_g, mask_flat, x_j_g,
                             p["gnn_bias"], p["gnn_bn_scale"], p["gnn_bn_shift"],
                             heads=H)                            # (M, D): agg+bias+BN+ReLU

    # ---- embedding gate + bn_outlayer_in (eval) + ReLU (dropout = id) ----
    out = gcn_out.reshape(B, N, D) * emb[None, :, :]
    out = out * p["bn_out_scale"] + p["bn_out_shift"]
    out = jnp.maximum(out, 0.0)

    # ---- OutLayer (layer_num=1 -> Linear(dim, input_dim)) ----
    ol = p["out_layer"]
    out = pallas_linear(out.reshape(M, D), ol["w"], ol["b"], ol["n"]).reshape(B, N, Fd)
    out = jnp.transpose(out, (0, 2, 1))                          # (B, Fd, N)

    # ---- temporal positional encoding ----
    alpha = cfg["alpha"]
    t = jnp.log2(1.0 + time_in.astype(jnp.float32) / alpha)[:, :, None]   # (B, Fd, 1)
    pos = jnp.arange(Fd, dtype=jnp.float32)[None, :, None]
    pos_time = pos + t
    angle_rates = 1.0 / jnp.power(10000.0, (2.0 * (jnp.arange(E) // 2)) / E)
    pe = pos_time * angle_rates[None, None, :]
    even = (jnp.arange(E) % 2 == 0)[None, None, :]
    pe = jnp.where(even, jnp.sin(pe), jnp.cos(pe))
    out = out + pe

    # ---- Transformer encoder (post-norm, ReLU FFN, eval dropout = id) ----
    hd = E // nh
    src = jnp.transpose(out, (1, 0, 2)).reshape(L * B, E)        # rows = (l, b)
    for lyr in p["encoder_layers"]:
        qw = lyr["qkv"]
        qkv = pallas_linear(src, qw["w"], qw["b"], qw["n"])      # (L*B, 3E)
        qkv = qkv.reshape(L, B, 3, nh, hd)
        q = jnp.transpose(qkv[:, :, 0], (1, 2, 0, 3)) * (float(hd) ** -0.5)
        k_ = jnp.transpose(qkv[:, :, 1], (1, 2, 0, 3))
        v = jnp.transpose(qkv[:, :, 2], (1, 2, 0, 3))            # (B, nh, L, hd)
        ao = pallas_mha_attention(q, k_, v, seq_len=L)           # (B, nh, L, hd)
        ao = jnp.transpose(ao, (2, 0, 1, 3)).reshape(L * B, E)
        ow = lyr["out"]
        src = pallas_linear_res_ln(ao, ow["w"], ow["b"], src,
                                   lyr["ln1_w"], lyr["ln1_b"])   # out-proj + add + LN1
        f1, f2 = lyr["ff1"], lyr["ff2"]
        src = pallas_ffn_res_ln(src, f1["w"], f1["b"], f2["w"], f2["b"],
                                lyr["ln2_w"], lyr["ln2_b"])      # ff1+relu+ff2+add+LN2
    out = jnp.transpose(src.reshape(L, B, E), (1, 0, 2))         # (B, L, E)

    fc = p["fc"]
    logits = pallas_linear(out.reshape(B * L, E), fc["w"], fc["b"], fc["n"])
    return logits                                                # (B*L, classes_num)


# --------------------------------------------------------------------------
if __name__ == "__main__":
    cfg = dict(node_num=16, dim=32, input_dim=10, topk=5, heads=2,
               nhead=4, nlayers=2, dff=2048, classes_num=5, alpha=0.1,
               batch_size=4)
    key = jax.random.PRNGKey(0)
    kp_, kd, kt = jax.random.split(key, 3)
    raw = init_params(kp_, cfg)
    params = prepare_params(raw, cfg)       # one-time: transpose/pad/bf16/BN-fold

    B, N, Fd = cfg["batch_size"], cfg["node_num"], cfg["input_dim"]
    data = jax.random.normal(kd, (B, N, Fd), jnp.float32)
    time_in = jax.random.uniform(kt, (B, Fd), jnp.float32, 0.5, 5.0)

    # learned graph is loop-invariant w.r.t. the data -> computed once, outside jit
    neigh_flat, mask_flat = build_graph(params["embedding"], B, cfg["topk"])

    fwd = jax.jit(lambda t, d, nf, mf: gdn_forward(params, cfg, t, d, nf, mf))
    out = fwd(time_in, data, neigh_flat, mask_flat)
    jax.block_until_ready(out)
    assert out.shape == (B * Fd, cfg["classes_num"])
    assert bool(jnp.all(jnp.isfinite(out)))
    print("KERNEL_OK")
</pallas_src>

<mosaic_0001>
module attributes {stable_mosaic.version = 11 : i64} {
  func.func @_linear_kernel(%arg0: i32, %arg1: memref<64x16xbf16, #tpu.memory_space<vmem>>, %arg2: memref<16x128xbf16, #tpu.memory_space<vmem>>, %arg3: memref<1x128xf32, #tpu.memory_space<vmem>>, %arg4: memref<64x128xf32, #tpu.memory_space<vmem>>) attributes {dimension_semantics = [#tpu.dimension_semantics<parallel>], iteration_bounds = array<i64: 1>, scalar_prefetch = 0 : i64, scratch_operands = 0 : i64, tpu.core_type = #tpu.core_type<tc>, window_params = [{transform_indices = @transform_0, window_bounds = array<i64: 64, 16>}, {pipeline_mode = #tpu.pipeline_mode<synchronous>, transform_indices = @transform_1, window_bounds = array<i64: 16, 128>}, {pipeline_mode = #tpu.pipeline_mode<synchronous>, transform_indices = @transform_2, window_bounds = array<i64: 1, 128>}, {transform_indices = @transform_3, window_bounds = array<i64: 64, 128>}]} {
    %c0 = arith.constant 0 : index
    %c0_0 = arith.constant 0 : index
    %0 = vector.load %arg1[%c0, %c0_0] : memref<64x16xbf16, #tpu.memory_space<vmem>>, vector<64x16xbf16>
    %c0_1 = arith.constant 0 : index
    %c0_2 = arith.constant 0 : index
    %1 = vector.load %arg2[%c0_1, %c0_2] : memref<16x128xbf16, #tpu.memory_space<vmem>>, vector<16x128xbf16>
    %cst = arith.constant dense<0.000000e+00> : vector<64x128xf32>
    %2 = tpu.matmul %0, %1, %cst {dimension_numbers = #tpu.dot_dimension_numbers<[1], [0], [0], [1], [0, 0, 1, 1], [], []>} : vector<64x16xbf16>, vector<16x128xbf16>, vector<64x128xf32> -> vector<64x128xf32>
    %c0_3 = arith.constant 0 : index
    %c0_4 = arith.constant 0 : index
    %3 = vector.load %arg3[%c0_3, %c0_4] : memref<1x128xf32, #tpu.memory_space<vmem>>, vector<1x128xf32>
    %4 = vector.broadcast %3 : vector<1x128xf32> to vector<64x128xf32>
    %5 = arith.addf %2, %4 : vector<64x128xf32>
    %c0_5 = arith.constant 0 : index
    %c0_6 = arith.constant 0 : index
    %6 = vector.load %arg4[%c0_5, %c0_6] : memref<64x128xf32, #tpu.memory_space<vmem>>, vector<64x128xf32>
    tpu.vector_store %arg4[%c0_5, %c0_6], %5 {strides = array<i32>} : memref<64x128xf32, #tpu.memory_space<vmem>>, vector<64x128xf32>,
    return
  }
  func.func @transform_0(%arg0: i32) -> (i32, i32) {
    %c0_i32 = arith.constant 0 : i32
    %c0_i32_0 = arith.constant 0 : i32
    return %arg0, %c0_i32 : i32, i32
  }
  func.func @transform_1(%arg0: i32) -> (i32, i32) {
    %c0_i32 = arith.constant 0 : i32
    %c0_i32_0 = arith.constant 0 : i32
    %c0_i32_1 = arith.constant 0 : i32
    return %c0_i32, %c0_i32_0 : i32, i32
  }
  func.func @transform_2(%arg0: i32) -> (i32, i32) {
    %c0_i32 = arith.constant 0 : i32
    %c0_i32_0 = arith.constant 0 : i32
    %c0_i32_1 = arith.constant 0 : i32
    return %c0_i32, %c0_i32_0 : i32, i32
  }
  func.func @transform_3(%arg0: i32) -> (i32, i32) {
    %c0_i32 = arith.constant 0 : i32
    %c0_i32_0 = arith.constant 0 : i32
    return %arg0, %c0_i32 : i32, i32
  }
}

module attributes {stable_mosaic.version = 11 : i64} {
  func.func @_linear_kernel(%arg0: i32, %arg1: memref<64x32xbf16, #tpu.memory_space<vmem>>, %arg2: memref<32x128xbf16, #tpu.memory_space<vmem>>, %arg3: memref<1x128xf32, #tpu.memory_space<vmem>>, %arg4: memref<64x128xf32, #tpu.memory_space<vmem>>) attributes {dimension_semantics = [#tpu.dimension_semantics<parallel>], iteration_bounds = array<i64: 1>, scalar_prefetch = 0 : i64, scratch_operands = 0 : i64, tpu.core_type = #tpu.core_type<tc>, window_params = [{transform_indices = @transform_0, window_bounds = array<i64: 64, 32>}, {pipeline_mode = #tpu.pipeline_mode<synchronous>, transform_indices = @transform_1, window_bounds = array<i64: 32, 128>}, {pipeline_mode = #tpu.pipeline_mode<synchronous>, transform_indices = @transform_2, window_bounds = array<i64: 1, 128>}, {transform_indices = @transform_3, window_bounds = array<i64: 64, 128>}]} {
    %c0 = arith.constant 0 : index
    %c0_0 = arith.constant 0 : index
    %0 = vector.load %arg1[%c0, %c0_0] : memref<64x32xbf16, #tpu.memory_space<vmem>>, vector<64x32xbf16>
    %c0_1 = arith.constant 0 : index
    %c0_2 = arith.constant 0 : index
    %1 = vector.load %arg2[%c0_1, %c0_2] : memref<32x128xbf16, #tpu.memory_space<vmem>>, vector<32x128xbf16>
    %cst = arith.constant dense<0.000000e+00> : vector<64x128xf32>
    %2 = tpu.matmul %0, %1, %cst {dimension_numbers = #tpu.dot_dimension_numbers<[1], [0], [0], [1], [0, 0, 1, 1], [], []>} : vector<64x32xbf16>, vector<32x128xbf16>, vector<64x128xf32> -> vector<64x128xf32>
    %c0_3 = arith.constant 0 : index
    %c0_4 = arith.constant 0 : index
    %3 = vector.load %arg3[%c0_3, %c0_4] : memref<1x128xf32, #tpu.memory_space<vmem>>, vector<1x128xf32>
    %4 = vector.broadcast %3 : vector<1x128xf32> to vector<64x128xf32>
    %5 = arith.addf %2, %4 : vector<64x128xf32>
    %c0_5 = arith.constant 0 : index
    %c0_6 = arith.constant 0 : index
    %6 = vector.load %arg4[%c0_5, %c0_6] : memref<64x128xf32, #tpu.memory_space<vmem>>, vector<64x128xf32>
    tpu.vector_store %arg4[%c0_5, %c0_6], %5 {strides = array<i32>} : memref<64x128xf32, #tpu.memory_space<vmem>>, vector<64x128xf32>,
    return
  }
  func.func @transform_0(%arg0: i32) -> (i32, i32) {
    %c0_i32 = arith.constant 0 : i32
    %c0_i32_0 = arith.constant 0 : i32
    return %arg0, %c0_i32 : i32, i32
  }
  func.func @transform_1(%arg0: i32) -> (i32, i32) {
    %c0_i32 = arith.constant 0 : i32
    %c0_i32_0 = arith.constant 0 : i32
    %c0_i32_1 = arith.constant 0 : i32
    return %c0_i32, %c0_i32_0 : i32, i32
  }
  func.func @transform_2(%arg0: i32) -> (i32, i32) {
    %c0_i32 = arith.constant 0 : i32
    %c0_i32_0 = arith.constant 0 : i32
    %c0_i32_1 = arith.constant 0 : i32
    return %c0_i32, %c0_i32_0 : i32, i32
  }
  func.func @transform_3(%arg0: i32) -> (i32, i32) {
    %c0_i32 = arith.constant 0 : i32
    %c0_i32_0 = arith.constant 0 : i32
    return %arg0, %c0_i32 : i32, i32
  }
}

module attributes {stable_mosaic.version = 11 : i64} {
  func.func @_gnn_agg_kernel(%arg0: i32, %arg1: memref<64x2xf32, #tpu.memory_space<vmem>>, %arg2: memref<2x64x6xf32, #tpu.memory_space<vmem>>, %arg3: memref<64x6xf32, #tpu.memory_space<vmem>>, %arg4: memref<2x6x64x32xf32, #tpu.memory_space<vmem>>, %arg5: memref<1x32xf32, #tpu.memory_space<vmem>>, %arg6: memref<1x32xf32, #tpu.memory_space<vmem>>, %arg7: memref<1x32xf32, #tpu.memory_space<vmem>>, %arg8: memref<64x32xf32, #tpu.memory_space<vmem>>) attributes {dimension_semantics = [#tpu.dimension_semantics<parallel>], iteration_bounds = array<i64: 1>, scalar_prefetch = 0 : i64, scratch_operands = 0 : i64, tpu.core_type = #tpu.core_type<tc>, window_params = [{transform_indices = @transform_0, window_bounds = array<i64: 64, 2>}, {transform_indices = @transform_1, window_bounds = array<i64: 2, 64, 6>}, {transform_indices = @transform_2, window_bounds = array<i64: 64, 6>}, {transform_indices = @transform_3, window_bounds = array<i64: 2, 6, 64, 32>}, {pipeline_mode = #tpu.pipeline_mode<synchronous>, transform_indices = @transform_4, window_bounds = array<i64: 1, 32>}, {pipeline_mode = #tpu.pipeline_mode<synchronous>, transform_indices = @transform_5, window_bounds = array<i64: 1, 32>}, {pipeline_mode = #tpu.pipeline_mode<synchronous>, transform_indices = @transform_6, window_bounds = array<i64: 1, 32>}, {transform_indices = @transform_7, window_bounds = array<i64: 64, 32>}]} {
    %c0 = arith.constant 0 : index
    %c0_0 = arith.constant 0 : index
    %0 = vector.load %arg3[%c0, %c0_0] : memref<64x6xf32, #tpu.memory_space<vmem>>, vector<64x6xf32>
    %cst = arith.constant 0.000000e+00 : f32
    %1 = vector.broadcast %cst : f32 to vector<64x32xf32>
    %c0_1 = arith.constant 0 : index
    %c0_2 = arith.constant 0 : index
    %2 = vector.load %arg1[%c0_1, %c0_2] : memref<64x2xf32, #tpu.memory_space<vmem>>, vector<64x1xf32>
    %c0_3 = arith.constant 0 : index
    %c0_4 = arith.constant 0 : index
    %c0_5 = arith.constant 0 : index
    %3 = vector.load %arg2[%c0_3, %c0_4, %c0_5] : memref<2x64x6xf32, #tpu.memory_space<vmem>>, vector<1x64x6xf32>
    %4 = vector.shape_cast %3 : vector<1x64x6xf32> to vector<64x6xf32>
    %5 = vector.broadcast %2 : vector<64x1xf32> to vector<64x6xf32>
    %6 = arith.addf %5, %4 : vector<64x6xf32>
    %cst_6 = arith.constant 0.000000e+00 : f32
    %7 = vector.broadcast %cst_6 : f32 to vector<64x6xf32>
    %8 = arith.cmpf oge, %6, %7 : vector<64x6xf32>
    %cst_7 = arith.constant 2.000000e-01 : f32
    %9 = vector.broadcast %cst_7 : f32 to vector<64x6xf32>
    %10 = arith.mulf %9, %6 : vector<64x6xf32>
    %11 = arith.select %8, %6, %10 : vector<64x6xi1>, vector<64x6xf32>
    %cst_8 = arith.constant 5.000000e-01 : f32
    %12 = vector.broadcast %cst_8 : f32 to vector<64x6xf32>
    %13 = arith.cmpf ogt, %0, %12 : vector<64x6xf32>
    %cst_9 = arith.constant -1.000000e+30 : f32
    %14 = vector.broadcast %cst_9 : f32 to vector<64x6xf32>
    %15 = arith.select %13, %11, %14 : vector<64x6xi1>, vector<64x6xf32>
    %cst_10 = arith.constant dense<0xFF800000> : vector<64xf32>
    %16 = vector.multi_reduction <maximumf>, %15, %cst_10 [1] : vector<64x6xf32> to vector<64xf32>
    %17 = vector.shape_cast %16 : vector<64xf32> to vector<64x1xf32>
    %18 = vector.broadcast %17 : vector<64x1xf32> to vector<64x6xf32>
    %19 = arith.subf %15, %18 : vector<64x6xf32>
    %20 = math.exp %19 : vector<64x6xf32>
    %cst_11 = arith.constant dense<0.000000e+00> : vector<64xf32>
    %21 = vector.multi_reduction <add>, %20, %cst_11 [1] : vector<64x6xf32> to vector<64xf32>
    %22 = vector.shape_cast %21 : vector<64xf32> to vector<64x1xf32>
    %23 = tpu.reciprocal %22 {approx = true} : vector<64x1xf32> -> vector<64x1xf32>
    %24 = vector.broadcast %23 : vector<64x1xf32> to vector<64x6xf32>
    %25 = arith.mulf %20, %24 : vector<64x6xf32>
    %26 = vector.extract_strided_slice %25 {offsets = [0, 0], sizes = [64, 1], strides = [1, 1]} : vector<64x6xf32> to vector<64x1xf32>
    %c0_12 = arith.constant 0 : index
    %c0_13 = arith.constant 0 : index
    %c0_14 = arith.constant 0 : index
    %c0_15 = arith.constant 0 : index
    %27 = vector.load %arg4[%c0_12, %c0_13, %c0_14, %c0_15] : memref<2x6x64x32xf32, #tpu.memory_space<vmem>>, vector<1x1x64x32xf32>
    %28 = vector.shape_cast %27 : vector<1x1x64x32xf32> to vector<64x32xf32>
    %29 = vector.broadcast %26 : vector<64x1xf32> to vector<64x32xf32>
    %30 = arith.mulf %29, %28 : vector<64x32xf32>
    %31 = arith.addf %1, %30 : vector<64x32xf32>
    %32 = vector.extract_strided_slice %25 {offsets = [0, 1], sizes = [64, 1], strides = [1, 1]} : vector<64x6xf32> to vector<64x1xf32>
    %c0_16 = arith.constant 0 : index
    %c1 = arith.constant 1 : index
    %c0_17 = arith.constant 0 : index
    %c0_18 = arith.constant 0 : index
    %33 = vector.load %arg4[%c0_16, %c1, %c0_17, %c0_18] : memref<2x6x64x32xf32, #tpu.memory_space<vmem>>, vector<1x1x64x32xf32>
    %34 = vector.shape_cast %33 : vector<1x1x64x32xf32> to vector<64x32xf32>
    %35 = vector.broadcast %32 : vector<64x1xf32> to vector<64x32xf32>
    %36 = arith.mulf %35, %34 : vector<64x32xf32>
    %37 = arith.addf %31, %36 : vector<64x32xf32>
    %38 = vector.extract_strided_slice %25 {offsets = [0, 2], sizes = [64, 1], strides = [1, 1]} : vector<64x6xf32> to vector<64x1xf32>
    %c0_19 = arith.constant 0 : index
    %c2 = arith.constant 2 : index
    %c0_20 = arith.constant 0 : index
    %c0_21 = arith.constant 0 : index
    %39 = vector.load %arg4[%c0_19, %c2, %c0_20, %c0_21] : memref<2x6x64x32xf32, #tpu.memory_space<vmem>>, vector<1x1x64x32xf32>
    %40 = vector.shape_cast %39 : vector<1x1x64x32xf32> to vector<64x32xf32>
    %41 = vector.broadcast %38 : vector<64x1xf32> to vector<64x32xf32>
    %42 = arith.mulf %41, %40 : vector<64x32xf32>
    %43 = arith.addf %37, %42 : vector<64x32xf32>
    %44 = vector.extract_strided_slice %25 {offsets = [0, 3], sizes = [64, 1], strides = [1, 1]} : vector<64x6xf32> to vector<64x1xf32>
    %c0_22 = arith.constant 0 : index
    %c3 = arith.constant 3 : index
    %c0_23 = arith.constant 0 : index
    %c0_24 = arith.constant 0 : index
    %45 = vector.load %arg4[%c0_22, %c3, %c0_23, %c0_24] : memref<2x6x64x32xf32, #tpu.memory_space<vmem>>, vector<1x1x64x32xf32>
    %46 = vector.shape_cast %45 : vector<1x1x64x32xf32> to vector<64x32xf32>
    %47 = vector.broadcast %44 : vector<64x1xf32> to vector<64x32xf32>
    %48 = arith.mulf %47, %46 : vector<64x32xf32>
    %49 = arith.addf %43, %48 : vector<64x32xf32>
    %50 = vector.extract_strided_slice %25 {offsets = [0, 4], sizes = [64, 1], strides = [1, 1]} : vector<64x6xf32> to vector<64x1xf32>
    %c0_25 = arith.constant 0 : index
    %c4 = arith.constant 4 : index
    %c0_26 = arith.constant 0 : index
    %c0_27 = arith.constant 0 : index
    %51 = vector.load %arg4[%c0_25, %c4, %c0_26, %c0_27] : memref<2x6x64x32xf32, #tpu.memory_space<vmem>>, vector<1x1x64x32xf32>
    %52 = vector.shape_cast %51 : vector<1x1x64x32xf32> to vector<64x32xf32>
    %53 = vector.broadcast %50 : vector<64x1xf32> to vector<64x32xf32>
    %54 = arith.mulf %53, %52 : vector<64x32xf32>
    %55 = arith.addf %49, %54 : vector<64x32xf32>
    %56 = vector.extract_strided_slice %25 {offsets = [0, 5], sizes = [64, 1], strides = [1, 1]} : vector<64x6xf32> to vector<64x1xf32>
    %c0_28 = arith.constant 0 : index
    %c5 = arith.constant 5 : index
    %c0_29 = arith.constant 0 : index
    %c0_30 = arith.constant 0 : index
    %57 = vector.load %arg4[%c0_28, %c5, %c0_29, %c0_30] : memref<2x6x64x32xf32, #tpu.memory_space<vmem>>, vector<1x1x64x32xf32>
    %58 = vector.shape_cast %57 : vector<1x1x64x32xf32> to vector<64x32xf32>
    %59 = vector.broadcast %56 : vector<64x1xf32> to vector<64x32xf32>
    %60 = arith.mulf %59, %58 : vector<64x32xf32>
    %61 = arith.addf %55, %60 : vector<64x32xf32>
    %c0_31 = arith.constant 0 : index
    %c1_32 = arith.constant 1 : index
    %62 = vector.load %arg1[%c0_31, %c1_32] : memref<64x2xf32, #tpu.memory_space<vmem>>, vector<64x1xf32>
    %c1_33 = arith.constant 1 : index
    %c0_34 = arith.constant 0 : index
    %c0_35 = arith.constant 0 : index
    %63 = vector.load %arg2[%c1_33, %c0_34, %c0_35] : memref<2x64x6xf32, #tpu.memory_space<vmem>>, vector<1x64x6xf32>
    %64 = vector.shape_cast %63 : vector<1x64x6xf32> to vector<64x6xf32>
    %65 = vector.broadcast %62 : vector<64x1xf32> to vector<64x6xf32>
    %66 = arith.addf %65, %64 : vector<64x6xf32>
    %cst_36 = arith.constant 0.000000e+00 : f32
    %67 = vector.broadcast %cst_36 : f32 to vector<64x6xf32>
    %68 = arith.cmpf oge, %66, %67 : vector<64x6xf32>
    %cst_37 = arith.constant 2.000000e-01 : f32
    %69 = vector.broadcast %cst_37 : f32 to vector<64x6xf32>
    %70 = arith.mulf %69, %66 : vector<64x6xf32>
    %71 = arith.select %68, %66, %70 : vector<64x6xi1>, vector<64x6xf32>
    %cst_38 = arith.constant 5.000000e-01 : f32
    %72 = vector.broadcast %cst_38 : f32 to vector<64x6xf32>
    %73 = arith.cmpf ogt, %0, %72 : vector<64x6xf32>
    %cst_39 = arith.constant -1.000000e+30 : f32
    %74 = vector.broadcast %cst_39 : f32 to vector<64x6xf32>
    %75 = arith.select %73, %71, %74 : vector<64x6xi1>, vector<64x6xf32>
    %cst_40 = arith.constant dense<0xFF800000> : vector<64xf32>
    %76 = vector.multi_reduction <maximumf>, %75, %cst_40 [1] : vector<64x6xf32> to vector<64xf32>
    %77 = vector.shape_cast %76 : vector<64xf32> to vector<64x1xf32>
    %78 = vector.broadcast %77 : vector<64x1xf32> to vector<64x6xf32>
    %79 = arith.subf %75, %78 : vector<64x6xf32>
    %80 = math.exp %79 : vector<64x6xf32>
    %cst_41 = arith.constant dense<0.000000e+00> : vector<64xf32>
    %81 = vector.multi_reduction <add>, %80, %cst_41 [1] : vector<64x6xf32> to vector<64xf32>
    %82 = vector.shape_cast %81 : vector<64xf32> to vector<64x1xf32>
    %83 = tpu.reciprocal %82 {approx = true} : vector<64x1xf32> -> vector<64x1xf32>
    %84 = vector.broadcast %83 : vector<64x1xf32> to vector<64x6xf32>
    %85 = arith.mulf %80, %84 : vector<64x6xf32>
    %86 = vector.extract_strided_slice %85 {offsets = [0, 0], sizes = [64, 1], strides = [1, 1]} : vector<64x6xf32> to vector<64x1xf32>
    %c1_42 = arith.constant 1 : index
    %c0_43 = arith.constant 0 : index
    %c0_44 = arith.constant 0 : index
    %c0_45 = arith.constant 0 : index
    %87 = vector.load %arg4[%c1_42, %c0_43, %c0_44, %c0_45] : memref<2x6x64x32xf32, #tpu.memory_space<vmem>>, vector<1x1x64x32xf32>
    %88 = vector.shape_cast %87 : vector<1x1x64x32xf32> to vector<64x32xf32>
    %89 = vector.broadcast %86 : vector<64x1xf32> to vector<64x32xf32>
    %90 = arith.mulf %89, %88 : vector<64x32xf32>
    %91 = arith.addf %61, %90 : vector<64x32xf32>
    %92 = vector.extract_strided_slice %85 {offsets = [0, 1], sizes = [64, 1], strides = [1, 1]} : vector<64x6xf32> to vector<64x1xf32>
    %c1_46 = arith.constant 1 : index
    %c1_47 = arith.constant 1 : index
    %c0_48 = arith.constant 0 : index
    %c0_49 = arith.constant 0 : index
    %93 = vector.load %arg4[%c1_46, %c1_47, %c0_48, %c0_49] : memref<2x6x64x32xf32, #tpu.memory_space<vmem>>, vector<1x1x64x32xf32>
    %94 = vector.shape_cast %93 : vector<1x1x64x32xf32> to vector<64x32xf32>
    %95 = vector.broadcast %92 : vector<64x1xf32> to vector<64x32xf32>
    %96 = arith.mulf %95, %94 : vector<64x32xf32>
    %97 = arith.addf %91, %96 : vector<64x32xf32>
    %98 = vector.extract_strided_slice %85 {offsets = [0, 2], sizes = [64, 1], strides = [1, 1]} : vector<64x6xf32> to vector<64x1xf32>
    %c1_50 = arith.constant 1 : index
    %c2_51 = arith.constant 2 : index
    %c0_52 = arith.constant 0 : index
    %c0_53 = arith.constant 0 : index
    %99 = vector.load %arg4[%c1_50, %c2_51, %c0_52, %c0_53] : memref<2x6x64x32xf32, #tpu.memory_space<vmem>>, vector<1x1x64x32xf32>
    %100 = vector.shape_cast %99 : vector<1x1x64x32xf32> to vector<64x32xf32>
    %101 = vector.broadcast %98 : vector<64x1xf32> to vector<64x32xf32>
    %102 = arith.mulf %101, %100 : vector<64x32xf32>
    %103 = arith.addf %97, %102 : vector<64x32xf32>
    %104 = vector.extract_strided_slice %85 {offsets = [0, 3], sizes = [64, 1], strides = [1, 1]} : vector<64x6xf32> to vector<64x1xf32>
    %c1_54 = arith.constant 1 : index
    %c3_55 = arith.constant 3 : index
    %c0_56 = arith.constant 0 : index
    %c0_57 = arith.constant 0 : index
    %105 = vector.load %arg4[%c1_54, %c3_55, %c0_56, %c0_57] : memref<2x6x64x32xf32, #tpu.memory_space<vmem>>, vector<1x1x64x32xf32>
    %106 = vector.shape_cast %105 : vector<1x1x64x32xf32> to vector<64x32xf32>
    %107 = vector.broadcast %104 : vector<64x1xf32> to vector<64x32xf32>
    %108 = arith.mulf %107, %106 : vector<64x32xf32>
    %109 = arith.addf %103, %108 : vector<64x32xf32>
    %110 = vector.extract_strided_slice %85 {offsets = [0, 4], sizes = [64, 1], strides = [1, 1]} : vector<64x6xf32> to vector<64x1xf32>
    %c1_58 = arith.constant 1 : index
    %c4_59 = arith.constant 4 : index
    %c0_60 = arith.constant 0 : index
    %c0_61 = arith.constant 0 : index
    %111 = vector.load %arg4[%c1_58, %c4_59, %c0_60, %c0_61] : memref<2x6x64x32xf32, #tpu.memory_space<vmem>>, vector<1x1x64x32xf32>
    %112 = vector.shape_cast %111 : vector<1x1x64x32xf32> to vector<64x32xf32>
    %113 = vector.broadcast %110 : vector<64x1xf32> to vector<64x32xf32>
    %114 = arith.mulf %113, %112 : vector<64x32xf32>
    %115 = arith.addf %109, %114 : vector<64x32xf32>
    %116 = vector.extract_strided_slice %85 {offsets = [0, 5], sizes = [64, 1], strides = [1, 1]} : vector<64x6xf32> to vector<64x1xf32>
    %c1_62 = arith.constant 1 : index
    %c5_63 = arith.constant 5 : index
    %c0_64 = arith.constant 0 : index
    %c0_65 = arith.constant 0 : index
    %117 = vector.load %arg4[%c1_62, %c5_63, %c0_64, %c0_65] : memref<2x6x64x32xf32, #tpu.memory_space<vmem>>, vector<1x1x64x32xf32>
    %118 = vector.shape_cast %117 : vector<1x1x64x32xf32> to vector<64x32xf32>
    %119 = vector.broadcast %116 : vector<64x1xf32> to vector<64x32xf32>
    %120 = arith.mulf %119, %118 : vector<64x32xf32>
    %121 = arith.addf %115, %120 : vector<64x32xf32>
    %cst_66 = arith.constant 5.000000e-01 : f32
    %122 = vector.broadcast %cst_66 : f32 to vector<64x32xf32>
    %123 = arith.mulf %121, %122 : vector<64x32xf32>
    %c0_67 = arith.constant 0 : index
    %c0_68 = arith.constant 0 : index
    %124 = vector.load %arg5[%c0_67, %c0_68] : memref<1x32xf32, #tpu.memory_space<vmem>>, vector<1x32xf32>
    %125 = vector.broadcast %124 : vector<1x32xf32> to vector<64x32xf32>
    %126 = arith.addf %123, %125 : vector<64x32xf32>
    %c0_69 = arith.constant 0 : index
    %c0_70 = arith.constant 0 : index
    %127 = vector.load %arg6[%c0_69, %c0_70] : memref<1x32xf32, #tpu.memory_space<vmem>>, vector<1x32xf32>
    %128 = vector.broadcast %127 : vector<1x32xf32> to vector<64x32xf32>
    %129 = arith.mulf %126, %128 : vector<64x32xf32>
    %c0_71 = arith.constant 0 : index
    %c0_72 = arith.constant 0 : index
    %130 = vector.load %arg7[%c0_71, %c0_72] : memref<1x32xf32, #tpu.memory_space<vmem>>, vector<1x32xf32>
    %131 = vector.broadcast %130 : vector<1x32xf32> to vector<64x32xf32>
    %132 = arith.addf %129, %131 : vector<64x32xf32>
    %cst_73 = arith.constant 0.000000e+00 : f32
    %133 = vector.broadcast %cst_73 : f32 to vector<64x32xf32>
    %134 = arith.maximumf %132, %133 : vector<64x32xf32>
    %c0_74 = arith.constant 0 : index
    %c0_75 = arith.constant 0 : index
    %135 = vector.load %arg8[%c0_74, %c0_75] : memref<64x32xf32, #tpu.memory_space<vmem>>, vector<64x32xf32>
    tpu.vector_store %arg8[%c0_74, %c0_75], %134 {strides = array<i32>} : memref<64x32xf32, #tpu.memory_space<vmem>>, vector<64x32xf32>,
    return
  }
  func.func @transform_0(%arg0: i32) -> (i32, i32) {
    %c0_i32 = arith.constant 0 : i32
    %c0_i32_0 = arith.constant 0 : i32
    return %arg0, %c0_i32 : i32, i32
  }
  func.func @transform_1(%arg0: i32) -> (i32, i32, i32) {
    %c0_i32 = arith.constant 0 : i32
    %c0_i32_0 = arith.constant 0 : i32
    %c0_i32_1 = arith.constant 0 : i32
    return %c0_i32, %arg0, %c0_i32_0 : i32, i32, i32
  }
  func.func @transform_2(%arg0: i32) -> (i32, i32) {
    %c0_i32 = arith.constant 0 : i32
    %c0_i32_0 = arith.constant 0 : i32
    return %arg0, %c0_i32 : i32, i32
  }
  func.func @transform_3(%arg0: i32) -> (i32, i32, i32, i32) {
    %c0_i32 = arith.constant 0 : i32
    %c0_i32_0 = arith.constant 0 : i32
    %c0_i32_1 = arith.constant 0 : i32
    %c0_i32_2 = arith.constant 0 : i32
    return %c0_i32, %c0_i32_0, %arg0, %c0_i32_1 : i32, i32, i32, i32
  }
  func.func @transform_4(%arg0: i32) -> (i32, i32) {
    %c0_i32 = arith.constant 0 : i32
    %c0_i32_0 = arith.constant 0 : i32
    %c0_i32_1 = arith.constant 0 : i32
    return %c0_i32, %c0_i32_0 : i32, i32
  }
  func.func @transform_5(%arg0: i32) -> (i32, i32) {
    %c0_i32 = arith.constant 0 : i32
    %c0_i32_0 = arith.constant 0 : i32
    %c0_i32_1 = arith.constant 0 : i32
    return %c0_i32, %c0_i32_0 : i32, i32
  }
  func.func @transform_6(%arg0: i32) -> (i32, i32) {
    %c0_i32 = arith.constant 0 : i32
    %c0_i32_0 = arith.constant 0 : i32
    %c0_i32_1 = arith.constant 0 : i32
    return %c0_i32, %c0_i32_0 : i32, i32
  }
  func.func @transform_7(%arg0: i32) -> (i32, i32) {
    %c0_i32 = arith.constant 0 : i32
    %c0_i32_0 = arith.constant 0 : i32
    return %arg0, %c0_i32 : i32, i32
  }
}

module attributes {stable_mosaic.version = 11 : i64} {
  func.func @_linear_kernel(%arg0: i32, %arg1: memref<40x16xbf16, #tpu.memory_space<vmem>>, %arg2: memref<16x128xbf16, #tpu.memory_space<vmem>>, %arg3: memref<1x128xf32, #tpu.memory_space<vmem>>, %arg4: memref<40x128xf32, #tpu.memory_space<vmem>>) attributes {dimension_semantics = [#tpu.dimension_semantics<parallel>], iteration_bounds = array<i64: 1>, scalar_prefetch = 0 : i64, scratch_operands = 0 : i64, tpu.core_type = #tpu.core_type<tc>, window_params = [{transform_indices = @transform_0, window_bounds = array<i64: 40, 16>}, {pipeline_mode = #tpu.pipeline_mode<synchronous>, transform_indices = @transform_1, window_bounds = array<i64: 16, 128>}, {pipeline_mode = #tpu.pipeline_mode<synchronous>, transform_indices = @transform_2, window_bounds = array<i64: 1, 128>}, {transform_indices = @transform_3, window_bounds = array<i64: 40, 128>}]} {
    %c0 = arith.constant 0 : index
    %c0_0 = arith.constant 0 : index
    %0 = vector.load %arg1[%c0, %c0_0] : memref<40x16xbf16, #tpu.memory_space<vmem>>, vector<40x16xbf16>
    %c0_1 = arith.constant 0 : index
    %c0_2 = arith.constant 0 : index
    %1 = vector.load %arg2[%c0_1, %c0_2] : memref<16x128xbf16, #tpu.memory_space<vmem>>, vector<16x128xbf16>
    %cst = arith.constant dense<0.000000e+00> : vector<40x128xf32>
    %2 = tpu.matmul %0, %1, %cst {dimension_numbers = #tpu.dot_dimension_numbers<[1], [0], [0], [1], [0, 0, 1, 1], [], []>} : vector<40x16xbf16>, vector<16x128xbf16>, vector<40x128xf32> -> vector<40x128xf32>
    %c0_3 = arith.constant 0 : index
    %c0_4 = arith.constant 0 : index
    %3 = vector.load %arg3[%c0_3, %c0_4] : memref<1x128xf32, #tpu.memory_space<vmem>>, vector<1x128xf32>
    %4 = vector.broadcast %3 : vector<1x128xf32> to vector<40x128xf32>
    %5 = arith.addf %2, %4 : vector<40x128xf32>
    %c0_5 = arith.constant 0 : index
    %c0_6 = arith.constant 0 : index
    %6 = vector.load %arg4[%c0_5, %c0_6] : memref<40x128xf32, #tpu.memory_space<vmem>>, vector<40x128xf32>
    tpu.vector_store %arg4[%c0_5, %c0_6], %5 {strides = array<i32>} : memref<40x128xf32, #tpu.memory_space<vmem>>, vector<40x128xf32>,
    return
  }
  func.func @transform_0(%arg0: i32) -> (i32, i32) {
    %c0_i32 = arith.constant 0 : i32
    %c0_i32_0 = arith.constant 0 : i32
    return %arg0, %c0_i32 : i32, i32
  }
  func.func @transform_1(%arg0: i32) -> (i32, i32) {
    %c0_i32 = arith.constant 0 : i32
    %c0_i32_0 = arith.constant 0 : i32
    %c0_i32_1 = arith.constant 0 : i32
    return %c0_i32, %c0_i32_0 : i32, i32
  }
  func.func @transform_2(%arg0: i32) -> (i32, i32) {
    %c0_i32 = arith.constant 0 : i32
    %c0_i32_0 = arith.constant 0 : i32
    %c0_i32_1 = arith.constant 0 : i32
    return %c0_i32, %c0_i32_0 : i32, i32
  }
  func.func @transform_3(%arg0: i32) -> (i32, i32) {
    %c0_i32 = arith.constant 0 : i32
    %c0_i32_0 = arith.constant 0 : i32
    return %arg0, %c0_i32 : i32, i32
  }
}

module attributes {stable_mosaic.version = 11 : i64} {
  func.func @_mha_kernel(%arg0: i32, %arg1: memref<1x4x16x4xbf16, #tpu.memory_space<vmem>>, %arg2: memref<1x4x16x4xbf16, #tpu.memory_space<vmem>>, %arg3: memref<1x4x16x4xbf16, #tpu.memory_space<vmem>>, %arg4: memref<1x4x16x4xf32, #tpu.memory_space<vmem>>) attributes {dimension_semantics = [#tpu.dimension_semantics<parallel>], iteration_bounds = array<i64: 4>, scalar_prefetch = 0 : i64, scratch_operands = 0 : i64, tpu.core_type = #tpu.core_type<tc>, window_params = [{transform_indices = @transform_0, window_bounds = array<i64: 1, 4, 16, 4>}, {transform_indices = @transform_1, window_bounds = array<i64: 1, 4, 16, 4>}, {transform_indices = @transform_2, window_bounds = array<i64: 1, 4, 16, 4>}, {transform_indices = @transform_3, window_bounds = array<i64: 1, 4, 16, 4>}]} {
    %c0 = arith.constant 0 : index
    %c0_0 = arith.constant 0 : index
    %c0_1 = arith.constant 0 : index
    %c0_2 = arith.constant 0 : index
    %0 = vector.load %arg1[%c0, %c0_0, %c0_1, %c0_2] : memref<1x4x16x4xbf16, #tpu.memory_space<vmem>>, vector<1x4x16x4xbf16>
    %1 = vector.shape_cast %0 : vector<1x4x16x4xbf16> to vector<4x16x4xbf16>
    %c0_3 = arith.constant 0 : index
    %c0_4 = arith.constant 0 : index
    %c0_5 = arith.constant 0 : index
    %c0_6 = arith.constant 0 : index
    %2 = vector.load %arg2[%c0_3, %c0_4, %c0_5, %c0_6] : memref<1x4x16x4xbf16, #tpu.memory_space<vmem>>, vector<1x4x16x4xbf16>
    %3 = vector.shape_cast %2 : vector<1x4x16x4xbf16> to vector<4x16x4xbf16>
    %c0_7 = arith.constant 0 : index
    %c0_8 = arith.constant 0 : index
    %c0_9 = arith.constant 0 : index
    %c0_10 = arith.constant 0 : index
    %4 = vector.load %arg3[%c0_7, %c0_8, %c0_9, %c0_10] : memref<1x4x16x4xbf16, #tpu.memory_space<vmem>>, vector<1x4x16x4xbf16>
    %5 = vector.shape_cast %4 : vector<1x4x16x4xbf16> to vector<4x16x4xbf16>
    "tpu.trace_start"() <{level = 10 : i32, message = "hqd,hkd->hqk"}> : () -> ()
    %cst = arith.constant dense<0.000000e+00> : vector<4x16x16xf32>
    %6 = tpu.matmul %1, %3, %cst {dimension_numbers = #tpu.dot_dimension_numbers<[2], [2], [1], [1], [0, 0, 0, 1, 1, 1], [0], [0]>} : vector<4x16x4xbf16>, vector<4x16x4xbf16>, vector<4x16x16xf32> -> vector<4x16x16xf32>
    "tpu.trace_stop"() : () -> ()
    %7 = tpu.iota {dimensions = array<i32: 1>} : vector<16x16xi32>
    %8 = vector.shape_cast %7 : vector<16x16xi32> to vector<1x16x16xi32>
    %c10_i32 = arith.constant 10 : i32
    %9 = vector.broadcast %c10_i32 : i32 to vector<1x16x16xi32>
    %10 = arith.cmpi slt, %8, %9 : vector<1x16x16xi32>
    %cst_11 = arith.constant -1.000000e+30 : f32
    %11 = vector.shape_cast %10 : vector<1x16x16xi1> to vector<1x16x16xi1>
    %12 = vector.broadcast %11 : vector<1x16x16xi1> to vector<4x16x16xi1>
    %13 = vector.broadcast %cst_11 : f32 to vector<4x16x16xf32>
    %14 = arith.select %12, %6, %13 : vector<4x16x16xi1>, vector<4x16x16xf32>
    %cst_12 = arith.constant dense<0xFF800000> : vector<4x16xf32>
    %15 = vector.multi_reduction <maximumf>, %14, %cst_12 [2] : vector<4x16x16xf32> to vector<4x16xf32>
    %16 = vector.shape_cast %15 : vector<4x16xf32> to vector<4x16x1xf32>
    %17 = vector.broadcast %16 : vector<4x16x1xf32> to vector<4x16x16xf32>
    %18 = arith.subf %14, %17 : vector<4x16x16xf32>
    %19 = math.exp %18 : vector<4x16x16xf32>
    %cst_13 = arith.constant dense<0.000000e+00> : vector<4x16xf32>
    %20 = vector.multi_reduction <add>, %19, %cst_13 [2] : vector<4x16x16xf32> to vector<4x16xf32>
    %21 = vector.shape_cast %20 : vector<4x16xf32> to vector<4x16x1xf32>
    %22 = tpu.reciprocal %21 {approx = true} : vector<4x16x1xf32> -> vector<4x16x1xf32>
    %23 = vector.broadcast %22 : vector<4x16x1xf32> to vector<4x16x16xf32>
    %24 = arith.mulf %19, %23 : vector<4x16x16xf32>
    %25 = arith.truncf %24 : vector<4x16x16xf32> to vector<4x16x16xbf16>
    "tpu.trace_start"() <{level = 10 : i32, message = "hqk,hkd->hqd"}> : () -> ()
    %cst_14 = arith.constant dense<0.000000e+00> : vector<4x16x4xf32>
    %26 = tpu.matmul %25, %5, %cst_14 {dimension_numbers = #tpu.dot_dimension_numbers<[2], [1], [1], [2], [0, 0, 0, 1, 1, 2], [0], [0]>} : vector<4x16x16xbf16>, vector<4x16x4xbf16>, vector<4x16x4xf32> -> vector<4x16x4xf32>
    "tpu.trace_stop"() : () -> ()
    %27 = vector.shape_cast %26 : vector<4x16x4xf32> to vector<1x4x16x4xf32>
    %c0_15 = arith.constant 0 : index
    %c0_16 = arith.constant 0 : index
    %c0_17 = arith.constant 0 : index
    %c0_18 = arith.constant 0 : index
    %28 = vector.load %arg4[%c0_15, %c0_16, %c0_17, %c0_18] : memref<1x4x16x4xf32, #tpu.memory_space<vmem>>, vector<1x4x16x4xf32>
    tpu.vector_store %arg4[%c0_15, %c0_16, %c0_17, %c0_18], %27 {strides = array<i32>} : memref<1x4x16x4xf32, #tpu.memory_space<vmem>>, vector<1x4x16x4xf32>,
    return
  }
  func.func @transform_0(%arg0: i32) -> (i32, i32, i32, i32) {
    %c0_i32 = arith.constant 0 : i32
    %c0_i32_0 = arith.constant 0 : i32
    %c0_i32_1 = arith.constant 0 : i32
    %c0_i32_2 = arith.constant 0 : i32
    return %arg0, %c0_i32, %c0_i32_0, %c0_i32_1 : i32, i32, i32, i32
  }
  func.func @transform_1(%arg0: i32) -> (i32, i32, i32, i32) {
    %c0_i32 = arith.constant 0 : i32
    %c0_i32_0 = arith.constant 0 : i32
    %c0_i32_1 = arith.constant 0 : i32
    %c0_i32_2 = arith.constant 0 : i32
    return %arg0, %c0_i32, %c0_i32_0, %c0_i32_1 : i32, i32, i32, i32
  }
  func.func @transform_2(%arg0: i32) -> (i32, i32, i32, i32) {
    %c0_i32 = arith.constant 0 : i32
    %c0_i32_0 = arith.constant 0 : i32
    %c0_i32_1 = arith.constant 0 : i32
    %c0_i32_2 = arith.constant 0 : i32
    return %arg0, %c0_i32, %c0_i32_0, %c0_i32_1 : i32, i32, i32, i32
  }
  func.func @transform_3(%arg0: i32) -> (i32, i32, i32, i32) {
    %c0_i32 = arith.constant 0 : i32
    %c0_i32_0 = arith.constant 0 : i32
    %c0_i32_1 = arith.constant 0 : i32
    %c0_i32_2 = arith.constant 0 : i32
    return %arg0, %c0_i32, %c0_i32_0, %c0_i32_1 : i32, i32, i32, i32
  }
}

module attributes {stable_mosaic.version = 11 : i64} {
  func.func @_ffn_res_ln_kernel(%arg0: i32, %arg1: memref<40x16xf32, #tpu.memory_space<vmem>>, %arg2: memref<16x2048xbf16, #tpu.memory_space<vmem>>, %arg3: memref<1x2048xf32, #tpu.memory_space<vmem>>, %arg4: memref<2048x16xbf16, #tpu.memory_space<vmem>>, %arg5: memref<1x16xf32, #tpu.memory_space<vmem>>, %arg6: memref<1x16xf32, #tpu.memory_space<vmem>>, %arg7: memref<1x16xf32, #tpu.memory_space<vmem>>, %arg8: memref<40x16xf32, #tpu.memory_space<vmem>>) attributes {dimension_semantics = [#tpu.dimension_semantics<parallel>], iteration_bounds = array<i64: 1>, scalar_prefetch = 0 : i64, scratch_operands = 0 : i64, tpu.core_type = #tpu.core_type<tc>, window_params = [{transform_indices = @transform_0, window_bounds = array<i64: 40, 16>}, {pipeline_mode = #tpu.pipeline_mode<synchronous>, transform_indices = @transform_1, window_bounds = array<i64: 16, 2048>}, {pipeline_mode = #tpu.pipeline_mode<synchronous>, transform_indices = @transform_2, window_bounds = array<i64: 1, 2048>}, {pipeline_mode = #tpu.pipeline_mode<synchronous>, transform_indices = @transform_3, window_bounds = array<i64: 2048, 16>}, {pipeline_mode = #tpu.pipeline_mode<synchronous>, transform_indices = @transform_4, window_bounds = array<i64: 1, 16>}, {pipeline_mode = #tpu.pipeline_mode<synchronous>, transform_indices = @transform_5, window_bounds = array<i64: 1, 16>}, {pipeline_mode = #tpu.pipeline_mode<synchronous>, transform_indices = @transform_6, window_bounds = array<i64: 1, 16>}, {transform_indices = @transform_7, window_bounds = array<i64: 40, 16>}]} {
    %c0 = arith.constant 0 : index
    %c0_0 = arith.constant 0 : index
    %0 = vector.load %arg1[%c0, %c0_0] : memref<40x16xf32, #tpu.memory_space<vmem>>, vector<40x16xf32>
    %1 = arith.truncf %0 : vector<40x16xf32> to vector<40x16xbf16>
    %c0_1 = arith.constant 0 : index
    %c0_2 = arith.constant 0 : index
    %2 = vector.load %arg2[%c0_1, %c0_2] : memref<16x2048xbf16, #tpu.memory_space<vmem>>, vector<16x2048xbf16>
    %cst = arith.constant dense<0.000000e+00> : vector<40x2048xf32>
    %3 = tpu.matmul %1, %2, %cst {dimension_numbers = #tpu.dot_dimension_numbers<[1], [0], [0], [1], [0, 0, 1, 1], [], []>} : vector<40x16xbf16>, vector<16x2048xbf16>, vector<40x2048xf32> -> vector<40x2048xf32>
    %c0_3 = arith.constant 0 : index
    %c0_4 = arith.constant 0 : index
    %4 = vector.load %arg3[%c0_3, %c0_4] : memref<1x2048xf32, #tpu.memory_space<vmem>>, vector<1x2048xf32>
    %5 = vector.broadcast %4 : vector<1x2048xf32> to vector<40x2048xf32>
    %6 = arith.addf %3, %5 : vector<40x2048xf32>
    %cst_5 = arith.constant 0.000000e+00 : f32
    %7 = vector.broadcast %cst_5 : f32 to vector<40x2048xf32>
    %8 = arith.maximumf %6, %7 : vector<40x2048xf32>
    %9 = arith.truncf %8 : vector<40x2048xf32> to vector<40x2048xbf16>
    %c0_6 = arith.constant 0 : index
    %c0_7 = arith.constant 0 : index
    %10 = vector.load %arg4[%c0_6, %c0_7] : memref<2048x16xbf16, #tpu.memory_space<vmem>>, vector<2048x16xbf16>
    %cst_8 = arith.constant dense<0.000000e+00> : vector<40x16xf32>
    %11 = tpu.matmul %9, %10, %cst_8 {dimension_numbers = #tpu.dot_dimension_numbers<[1], [0], [0], [1], [0, 0, 1, 1], [], []>} : vector<40x2048xbf16>, vector<2048x16xbf16>, vector<40x16xf32> -> vector<40x16xf32>
    %c0_9 = arith.constant 0 : index
    %c0_10 = arith.constant 0 : index
    %12 = vector.load %arg5[%c0_9, %c0_10] : memref<1x16xf32, #tpu.memory_space<vmem>>, vector<1x16xf32>
    %13 = vector.broadcast %12 : vector<1x16xf32> to vector<40x16xf32>
    %14 = arith.addf %11, %13 : vector<40x16xf32>
    %15 = arith.addf %14, %0 : vector<40x16xf32>
    %cst_11 = arith.constant dense<0.000000e+00> : vector<40xf32>
    %16 = vector.multi_reduction <add>, %15, %cst_11 [1] : vector<40x16xf32> to vector<40xf32>
    %17 = vector.shape_cast %16 : vector<40xf32> to vector<40x1xf32>
    %cst_12 = arith.constant 1.600000e+01 : f32
    %18 = vector.broadcast %cst_12 : f32 to vector<40x1xf32>
    %19 = arith.divf %17, %18 : vector<40x1xf32>
    %20 = vector.broadcast %19 : vector<40x1xf32> to vector<40x16xf32>
    %21 = arith.subf %15, %20 : vector<40x16xf32>
    %22 = arith.mulf %21, %21 : vector<40x16xf32>
    %cst_13 = arith.constant dense<0.000000e+00> : vector<40xf32>
    %23 = vector.multi_reduction <add>, %22, %cst_13 [1] : vector<40x16xf32> to vector<40xf32>
    %24 = vector.shape_cast %23 : vector<40xf32> to vector<40x1xf32>
    %cst_14 = arith.constant 1.600000e+01 : f32
    %25 = vector.broadcast %cst_14 : f32 to vector<40x1xf32>
    %26 = arith.divf %24, %25 : vector<40x1xf32>
    %cst_15 = arith.constant 9.99999974E-6 : f32
    %27 = vector.broadcast %cst_15 : f32 to vector<40x1xf32>
    %28 = arith.addf %26, %27 : vector<40x1xf32>
    %29 = math.rsqrt %28 : vector<40x1xf32>
    %30 = vector.broadcast %29 : vector<40x1xf32> to vector<40x16xf32>
    %31 = arith.mulf %21, %30 : vector<40x16xf32>
    %c0_16 = arith.constant 0 : index
    %c0_17 = arith.constant 0 : index
    %32 = vector.load %arg6[%c0_16, %c0_17] : memref<1x16xf32, #tpu.memory_space<vmem>>, vector<1x16xf32>
    %33 = vector.broadcast %32 : vector<1x16xf32> to vector<40x16xf32>
    %34 = arith.mulf %31, %33 : vector<40x16xf32>
    %c0_18 = arith.constant 0 : index
    %c0_19 = arith.constant 0 : index
    %35 = vector.load %arg7[%c0_18, %c0_19] : memref<1x16xf32, #tpu.memory_space<vmem>>, vector<1x16xf32>
    %36 = vector.broadcast %35 : vector<1x16xf32> to vector<40x16xf32>
    %37 = arith.addf %34, %36 : vector<40x16xf32>
    %c0_20 = arith.constant 0 : index
    %c0_21 = arith.constant 0 : index
    %38 = vector.load %arg8[%c0_20, %c0_21] : memref<40x16xf32, #tpu.memory_space<vmem>>, vector<40x16xf32>
    tpu.vector_store %arg8[%c0_20, %c0_21], %37 {strides = array<i32>} : memref<40x16xf32, #tpu.memory_space<vmem>>, vector<40x16xf32>,
    return
  }
  func.func @transform_0(%arg0: i32) -> (i32, i32) {
    %c0_i32 = arith.constant 0 : i32
    %c0_i32_0 = arith.constant 0 : i32
    return %arg0, %c0_i32 : i32, i32
  }
  func.func @transform_1(%arg0: i32) -> (i32, i32) {
    %c0_i32 = arith.constant 0 : i32
    %c0_i32_0 = arith.constant 0 : i32
    %c0_i32_1 = arith.constant 0 : i32
    return %c0_i32, %c0_i32_0 : i32, i32
  }
  func.func @transform_2(%arg0: i32) -> (i32, i32) {
    %c0_i32 = arith.constant 0 : i32
    %c0_i32_0 = arith.constant 0 : i32
    %c0_i32_1 = arith.constant 0 : i32
    return %c0_i32, %c0_i32_0 : i32, i32
  }
  func.func @transform_3(%arg0: i32) -> (i32, i32) {
    %c0_i32 = arith.constant 0 : i32
    %c0_i32_0 = arith.constant 0 : i32
    %c0_i32_1 = arith.constant 0 : i32
    return %c0_i32, %c0_i32_0 : i32, i32
  }
  func.func @transform_4(%arg0: i32) -> (i32, i32) {
    %c0_i32 = arith.constant 0 : i32
    %c0_i32_0 = arith.constant 0 : i32
    %c0_i32_1 = arith.constant 0 : i32
    return %c0_i32, %c0_i32_0 : i32, i32
  }
  func.func @transform_5(%arg0: i32) -> (i32, i32) {
    %c0_i32 = arith.constant 0 : i32
    %c0_i32_0 = arith.constant 0 : i32
    %c0_i32_1 = arith.constant 0 : i32
    return %c0_i32, %c0_i32_0 : i32, i32
  }
  func.func @transform_6(%arg0: i32) -> (i32, i32) {
    %c0_i32 = arith.constant 0 : i32
    %c0_i32_0 = arith.constant 0 : i32
    %c0_i32_1 = arith.constant 0 : i32
    return %c0_i32, %c0_i32_0 : i32, i32
  }
  func.func @transform_7(%arg0: i32) -> (i32, i32) {
    %c0_i32 = arith.constant 0 : i32
    %c0_i32_0 = arith.constant 0 : i32
    return %arg0, %c0_i32 : i32, i32
  }
}

module attributes {stable_mosaic.version = 11 : i64} {
  func.func @_linear_res_ln_kernel(%arg0: i32, %arg1: memref<40x16xbf16, #tpu.memory_space<vmem>>, %arg2: memref<16x16xbf16, #tpu.memory_space<vmem>>, %arg3: memref<1x16xf32, #tpu.memory_space<vmem>>, %arg4: memref<40x16xf32, #tpu.memory_space<vmem>>, %arg5: memref<1x16xf32, #tpu.memory_space<vmem>>, %arg6: memref<1x16xf32, #tpu.memory_space<vmem>>, %arg7: memref<40x16xf32, #tpu.memory_space<vmem>>) attributes {dimension_semantics = [#tpu.dimension_semantics<parallel>], iteration_bounds = array<i64: 1>, scalar_prefetch = 0 : i64, scratch_operands = 0 : i64, tpu.core_type = #tpu.core_type<tc>, window_params = [{transform_indices = @transform_0, window_bounds = array<i64: 40, 16>}, {pipeline_mode = #tpu.pipeline_mode<synchronous>, transform_indices = @transform_1, window_bounds = array<i64: 16, 16>}, {pipeline_mode = #tpu.pipeline_mode<synchronous>, transform_indices = @transform_2, window_bounds = array<i64: 1, 16>}, {transform_indices = @transform_3, window_bounds = array<i64: 40, 16>}, {pipeline_mode = #tpu.pipeline_mode<synchronous>, transform_indices = @transform_4, window_bounds = array<i64: 1, 16>}, {pipeline_mode = #tpu.pipeline_mode<synchronous>, transform_indices = @transform_5, window_bounds = array<i64: 1, 16>}, {transform_indices = @transform_6, window_bounds = array<i64: 40, 16>}]} {
    %c0 = arith.constant 0 : index
    %c0_0 = arith.constant 0 : index
    %0 = vector.load %arg1[%c0, %c0_0] : memref<40x16xbf16, #tpu.memory_space<vmem>>, vector<40x16xbf16>
    %c0_1 = arith.constant 0 : index
    %c0_2 = arith.constant 0 : index
    %1 = vector.load %arg2[%c0_1, %c0_2] : memref<16x16xbf16, #tpu.memory_space<vmem>>, vector<16x16xbf16>
    %cst = arith.constant dense<0.000000e+00> : vector<40x16xf32>
    %2 = tpu.matmul %0, %1, %cst {dimension_numbers = #tpu.dot_dimension_numbers<[1], [0], [0], [1], [0, 0, 1, 1], [], []>} : vector<40x16xbf16>, vector<16x16xbf16>, vector<40x16xf32> -> vector<40x16xf32>
    %c0_3 = arith.constant 0 : index
    %c0_4 = arith.constant 0 : index
    %3 = vector.load %arg3[%c0_3, %c0_4] : memref<1x16xf32, #tpu.memory_space<vmem>>, vector<1x16xf32>
    %4 = vector.broadcast %3 : vector<1x16xf32> to vector<40x16xf32>
    %5 = arith.addf %2, %4 : vector<40x16xf32>
    %c0_5 = arith.constant 0 : index
    %c0_6 = arith.constant 0 : index
    %6 = vector.load %arg4[%c0_5, %c0_6] : memref<40x16xf32, #tpu.memory_space<vmem>>, vector<40x16xf32>
    %7 = arith.addf %5, %6 : vector<40x16xf32>
    %cst_7 = arith.constant dense<0.000000e+00> : vector<40xf32>
    %8 = vector.multi_reduction <add>, %7, %cst_7 [1] : vector<40x16xf32> to vector<40xf32>
    %9 = vector.shape_cast %8 : vector<40xf32> to vector<40x1xf32>
    %cst_8 = arith.constant 1.600000e+01 : f32
    %10 = vector.broadcast %cst_8 : f32 to vector<40x1xf32>
    %11 = arith.divf %9, %10 : vector<40x1xf32>
    %12 = vector.broadcast %11 : vector<40x1xf32> to vector<40x16xf32>
    %13 = arith.subf %7, %12 : vector<40x16xf32>
    %14 = arith.mulf %13, %13 : vector<40x16xf32>
    %cst_9 = arith.constant dense<0.000000e+00> : vector<40xf32>
    %15 = vector.multi_reduction <add>, %14, %cst_9 [1] : vector<40x16xf32> to vector<40xf32>
    %16 = vector.shape_cast %15 : vector<40xf32> to vector<40x1xf32>
    %cst_10 = arith.constant 1.600000e+01 : f32
    %17 = vector.broadcast %cst_10 : f32 to vector<40x1xf32>
    %18 = arith.divf %16, %17 : vector<40x1xf32>
    %cst_11 = arith.constant 9.99999974E-6 : f32
    %19 = vector.broadcast %cst_11 : f32 to vector<40x1xf32>
    %20 = arith.addf %18, %19 : vector<40x1xf32>
    %21 = math.rsqrt %20 : vector<40x1xf32>
    %22 = vector.broadcast %21 : vector<40x1xf32> to vector<40x16xf32>
    %23 = arith.mulf %13, %22 : vector<40x16xf32>
    %c0_12 = arith.constant 0 : index
    %c0_13 = arith.constant 0 : index
    %24 = vector.load %arg5[%c0_12, %c0_13] : memref<1x16xf32, #tpu.memory_space<vmem>>, vector<1x16xf32>
    %25 = vector.broadcast %24 : vector<1x16xf32> to vector<40x16xf32>
    %26 = arith.mulf %23, %25 : vector<40x16xf32>
    %c0_14 = arith.constant 0 : index
    %c0_15 = arith.constant 0 : index
    %27 = vector.load %arg6[%c0_14, %c0_15] : memref<1x16xf32, #tpu.memory_space<vmem>>, vector<1x16xf32>
    %28 = vector.broadcast %27 : vector<1x16xf32> to vector<40x16xf32>
    %29 = arith.addf %26, %28 : vector<40x16xf32>
    %c0_16 = arith.constant 0 : index
    %c0_17 = arith.constant 0 : index
    %30 = vector.load %arg7[%c0_16, %c0_17] : memref<40x16xf32, #tpu.memory_space<vmem>>, vector<40x16xf32>
    tpu.vector_store %arg7[%c0_16, %c0_17], %29 {strides = array<i32>} : memref<40x16xf32, #tpu.memory_space<vmem>>, vector<40x16xf32>,
    return
  }
  func.func @transform_0(%arg0: i32) -> (i32, i32) {
    %c0_i32 = arith.constant 0 : i32
    %c0_i32_0 = arith.constant 0 : i32
    return %arg0, %c0_i32 : i32, i32
  }
  func.func @transform_1(%arg0: i32) -> (i32, i32) {
    %c0_i32 = arith.constant 0 : i32
    %c0_i32_0 = arith.constant 0 : i32
    %c0_i32_1 = arith.constant 0 : i32
    return %c0_i32, %c0_i32_0 : i32, i32
  }
  func.func @transform_2(%arg0: i32) -> (i32, i32) {
    %c0_i32 = arith.constant 0 : i32
    %c0_i32_0 = arith.constant 0 : i32
    %c0_i32_1 = arith.constant 0 : i32
    return %c0_i32, %c0_i32_0 : i32, i32
  }
  func.func @transform_3(%arg0: i32) -> (i32, i32) {
    %c0_i32 = arith.constant 0 : i32
    %c0_i32_0 = arith.constant 0 : i32
    return %arg0, %c0_i32 : i32, i32
  }
  func.func @transform_4(%arg0: i32) -> (i32, i32) {
    %c0_i32 = arith.constant 0 : i32
    %c0_i32_0 = arith.constant 0 : i32
    %c0_i32_1 = arith.constant 0 : i32
    return %c0_i32, %c0_i32_0 : i32, i32
  }
  func.func @transform_5(%arg0: i32) -> (i32, i32) {
    %c0_i32 = arith.constant 0 : i32
    %c0_i32_0 = arith.constant 0 : i32
    %c0_i32_1 = arith.constant 0 : i32
    return %c0_i32, %c0_i32_0 : i32, i32
  }
  func.func @transform_6(%arg0: i32) -> (i32, i32) {
    %c0_i32 = arith.constant 0 : i32
    %c0_i32_0 = arith.constant 0 : i32
    return %arg0, %c0_i32 : i32, i32
  }
}

</mosaic_0001>

<bundles_post_ra>
// kernel: _lambda_.12
= control target key start
LH: loop header
LB: loop body
LE: loop exit
PB: predicated region body
PF: predicated region fallthrough
CT: control target
= control target key end

     0   :  { %vm55_vm0 = vcmask 130048   ;;  %s204_s1 = inlined_call_operand.vmem [shape: bf16[16,128], index: 1, kind: input, shape index: {}]   ;;  %s205_s0 = inlined_call_operand.vmem [shape: bf16[64,16], index: 0, kind: input, shape index: {}]   ;;  %s206_s2 = inlined_call_operand.vmem [shape: f32[1,128], index: 2, kind: input, shape index: {}]   ;;  %s207_s3 = inlined_call_operand.vmem [shape: f32[64,128], index: 3, kind: output, shape index: {}]  }
   0x1   :  { %v137_v0 = vld [vmem:[%s204_s1] sm:$0xff]  ;;  %v134_v2 = vld [vmem:[%s205_s0 + $0x8] sm:$0xff]  ;;  %v135_v3 = vld [vmem:[%s205_s0 + $0x10] sm:$0xff] }
   0x2   :  { %v133_v1 = vld [vmem:[%s205_s0] sm:$0xff]  ;;  %75 = vmatpush.bf16.msra.mxu0 %v137_v0  ;;  %138 = vmatpush.bf16.msra.mxu1 %v137_v0  ;;  %v136_v4 = vld [vmem:[%s205_s0 + $0x18] sm:$0xff] }
   0x3   :  { %139 = vmatpush.bf16.msra.mxu2 %v137_v0  ;;  %140 = vmatpush.bf16.msra.mxu3 %v137_v0  ;;  %v141_v5 = vld [vmem:[%s206_s2] ss:$0 sm:$0xff] }
   0x5   :  { %129 = vmatmul.msk.bf16.vlgmr.msra.gmra.mxu0 %vm55_vm0, %v133_v1  ;;  %130 = vmatmul.msk.bf16.vlgmr.msra.gmra.mxu1 %vm55_vm0, %v134_v2 }
   0x6   :  { %131 = vmatmul.msk.bf16.vlgmr.msra.gmra.mxu2 %vm55_vm0, %v135_v3  ;;  %132 = vmatmul.msk.bf16.vlgmr.msra.gmra.mxu3 %vm55_vm0, %v136_v4 }
  0x82   :  { %v77_v6 = vpop.f32.mrf.mxu0  ;;  %v82_v7 = vpop.f32.mrf.mxu1 }
  0x83   :  { %v78_v8 = vadd.f32 %v141_v5, %v77_v6  ;;  %v83_v9 = vadd.f32 %v141_v5, %v82_v7 }
  0x85   :  { %97 = vst [vmem:[%s207_s3] sm:$0xff] %v78_v8 }
  0x86   :  { %99 = vst [vmem:[%s207_s3 + $0x10] sm:$0xff] %v83_v9 }
  0x89   :  { %v87_v10 = vpop.f32.mrf.mxu2  ;;  %v92_v11 = vpop.f32.mrf.mxu3 }
  0x8a   :  { %v88_v12 = vadd.f32 %v141_v5, %v87_v10  ;;  %v93_v13 = vadd.f32 %v141_v5, %v92_v11  ;;  %v79_v14 = vpop.f32.mrf.mxu0  ;;  %v84_v15 = vpop.f32.mrf.mxu1 }
  0x8b   :  { %v80_v16 = vadd.f32 %v141_v5, %v79_v14  ;;  %v85_v17 = vadd.f32 %v141_v5, %v84_v15 }
  0x8c   :  { %101 = vst [vmem:[%s207_s3 + $0x20] sm:$0xff] %v88_v12 }
  0x8d   :  { %103 = vst [vmem:[%s207_s3 + $0x30] sm:$0xff] %v93_v13 }
  0x8e   :  { %98 = vst [vmem:[%s207_s3 + $0x8] sm:$0xff] %v80_v16 }
  0x8f   :  { %100 = vst [vmem:[%s207_s3 + $0x18] sm:$0xff] %v85_v17 }
  0x91   :  { %v89_v18 = vpop.f32.mrf.mxu2  ;;  %v94_v19 = vpop.f32.mrf.mxu3 }
  0x92   :  { %v90_v20 = vadd.f32 %v141_v5, %v89_v18  ;;  %v95_v21 = vadd.f32 %v141_v5, %v94_v19 }
  0x94   :  { %102 = vst [vmem:[%s207_s3 + $0x28] sm:$0xff] %v90_v20 }
  0x95   :  { %104 = vst [vmem:[%s207_s3 + $0x38] sm:$0xff] %v95_v21 }

// kernel: _lambda_.14
= control target key start
LH: loop header
LB: loop body
LE: loop exit
PB: predicated region body
PF: predicated region fallthrough
CT: control target
= control target key end

     0   :  { %vm63_vm0 = vcmask 261120   ;;  %s223_s1 = inlined_call_operand.vmem [shape: bf16[32,128], index: 1, kind: input, shape index: {}]   ;;  %s224_s2 = inlined_call_operand.vmem [shape: f32[1,128], index: 2, kind: input, shape index: {}]   ;;  %s225_s0 = inlined_call_operand.vmem [shape: bf16[64,32], index: 0, kind: input, shape index: {}]   ;;  %s226_s3 = inlined_call_operand.vmem [shape: f32[64,128], index: 3, kind: output, shape index: {}]  }
   0x1   :  { %v150_v0 = vld [vmem:[%s223_s1 + $0x8] sm:$0xff]  ;;  %v149_v1 = vld [vmem:[%s223_s1] sm:$0xff]  ;;  %v147_v4 = vld [vmem:[%s225_s0 + $0x10] sm:$0xff] }
   0x2   :  { %82 = vmatpush.bf16.msra.mxu0 %v150_v0  ;;  %151 = vmatpush.bf16.msra.mxu1 %v150_v0  ;;  %v145_v2 = vld [vmem:[%s225_s0] sm:$0xff]  ;;  %v146_v3 = vld [vmem:[%s225_s0 + $0x8] sm:$0xff]  ;;  %v148_v5 = vld [vmem:[%s225_s0 + $0x18] sm:$0xff] }
   0x3   :  { %152 = vmatpush.bf16.msra.mxu2 %v150_v0  ;;  %153 = vmatpush.bf16.msra.mxu3 %v150_v0  ;;  %v157_v6 = vld [vmem:[%s224_s2] ss:$0 sm:$0xff] }
   0x6   :  { %83 = vmatpush.bf16.msra.mxu0 %v149_v1  ;;  %154 = vmatpush.bf16.msra.mxu1 %v149_v1 }
   0x7   :  { %155 = vmatpush.bf16.msra.mxu2 %v149_v1  ;;  %156 = vmatpush.bf16.msra.mxu3 %v149_v1 }
   0x9   :  { %141 = vmatmul.msk.bf16.vlgmr.msra.gmra.mxu0 %vm63_vm0, %v145_v2  ;;  %142 = vmatmul.msk.bf16.vlgmr.msra.gmra.mxu1 %vm63_vm0, %v146_v3 }
   0xa   :  { %143 = vmatmul.msk.bf16.vlgmr.msra.gmra.mxu2 %vm63_vm0, %v147_v4  ;;  %144 = vmatmul.msk.bf16.vlgmr.msra.gmra.mxu3 %vm63_vm0, %v148_v5 }
  0x86   :  { %v85_v7 = vpop.f32.mrf.mxu0  ;;  %v90_v8 = vpop.f32.mrf.mxu1 }
  0x87   :  { %v86_v9 = vadd.f32 %v157_v6, %v85_v7  ;;  %v91_v10 = vadd.f32 %v157_v6, %v90_v8 }
  0x89   :  { %105 = vst [vmem:[%s226_s3] sm:$0xff] %v86_v9 }
  0x8a   :  { %107 = vst [vmem:[%s226_s3 + $0x10] sm:$0xff] %v91_v10 }
  0x8d   :  { %v95_v11 = vpop.f32.mrf.mxu2  ;;  %v100_v12 = vpop.f32.mrf.mxu3 }
  0x8e   :  { %v96_v13 = vadd.f32 %v157_v6, %v95_v11  ;;  %v101_v14 = vadd.f32 %v157_v6, %v100_v12  ;;  %v87_v15 = vpop.f32.mrf.mxu0  ;;  %v92_v16 = vpop.f32.mrf.mxu1 }
  0x8f   :  { %v88_v17 = vadd.f32 %v157_v6, %v87_v15  ;;  %v93_v18 = vadd.f32 %v157_v6, %v92_v16 }
  0x90   :  { %109 = vst [vmem:[%s226_s3 + $0x20] sm:$0xff] %v96_v13 }
  0x91   :  { %111 = vst [vmem:[%s226_s3 + $0x30] sm:$0xff] %v101_v14 }
  0x92   :  { %106 = vst [vmem:[%s226_s3 + $0x8] sm:$0xff] %v88_v17 }
  0x93   :  { %108 = vst [vmem:[%s226_s3 + $0x18] sm:$0xff] %v93_v18 }
  0x95   :  { %v97_v19 = vpop.f32.mrf.mxu2  ;;  %v102_v20 = vpop.f32.mrf.mxu3 }
  0x96   :  { %v98_v21 = vadd.f32 %v157_v6, %v97_v19  ;;  %v103_v22 = vadd.f32 %v157_v6, %v102_v20 }
  0x98   :  { %110 = vst [vmem:[%s226_s3 + $0x28] sm:$0xff] %v98_v21 }
  0x99   :  { %112 = vst [vmem:[%s226_s3 + $0x38] sm:$0xff] %v103_v22 }

// kernel: _lambda_.15
= control target key start
LH: loop header
LB: loop body
LE: loop exit
PB: predicated region body
PF: predicated region fallthrough
CT: control target
= control target key end

     0   :  { %vm45_vm0 = vcmask 130048   ;;  %s158_s1 = inlined_call_operand.vmem [shape: bf16[16,128], index: 1, kind: input, shape index: {}]   ;;  %s159_s0 = inlined_call_operand.vmem [shape: bf16[40,16], index: 0, kind: input, shape index: {}]   ;;  %s160_s2 = inlined_call_operand.vmem [shape: f32[1,128], index: 2, kind: input, shape index: {}]   ;;  %s161_s3 = inlined_call_operand.vmem [shape: f32[40,128], index: 3, kind: output, shape index: {}]  }
   0x1   :  { %v104_v0 = vld [vmem:[%s158_s1] sm:$0xff]  ;;  %v103_v2 = vld [vmem:[%s159_s0 + $0x8] sm:$0xff]  ;;  %v19_v3 = vld [vmem:[%s159_s0 + $0x10] sm:$0xf] }
   0x2   :  { %v102_v1 = vld [vmem:[%s159_s0] sm:$0xff]  ;;  %62 = vmatpush.bf16.msra.mxu0 %v104_v0  ;;  %105 = vmatpush.bf16.msra.mxu1 %v104_v0  ;;  %v35_v4 = vunpack.c.l.b16 %v19_v3 }
   0x3   :  { %106 = vmatpush.bf16.msra.mxu2 %v104_v0  ;;  %v107_v6 = vld [vmem:[%s160_s2] ss:$0 sm:$0xff] }
   0x4   :  { %v38_v5 = vpack.c.b16 %v35_v4, %v35_v4 }
   0x5   :  { %99 = vmatmul.msk.bf16.vlgmr.msra.gmra.mxu0 %vm45_vm0, %v102_v1  ;;  %100 = vmatmul.msk.bf16.vlgmr.msra.gmra.mxu1 %vm45_vm0, %v103_v2 }
   0x6   :  { %101 = vmatmul.msk.bf16.vlgmr.msra.gmra.mxu2 %vm45_vm0, %v38_v5 }
  0x82   :  { %v64_v7 = vpop.f32.mrf.mxu0  ;;  %v69_v8 = vpop.f32.mrf.mxu1 }
  0x83   :  { %v65_v9 = vadd.f32 %v107_v6, %v64_v7  ;;  %v70_v10 = vadd.f32 %v107_v6, %v69_v8 }
  0x85   :  { %78 = vst [vmem:[%s161_s3] sm:$0xff] %v65_v9 }
  0x86   :  { %80 = vst [vmem:[%s161_s3 + $0x10] sm:$0xff] %v70_v10 }
  0x89   :  { %v74_v11 = vpop.f32.mrf.mxu2 }
  0x8a   :  { %v75_v12 = vadd.f32 %v107_v6, %v74_v11  ;;  %v66_v13 = vpop.f32.mrf.mxu0  ;;  %v71_v14 = vpop.f32.mrf.mxu1 }
  0x8b   :  { %v67_v15 = vadd.f32 %v107_v6, %v66_v13  ;;  %v72_v16 = vadd.f32 %v107_v6, %v71_v14 }
  0x8c   :  { %82 = vst [vmem:[%s161_s3 + $0x20] sm:$0xff] %v75_v12 }
  0x8d   :  { %79 = vst [vmem:[%s161_s3 + $0x8] sm:$0xff] %v67_v15 }
  0x8e   :  { %81 = vst [vmem:[%s161_s3 + $0x18] sm:$0xff] %v72_v16 }
  0x91   :  { %v76_v17 = vpop.f32.mrf.mxu2 }

// kernel: _lambda_.13
= control target key start
LH: loop header
LB: loop body
LE: loop exit
PB: predicated region body
PF: predicated region fallthrough
CT: control target
= control target key end

     0   :  { %v1367_v0 = vmov 1   ;;  %v1368_v1 = vmov 0   ;;  %vm138_vm2 = vcmask 48128   ;;  %s2347_s0 = inlined_call_operand.vmem [shape: f32[64,2], index: 0, kind: input, shape index: {}]   ;;  %s2348_s1 = inlined_call_operand.vmem [shape: f32[2,64,6], index: 1, kind: input, shape index: {}]   ;;  %s2349_s2 = inlined_call_operand.vmem [shape: f32[64,6], index: 2, kind: input, shape index: {}]   ;;  %s2350_s3 = inlined_call_operand.vmem [shape: f32[2,6,64,32], index: 3, kind: input, shape index: {}]   ;;  %s2351_s4 = inlined_call_operand.vmem [shape: f32[1,32], index: 4, kind: input, shape index: {}, may-alias: {4,6}]   ;;  %s2352_s5 = inlined_call_operand.vmem [shape: f32[1,32], index: 5, kind: input, shape index: {}]   ;;  %s2353_s6 = inlined_call_operand.vmem [shape: f32[1,32], index: 6, kind: input, shape index: {}, may-alias: {4,6}]   ;;  %s2354_s7 = inlined_call_operand.vmem [shape: f32[64,32], index: 7, kind: output, shape index: {}]  }
   0x1   :  { %1265 = vset.pattern.permute.xlu0 %v1367_v0  ;;  %1262 = vset.pattern.permute.xlu1 %v1368_v1  ;;  %v36_v2 = vld [vmem:[%s2347_s0 + $0x10] sm:$0xff]  ;;  %v35_v3 = vld [vmem:[%s2347_s0 + $0x8] sm:$0xff]  ;;  %v38_v4 = vld [vmem:[%s2347_s0 + $0x20] sm:$0xff] }
   0x2   :  { %62 = vperm.xlu1 %1262, %v36_v2   ;;  %590 = vperm.xlu0 %1265, %v35_v3   ;;  %v40_v5 = vld [vmem:[%s2347_s0 + $0x30] sm:$0xff]  ;;  %v37_v6 = vld [vmem:[%s2347_s0 + $0x18] sm:$0xff]  ;;  %v39_v7 = vld [vmem:[%s2347_s0 + $0x28] sm:$0xff] }
   0x3   :  { %1263 = vset.pattern.permute.xlu2 %v1368_v1  ;;  %v41_v8 = vld [vmem:[%s2347_s0 + $0x38] sm:$0xff]  ;;  %v34_v9 = vld [vmem:[%s2347_s0] sm:$0xff]  ;;  %v44_v10 = vld [vmem:[%s2348_s1 + $0x10] sm:$0xff] }
   0x4   :  { %72 = vperm.xlu2 %1263, %v38_v4   ;;  %v1451_v13 = vld [vmem:[%s2349_s2 + $0x10] sm:$0xff]  ;;  %v45_v22 = vld [vmem:[%s2348_s1 + $0x18] sm:$0xff]  ;;  %v42_v23 = vld [vmem:[%s2348_s1] sm:$0xff] }
   0x5   :  { %vm124_vm1 = vcmp.gt.f32.partialorder %v1451_v13, 0.5  ;;  %v1471_v27 = vld [vmem:[%s2349_s2] sm:$0xff]  ;;  %v47_v35 = vld [vmem:[%s2348_s1 + $0x28] sm:$0xff]  ;;  %v1490_v38 = vld [vmem:[%s2349_s2 + $0x18] sm:$0xff] }
   0x6   :  { %v46_v30 = vld [vmem:[%s2348_s1 + $0x20] sm:$0xff]  ;;  %vm122_vm4 = vcmp.gt.f32.partialorder %v1471_v27, 0.5  ;;  %v43_v37 = vld [vmem:[%s2348_s1 + $0x8] sm:$0xff]  ;;  %vm125_vm6 = vcmp.gt.f32.partialorder %v1490_v38, 0.5  ;;  %v49_v55 = vld [vmem:[%s2348_s1 + $0x38] sm:$0xff] }
   0x7   :  { %v1498_v47 = vld [vmem:[%s2349_s2 + $0x8] sm:$0xff]  ;;  %v1510_v51 = vld [vmem:[%s2349_s2 + $0x20] sm:$0xff]  ;;  %v48_v57 = vld [vmem:[%s2348_s1 + $0x30] sm:$0xff] }
   0x8   :  { %v1201_v49 = vld [vmem:[%s2348_s1 + $0x48] sm:$0xff]  ;;  %vm123_vm9 = vcmp.gt.f32.partialorder %v1498_v47, 0.5  ;;  %v1200_v54 = vld [vmem:[%s2348_s1 + $0x40] sm:$0xff]  ;;  %vm126_vm11 = vcmp.gt.f32.partialorder %v1510_v51, 0.5 }
   0x9   :  { %v1529_v59 = vld [vmem:[%s2349_s2 + $0x28] sm:$0xff] }
   0xa   :  { %610 = vperm.xlu0 %1265, %v40_v5   ;;  %67 = vperm.xlu1 %1262, %v37_v6   ;;  %vm127_vm12 = vcmp.gt.f32.partialorder %v1529_v59, 0.5 }
   0xc   :  { %77 = vperm.xlu2 %1263, %v39_v7  }
  0x12   :  { %1267 = vset.pattern.permute.xlu0 %v1368_v1  ;;  %87 = vperm.xlu1 %1262, %v41_v8  }
  0x13   :  { %52 = vperm.xlu0 %1267, %v34_v9  }
  0x14   :  { %1266 = vset.pattern.permute.xlu2 %v1367_v0 }
  0x15   :  { %594 = vperm.xlu2 %1266, %v36_v2  }
  0x1a   :  { %1264 = vset.pattern.permute.xlu1 %v1367_v0 }
  0x1b   :  { %57 = vperm.xlu0 %1267, %v35_v3   ;;  %586 = vperm.xlu1 %1264, %v34_v9  }
  0x1d   :  { %602 = vperm.xlu2 %1266, %v38_v4  }
  0x23   :  { %82 = vperm.xlu0 %1267, %v40_v5   ;;  %598 = vperm.xlu1 %1264, %v37_v6  }
  0x25   :  { %614 = vperm.xlu2 %1266, %v41_v8  }
  0x2b   :  { %606 = vperm.xlu1 %1264, %v39_v7   ;;  %v1544_v7 = vld [vmem:[%s2349_s2 + $0x30] sm:$0xff] }
  0x2c   :  { %vm128_vm15 = vcmp.gt.f32.partialorder %v1544_v7, 0.5 }
  0x2d   :  { %1268 = vset.pattern.permute.xlu2 %v1368_v1 }
  0x33   :  { %1269 = vset.pattern.permute.xlu1 %v1368_v1 }
  0x5e   :  { %v73_v18 = vpop.permute.xlu2 %72 }
  0x5f   :  { %v94_v34 = vadd.f32 %v73_v18, %v46_v30 }
  0x61   :  { %v110_v46 = vmul.f32 0.2, %v94_v34  ;;  %vm102_vm8 = vcmp.ge.f32.partialorder %v94_v34, 0.0 }
  0x63   :  { %v118_v58 = vsel %vm102_vm8, %v94_v34, %v110_v46 }
  0x64   :  { %v1539_v6 = vsel %vm126_vm11, %v118_v58, -1e+30 }
  0x66   :  { %v78_v24 = vpop.permute.xlu2 %77 }
  0x67   :  { %v95_v43 = vadd.f32 %v78_v24, %v47_v35 }
  0x69   :  { %v111_v52 = vmul.f32 0.2, %v95_v43  ;;  %vm103_vm10 = vcmp.ge.f32.partialorder %v95_v43, 0.0 }
  0x6b   :  { %v119_v5 = vsel %vm103_vm10, %v95_v43, %v111_v52 }
  0x6f   :  { %v595_v40 = vpop.permute.xlu2 %594 }
  0x74   :  { %v63_v11 = vpop.permute.xlu1 %62  ;;  %v591_v12 = vpop.permute.xlu0 %590 }
  0x75   :  { %v92_v14 = vadd.f32 %v63_v11, %v44_v10  ;;  %v618_v60 = vadd.f32 %v1201_v49, %v591_v12  ;;  %v1202_v12 = vld [vmem:[%s2348_s1 + $0x50] sm:$0xff] }
  0x77   :  { %v108_v15 = vmul.f32 0.2, %v92_v14  ;;  %vm100_vm0 = vcmp.ge.f32.partialorder %v92_v14, 0.0  ;;  %v603_v8 = vpop.permute.xlu2 %602  ;;  %v634_v10 = vmul.f32 0.2, %v618_v60  ;;  %vm626_vm14 = vcmp.ge.f32.partialorder %v618_v60, 0.0 }
  0x79   :  { %v116_v16 = vsel %vm100_vm0, %v92_v14, %v108_v15  ;;  %v1551_v14 = vsel %vm127_vm12, %v119_v5, -1e+30  ;;  %v642_v30 = vsel %vm626_vm14, %v618_v60, %v634_v10 }
  0x7a   :  { %v1456_v17 = vsel %vm124_vm1, %v116_v16, -1e+30  ;;  %v1204_v16 = vld [vmem:[%s2348_s1 + $0x60] sm:$0xff]  ;;  %v1575_v35 = vsel %vm123_vm9, %v642_v30, -1e+30 }
  0x7b   :  { %v145_v19 = vsel %vm138_vm2, %v1456_v17, -inf  ;;  %v660_v27 = vsel %vm138_vm2, %v1575_v35, -inf }
  0x7c   :  { %v1460_v20 = vpop.permute.xlu0 %610  ;;  %146 = vmax.xlane.f32.xlu1 %v145_v19  ;;  %v68_v21 = vpop.permute.xlu1 %67 }
  0x7d   :  { %v93_v28 = vadd.f32 %v68_v21, %v45_v22  ;;  %v1203_v21 = vld [vmem:[%s2348_s1 + $0x58] sm:$0xff]  ;;  %v619_v22 = vadd.f32 %v1202_v12, %v595_v40 }
  0x7e   :  { %v1207_v40 = vld [vmem:[%s2348_s1 + $0x78] sm:$0xff] }
  0x7f   :  { %v109_v32 = vmul.f32 0.2, %v93_v28  ;;  %vm101_vm5 = vcmp.ge.f32.partialorder %v93_v28, 0.0  ;;  %v635_v34 = vmul.f32 0.2, %v619_v22  ;;  %v615_v43 = vpop.permute.xlu2 %614 }
  0x80   :  { %v624_v52 = vadd.f32 %v1207_v40, %v615_v43 }
  0x81   :  { %v117_v45 = vsel %vm101_vm5, %v93_v28, %v109_v32 }
  0x82   :  { %v1505_v50 = vsel %vm125_vm6, %v117_v45, -1e+30 }
  0x83   :  { %v148_v61 = vsel %vm138_vm2, %v1505_v50, -inf }
  0x84   :  { %v88_v26 = vpop.permute.xlu1 %87 }
  0x85   :  { %v53_v25 = vpop.permute.xlu0 %52  ;;  %v97_v3 = vadd.f32 %v88_v26, %v49_v55  ;;  %v154_v26 = vsel %vm138_vm2, %v1551_v14, -inf }
  0x86   :  { %v90_v29 = vadd.f32 %v53_v25, %v42_v23  ;;  %v151_v23 = vsel %vm138_vm2, %v1539_v6, -inf  ;;  %v33_v25 = vld [vmem:[%s2349_s2 + $0x38] sm:$0xff] }
  0x87   :  { %v113_v18 = vmul.f32 0.2, %v97_v3  ;;  %vm129_vm5 = vcmp.gt.f32.partialorder %v33_v25, 0.5 }
  0x88   :  { %v106_v31 = vmul.f32 0.2, %v90_v29  ;;  %vm98_vm3 = vcmp.ge.f32.partialorder %v90_v29, 0.0 }
  0x8a   :  { %v114_v33 = vsel %vm98_vm3, %v90_v29, %v106_v31  ;;  %vm105_vm3 = vcmp.ge.f32.partialorder %v97_v3, 0.0  ;;  %v621_v29 = vadd.f32 %v1204_v16, %v603_v8 }
  0x8b   :  { %v1482_v36 = vsel %vm122_vm4, %v114_v33, -1e+30  ;;  %v121_v33 = vsel %vm105_vm3, %v97_v3, %v113_v18 }
  0x8c   :  { %v139_v39 = vsel %vm138_vm2, %v1482_v36, -inf  ;;  %vm629_vm8 = vcmp.ge.f32.partialorder %v621_v29, 0.0 }
  0x8d   :  { %140 = vmax.xlane.f32.xlu2 %v139_v39  ;;  %v58_v41 = vpop.permute.xlu0 %57  ;;  %v587_v42 = vpop.permute.xlu1 %586 }
  0x8e   :  { %v91_v44 = vadd.f32 %v58_v41, %v43_v37  ;;  %v617_v2 = vadd.f32 %v1200_v54, %v587_v42  ;;  %v637_v37 = vmul.f32 0.2, %v621_v29  ;;  %v1585_v41 = vsel %vm129_vm5, %v121_v33, -1e+30 }
  0x8f   :  { %v160_v49 = vsel %vm138_vm2, %v1585_v41, -inf }
  0x90   :  { %v107_v48 = vmul.f32 0.2, %v91_v44  ;;  %vm99_vm7 = vcmp.ge.f32.partialorder %v91_v44, 0.0  ;;  %v633_v15 = vmul.f32 0.2, %v617_v2  ;;  %vm625_vm0 = vcmp.ge.f32.partialorder %v617_v2, 0.0 }
  0x92   :  { %v115_v53 = vsel %vm99_vm7, %v91_v44, %v107_v48  ;;  %v641_v31 = vsel %vm625_vm0, %v617_v2, %v633_v15  ;;  %vm627_vm7 = vcmp.ge.f32.partialorder %v619_v22, 0.0  ;;  %v1205_v44 = vld [vmem:[%s2348_s1 + $0x68] sm:$0xff]  ;;  %v1206_v48 = vld [vmem:[%s2348_s1 + $0x70] sm:$0xff] }
  0x93   :  { %v1521_v56 = vsel %vm123_vm9, %v115_v53, -1e+30  ;;  %v1579_v39 = vsel %vm122_vm4, %v641_v31, -1e+30  ;;  %v643_v47 = vsel %vm627_vm7, %v619_v22, %v635_v34  ;;  %v645_v53 = vsel %vm629_vm8, %v621_v29, %v637_v37 }
  0x94   :  { %v142_v62 = vsel %vm138_vm2, %v1521_v56, -inf  ;;  %v657_v46 = vsel %vm138_vm2, %v1579_v39, -inf  ;;  %v1602_v58 = vsel %vm124_vm1, %v643_v47, -1e+30  ;;  %v1606_v60 = vsel %vm126_vm11, %v645_v53, -1e+30 }
  0x95   :  { %149 = vmax.xlane.f32.xlu2 %v148_v61  ;;  %143 = vmax.xlane.f32.xlu0 %v142_v62  ;;  %v83_v63 = vpop.permute.xlu0 %82  ;;  %v599_v9 = vpop.permute.xlu1 %598  ;;  %v640_v61 = vmul.f32 0.2, %v624_v52  ;;  %vm632_vm4 = vcmp.ge.f32.partialorder %v624_v52, 0.0  ;;  %v663_v2 = vsel %vm138_vm2, %v1602_v58, -inf  ;;  %v669_v13 = vsel %vm138_vm2, %v1606_v60, -inf }
  0x96   :  { %v96_v4 = vadd.f32 %v83_v63, %v48_v57  ;;  %v620_v32 = vadd.f32 %v1203_v21, %v599_v9  ;;  %v623_v57 = vadd.f32 %v1206_v48, %v1460_v20 }
  0x97   :  { %v648_v3 = vsel %vm632_vm4, %v624_v52, %v640_v61 }
  0x98   :  { %v112_v11 = vmul.f32 0.2, %v96_v4  ;;  %vm104_vm13 = vcmp.ge.f32.partialorder %v96_v4, 0.0  ;;  %v636_v42 = vmul.f32 0.2, %v620_v32  ;;  %vm628_vm9 = vcmp.ge.f32.partialorder %v620_v32, 0.0 }
  0x99   :  { %v639_v20 = vmul.f32 0.2, %v623_v57  ;;  %vm631_vm1 = vcmp.ge.f32.partialorder %v623_v57, 0.0  ;;  %v1619_v38 = vsel %vm129_vm5, %v648_v3, -1e+30 }
  0x9a   :  { %v120_v19 = vsel %vm104_vm13, %v96_v4, %v112_v11  ;;  %v644_v55 = vsel %vm628_vm9, %v620_v32, %v636_v42  ;;  %v678_v9 = vsel %vm138_vm2, %v1619_v38, -inf }
  0x9b   :  { %v1564_v24 = vsel %vm128_vm15, %v120_v19, -1e+30  ;;  %v1610_v62 = vsel %vm125_vm6, %v644_v55, -1e+30  ;;  %v647_v5 = vsel %vm631_vm1, %v623_v57, %v639_v20 }
  0x9c   :  { %v157_v28 = vsel %vm138_vm2, %v1564_v24, -inf  ;;  %v666_v51 = vsel %vm138_vm2, %v1610_v62, -inf  ;;  %v1629_v10 = vsel %vm128_vm15, %v647_v5, -1e+30 }
  0x9d   :  { %152 = vmax.xlane.f32.xlu2 %v151_v23  ;;  %155 = vmax.xlane.f32.xlu0 %v154_v26  ;;  %v607_v45 = vpop.permute.xlu1 %606  ;;  %v675_v12 = vsel %vm138_vm2, %v1629_v10, -inf }
  0x9e   :  { %158 = vmax.xlane.f32.xlu1 %v157_v28  ;;  %v622_v54 = vadd.f32 %v1205_v44, %v607_v45 }
  0xa0   :  { %v638_v63 = vmul.f32 0.2, %v622_v54  ;;  %vm630_vm10 = vcmp.ge.f32.partialorder %v622_v54, 0.0 }
  0xa2   :  { %v646_v4 = vsel %vm630_vm10, %v622_v54, %v638_v63 }
  0xa3   :  { %v1623_v8 = vsel %vm127_vm12, %v646_v4, -1e+30 }
  0xa4   :  { %v672_v11 = vsel %vm138_vm2, %v1623_v8, -inf }
  0xa5   :  { %161 = vmax.xlane.f32.xlu2 %v160_v49  ;;  %661 = vmax.xlane.f32.xlu0 %v660_v27 }
  0xa6   :  { %658 = vmax.xlane.f32.xlu1 %v657_v46 }
  0xad   :  { %664 = vmax.xlane.f32.xlu2 %v663_v2  ;;  %670 = vmax.xlane.f32.xlu0 %v669_v13 }
  0xae   :  { %667 = vmax.xlane.f32.xlu1 %v666_v51 }
  0xb5   :  { %679 = vmax.xlane.f32.xlu0 %v678_v9  ;;  %673 = vmax.xlane.f32.xlu2 %v672_v11 }
  0xb6   :  { %676 = vmax.xlane.f32.xlu1 %v675_v12 }
  0xef   :  { %v147_v15 = vpop.xlane.xlu1 %146 }
  0xf0   :  { %v165_v59 = vsub.f32 %v1456_v17, %v147_v15 }
  0xf2   :  { %v175_v16 = vmul.f32 1.442695, %v165_v59 }
  0xf4   :  { %1303 = vpow2.f32 %v175_v16 }
  0xfa   :  { %v1636_v18 = vpop.eup %1303 }
  0xfb   :  { %v193_v7 = vsel %vm138_vm2, %v1636_v18, 0.0 }
  0xfc   :  { %194 = vadd.xlane.f32.xlu2 %v193_v7 }
 0x100   :  { %v141_v19 = vpop.xlane.xlu2 %140 }
 0x101   :  { %v163_v21 = vsub.f32 %v1482_v36, %v141_v19 }
 0x103   :  { %v171_v22 = vmul.f32 1.442695, %v163_v21 }
 0x105   :  { %1305 = vpow2.f32 %v171_v22 }
 0x108   :  { %v150_v23 = vpop.xlane.xlu2 %149  ;;  %v144_v25 = vpop.xlane.xlu0 %143 }
 0x109   :  { %v166_v26 = vsub.f32 %v1505_v50, %v150_v23  ;;  %v164_v28 = vsub.f32 %v1521_v56, %v144_v25 }
 0x10b   :  { %v1643_v17 = vpop.eup %1305  ;;  %v177_v29 = vmul.f32 1.442695, %v166_v26  ;;  %v173_v30 = vmul.f32 1.442695, %v164_v28 }
 0x10c   :  { %v187_v31 = vsel %vm138_vm2, %v1643_v17, 0.0 }
 0x10d   :  { %1307 = vpow2.f32 %v177_v29  ;;  %188 = vadd.xlane.f32.xlu0 %v187_v31 }
 0x10e   :  { %1309 = vpow2.f32 %v173_v30 }
 0x110   :  { %v153_v32 = vpop.xlane.xlu2 %152  ;;  %v156_v36 = vpop.xlane.xlu0 %155 }
 0x111   :  { %v167_v33 = vsub.f32 %v1539_v6, %v153_v32  ;;  %v168_v34 = vsub.f32 %v1551_v14, %v156_v36  ;;  %v159_v37 = vpop.xlane.xlu1 %158 }
 0x112   :  { %v169_v50 = vsub.f32 %v1564_v24, %v159_v37 }
 0x113   :  { %v1650_v56 = vpop.eup %1307  ;;  %v179_v40 = vmul.f32 1.442695, %v167_v33  ;;  %v181_v42 = vmul.f32 1.442695, %v168_v34 }
 0x114   :  { %v1652_v43 = vpop.eup %1309  ;;  %v183_v44 = vmul.f32 1.442695, %v169_v50  ;;  %v196_v45 = vsel %vm138_vm2, %v1650_v56, 0.0 }
 0x115   :  { %1311 = vpow2.f32 %v179_v40  ;;  %197 = vadd.xlane.f32.xlu0 %v196_v45  ;;  %v190_v6 = vsel %vm138_vm2, %v1652_v43, 0.0 }
 0x116   :  { %1313 = vpow2.f32 %v181_v42  ;;  %191 = vadd.xlane.f32.xlu1 %v190_v6 }
 0x117   :  { %1315 = vpow2.f32 %v183_v44 }
 0x118   :  { %v162_v14 = vpop.xlane.xlu2 %161  ;;  %v662_v24 = vpop.xlane.xlu0 %661 }
 0x119   :  { %v170_v27 = vsub.f32 %v1585_v41, %v162_v14  ;;  %v659_v46 = vpop.xlane.xlu1 %658  ;;  %v682_v53 = vsub.f32 %v1575_v35, %v662_v24 }
 0x11a   :  { %v681_v47 = vsub.f32 %v1579_v39, %v659_v46 }
 0x11b   :  { %v1660_v48 = vpop.eup %1311  ;;  %v185_v49 = vmul.f32 1.442695, %v170_v27  ;;  %v691_v61 = vmul.f32 1.442695, %v682_v53 }
 0x11c   :  { %v1662_v52 = vpop.eup %1313  ;;  %v689_v54 = vmul.f32 1.442695, %v681_v47  ;;  %v199_v55 = vsel %vm138_vm2, %v1660_v48, 0.0 }
 0x11d   :  { %v1667_v57 = vpop.eup %1315  ;;  %1317 = vpow2.f32 %v185_v49  ;;  %v202_v41 = vsel %vm138_vm2, %v1662_v52, 0.0 }
 0x11e   :  { %200 = vadd.xlane.f32.xlu1 %v199_v55  ;;  %203 = vadd.xlane.f32.xlu2 %v202_v41  ;;  %v205_v39 = vsel %vm138_vm2, %v1667_v57, 0.0  ;;  %1319 = vpow2.f32 %v689_v54 }
 0x11f   :  { %206 = vadd.xlane.f32.xlu0 %v205_v39  ;;  %1321 = vpow2.f32 %v691_v61 }
 0x120   :  { %v665_v63 = vpop.xlane.xlu2 %664  ;;  %v671_v35 = vpop.xlane.xlu0 %670 }
 0x121   :  { %v683_v2 = vsub.f32 %v1602_v58, %v665_v63  ;;  %v668_v13 = vpop.xlane.xlu1 %667  ;;  %v685_v4 = vsub.f32 %v1606_v60, %v671_v35 }
 0x122   :  { %v684_v20 = vsub.f32 %v1610_v62, %v668_v13 }
 0x123   :  { %v1675_v51 = vpop.eup %1317  ;;  %v693_v3 = vmul.f32 1.442695, %v683_v2  ;;  %v697_v62 = vmul.f32 1.442695, %v685_v4 }
 0x124   :  { %v695_v5 = vmul.f32 1.442695, %v684_v20  ;;  %v208_v9 = vsel %vm138_vm2, %v1675_v51, 0.0  ;;  %v1680_v11 = vpop.eup %1319 }
 0x125   :  { %1323 = vpow2.f32 %v693_v3  ;;  %v705_v58 = vsel %vm138_vm2, %v1680_v11, 0.0  ;;  %v1685_v60 = vpop.eup %1321 }
 0x126   :  { %209 = vadd.xlane.f32.xlu1 %v208_v9  ;;  %1325 = vpow2.f32 %v695_v5  ;;  %706 = vadd.xlane.f32.xlu2 %v705_v58  ;;  %v1370_v5 = vmov 3  }
 0x127   :  { %1327 = vpow2.f32 %v697_v62 }
 0x128   :  { %v674_v12 = vpop.xlane.xlu2 %673  ;;  %v680_v15 = vpop.xlane.xlu0 %679 }
 0x129   :  { %v686_v59 = vsub.f32 %v1623_v8, %v674_v12  ;;  %v677_v16 = vpop.xlane.xlu1 %676  ;;  %v688_v22 = vsub.f32 %v1619_v38, %v680_v15  ;;  %v708_v8 = vsel %vm138_vm2, %v1685_v60, 0.0  ;;  %v1371_v12 = vmov 4  }
 0x12a   :  { %v687_v7 = vsub.f32 %v1629_v10, %v677_v16 }
 0x12b   :  { %v1688_v19 = vpop.eup %1323  ;;  %v699_v21 = vmul.f32 1.442695, %v686_v59  ;;  %v703_v28 = vmul.f32 1.442695, %v688_v22  ;;  %v229_v22 = vld [vmem:[%s2350_s3 + $0x10] sm:$0xff] }
 0x12c   :  { %v701_v23 = vmul.f32 1.442695, %v687_v7  ;;  %v711_v25 = vsel %vm138_vm2, %v1688_v19, 0.0  ;;  %v1693_v26 = vpop.eup %1325 }
 0x12d   :  { %712 = vadd.xlane.f32.xlu0 %v711_v25  ;;  %1329 = vpow2.f32 %v699_v21  ;;  %v714_v10 = vsel %vm138_vm2, %v1693_v26, 0.0  ;;  %v1699_v29 = vpop.eup %1327  ;;  %v1372_v25 = vmov 5  }
 0x12e   :  { %709 = vadd.xlane.f32.xlu1 %v708_v8  ;;  %1331 = vpow2.f32 %v701_v23  ;;  %715 = vadd.xlane.f32.xlu2 %v714_v10  ;;  %v717_v31 = vsel %vm138_vm2, %v1699_v29, 0.0  ;;  %v1162_v23 = vld [vmem:[%s2350_s3 + $0x50] sm:$0xff] }
 0x12f   :  { %1333 = vpow2.f32 %v703_v28 }
 0x133   :  { %v1701_v38 = vpop.eup %1329 }
 0x134   :  { %v1703_v30 = vpop.eup %1331  ;;  %v720_v32 = vsel %vm138_vm2, %v1701_v38, 0.0 }
 0x135   :  { %721 = vadd.xlane.f32.xlu0 %v720_v32  ;;  %v723_v36 = vsel %vm138_vm2, %v1703_v30, 0.0  ;;  %v1711_v33 = vpop.eup %1333 }
 0x136   :  { %718 = vadd.xlane.f32.xlu1 %v717_v31  ;;  %724 = vadd.xlane.f32.xlu2 %v723_v36  ;;  %v726_v34 = vsel %vm138_vm2, %v1711_v33, 0.0  ;;  %vm1147_vm2 = vcmask 261120  }
 0x13e   :  { %727 = vadd.xlane.f32.xlu1 %v726_v34  ;;  %v1164_v34 = vld [vmem:[%s2350_s3 + $0x60] sm:$0xff] }
 0x16f   :  { %v195_v37 = vpop.xlane.xlu2 %194 }
 0x170   :  { %1335 = vrcp.f32 %v195_v37 }
 0x176   :  { %v1336_v50 = vpop.eup %1335 }
 0x177   :  { %v1716_v40 = vmul.f32 %v1336_v50, %v1636_v18 }
 0x179   :  { %247 = vperm.xlu1 %1269, %v1716_v40  }
 0x180   :  { %v189_v42 = vpop.xlane.xlu0 %188 }
 0x181   :  { %1337 = vrcp.f32 %v189_v42 }
 0x187   :  { %v1338_v44 = vpop.eup %1337 }
 0x188   :  { %v1720_v45 = vmul.f32 %v1338_v44, %v1643_v17  ;;  %v198_v14 = vpop.xlane.xlu0 %197 }
 0x189   :  { %v192_v6 = vpop.xlane.xlu1 %191 }
 0x18a   :  { %1339 = vrcp.f32 %v192_v6  ;;  %237 = vperm.xlu2 %1268, %v1720_v45   ;;  %v1160_v6 = vld [vmem:[%s2350_s3 + $0x40] sm:$0xff] }
 0x18b   :  { %1341 = vrcp.f32 %v198_v14 }
 0x190   :  { %v1340_v24 = vpop.eup %1339 }
 0x191   :  { %v1724_v27 = vmul.f32 %v1340_v24, %v1652_v43  ;;  %v204_v18 = vpop.xlane.xlu2 %203  ;;  %v201_v46 = vpop.xlane.xlu1 %200  ;;  %v234_v24 = vld [vmem:[%s2350_s3 + $0x38] sm:$0xff] }
 0x192   :  { %1343 = vrcp.f32 %v204_v18  ;;  %v207_v47 = vpop.xlane.xlu0 %206  ;;  %v1342_v49 = vpop.eup %1341  ;;  %v1167_v18 = vld [vmem:[%s2350_s3 + $0x78] sm:$0xff] }
 0x193   :  { %242 = vperm.xlu0 %1267, %v1724_v27   ;;  %1345 = vrcp.f32 %v201_v46  ;;  %v1728_v53 = vmul.f32 %v1342_v49, %v1650_v56 }
 0x194   :  { %1347 = vrcp.f32 %v207_v47 }
 0x198   :  { %v1344_v17 = vpop.eup %1343 }
 0x199   :  { %v1731_v54 = vmul.f32 %v1344_v17, %v1662_v52  ;;  %v210_v55 = vpop.xlane.xlu1 %209  ;;  %v1346_v41 = vpop.eup %1345 }
 0x19a   :  { %1349 = vrcp.f32 %v210_v55  ;;  %v1734_v43 = vmul.f32 %v1346_v41, %v1660_v48  ;;  %v1348_v39 = vpop.eup %1347  ;;  %v707_v35 = vpop.xlane.xlu2 %706  ;;  %v228_v41 = vld [vmem:[%s2350_s3 + $0x8] sm:$0xff] }
 0x19b   :  { %262 = vperm.xlu1 %1269, %v1731_v54   ;;  %252 = vperm.xlu0 %1267, %v1728_v53   ;;  %v1740_v56 = vmul.f32 %v1348_v39, %v1667_v57  ;;  %v1369_v57 = vmov 2   ;;  %1351 = vrcp.f32 %v707_v35  ;;  %v1163_v35 = vld [vmem:[%s2350_s3 + $0x58] sm:$0xff] }
 0x19c   :  { %257 = vperm.xlu2 %1268, %v1734_v43  }
 0x1a0   :  { %v1350_v61 = vpop.eup %1349  ;;  %v713_v3 = vpop.xlane.xlu0 %712 }
 0x1a1   :  { %v1743_v52 = vmul.f32 %v1350_v61, %v1675_v51  ;;  %v1754_v48 = vpop.xlane.xlu1 %709  ;;  %v1352_v13 = vpop.eup %1351  ;;  %v230_v61 = vld [vmem:[%s2350_s3 + $0x18] sm:$0xff] }
 0x1a2   :  { %v1771_v20 = vmul.f32 %v1352_v13, %v1680_v11  ;;  %v1787_v58 = vpop.xlane.xlu2 %715 }
 0x1a3   :  { %1270 = vset.pattern.permute.xlu1 %v1367_v0  ;;  %267 = vperm.xlu0 %1267, %v1740_v56  }
 0x1a4   :  { %301 = vperm.xlu1 %1270, %v1720_v45   ;;  %272 = vperm.xlu2 %1268, %v1743_v52  }
 0x1a8   :  { %v1808_v16 = vpop.xlane.xlu0 %721 }
 0x1a9   :  { %v1763_v63 = vpop.xlane.xlu1 %718 }
 0x1aa   :  { %v1795_v62 = vpop.xlane.xlu2 %724 }
 0x1ab   :  { %1271 = vset.pattern.permute.xlu0 %v1367_v0 }
 0x1ac   :  { %313 = vperm.xlu1 %1270, %v1728_v53   ;;  %305 = vperm.xlu0 %1271, %v1724_v27  }
 0x1ad   :  { %1272 = vset.pattern.permute.xlu2 %v1367_v0 }
 0x1ae   :  { %309 = vperm.xlu2 %1272, %v1716_v40  }
 0x1b1   :  { %v728_v2 = vpop.xlane.xlu1 %727 }
 0x1b2   :  { %1353 = vrcp.f32 %v728_v2 }
 0x1b3   :  { %1355 = vrcp.f32 %v713_v3 }
 0x1b4   :  { %321 = vperm.xlu1 %1270, %v1731_v54   ;;  %325 = vperm.xlu0 %1271, %v1740_v56   ;;  %1357 = vrcp.f32 %v1763_v63 }
 0x1b5   :  { %1359 = vrcp.f32 %v1754_v48  ;;  %v232_v48 = vld [vmem:[%s2350_s3 + $0x28] sm:$0xff] }
 0x1b6   :  { %317 = vperm.xlu2 %1272, %v1734_v43   ;;  %1361 = vrcp.f32 %v1795_v62 }
 0x1b7   :  { %1363 = vrcp.f32 %v1787_v58  ;;  %v1168_v58 = vld [vmem:[%s2350_s3 + $0x80] sm:$0xff] }
 0x1b8   :  { %v1354_v51 = vpop.eup %1353  ;;  %1365 = vrcp.f32 %v1808_v16  ;;  %v1174_v16 = vld [vmem:[%s2350_s3 + $0xb0] sm:$0xff] }
 0x1b9   :  { %v1778_v4 = vmul.f32 %v1354_v51, %v1711_v33  ;;  %v1356_v9 = vpop.eup %1355  ;;  %v231_v33 = vld [vmem:[%s2350_s3 + $0x20] sm:$0xff] }
 0x1ba   :  { %v1785_v11 = vmul.f32 %v1356_v9, %v1688_v19 }
 0x1bc   :  { %1273 = vset.pattern.permute.xlu1 %v1369_v57  ;;  %1274 = vset.pattern.permute.xlu0 %v1369_v57 }
 0x1bd   :  { %358 = vperm.xlu1 %1273, %v1720_v45   ;;  %362 = vperm.xlu0 %1274, %v1724_v27  }
 0x1be   :  { %329 = vperm.xlu2 %1272, %v1743_v52  }
 0x1c5   :  { %370 = vperm.xlu1 %1273, %v1728_v53   ;;  %382 = vperm.xlu0 %1274, %v1740_v56  }
 0x1c6   :  { %1275 = vset.pattern.permute.xlu2 %v1369_v57 }
 0x1c7   :  { %366 = vperm.xlu2 %1275, %v1716_v40  }
 0x1cd   :  { %378 = vperm.xlu1 %1273, %v1731_v54   ;;  %1282 = vset.pattern.permute.xlu0 %v1368_v1 }
 0x1ce   :  { %756 = vperm.xlu0 %1282, %v1771_v20  }
 0x1cf   :  { %374 = vperm.xlu2 %1275, %v1734_v43  }
 0x1d5   :  { %1276 = vset.pattern.permute.xlu1 %v1370_v5 }
 0x1d6   :  { %415 = vperm.xlu1 %1276, %v1720_v45   ;;  %791 = vperm.xlu0 %1282, %v1778_v4  }
 0x1d7   :  { %386 = vperm.xlu2 %1275, %v1743_v52  }
 0x1de   :  { %427 = vperm.xlu1 %1276, %v1728_v53   ;;  %1287 = vset.pattern.permute.xlu0 %v1367_v0 }
 0x1df   :  { %1277 = vset.pattern.permute.xlu2 %v1370_v5  ;;  %828 = vperm.xlu0 %1287, %v1785_v11  }
 0x1e0   :  { %423 = vperm.xlu2 %1277, %v1716_v40  }
 0x1e4   :  { %v238_v15 = vpop.permute.xlu2 %237 }
 0x1e6   :  { %435 = vperm.xlu1 %1276, %v1731_v54  }
 0x1e7   :  { %848 = vperm.xlu0 %1287, %v1778_v4  }
 0x1e8   :  { %431 = vperm.xlu2 %1277, %v1734_v43  }
 0x1eb   :  { %v248_v19 = vpop.permute.xlu1 %247 }
 0x1ec   :  { %v277_v10 = vmul.f32 %v248_v19, %v229_v22  ;;  %v233_v22 = vld [vmem:[%s2350_s3 + $0x30] sm:$0xff] }
 0x1ee   :  { %1278 = vset.pattern.permute.xlu1 %v1371_v12 }
 0x1ef   :  { %472 = vperm.xlu1 %1278, %v1720_v45   ;;  %1290 = vset.pattern.permute.xlu0 %v1369_v57 }
 0x1f0   :  { %443 = vperm.xlu2 %1277, %v1743_v52   ;;  %885 = vperm.xlu0 %1290, %v1785_v11  }
 0x1f6   :  { %v258_v59 = vpop.permute.xlu2 %257 }
 0x1f7   :  { %484 = vperm.xlu1 %1278, %v1728_v53   ;;  %v279_v50 = vmul.f32 %v258_v59, %v231_v33 }
 0x1f8   :  { %1279 = vset.pattern.permute.xlu2 %v1371_v12  ;;  %905 = vperm.xlu0 %1290, %v1778_v4  }
 0x1f9   :  { %480 = vperm.xlu2 %1279, %v1716_v40  }
 0x1fe   :  { %v273_v7 = vpop.permute.xlu2 %272 }
 0x1ff   :  { %492 = vperm.xlu1 %1278, %v1731_v54   ;;  %v282_v17 = vmul.f32 %v273_v7, %v234_v24 }
 0x200   :  { %1291 = vset.pattern.permute.xlu0 %v1370_v5 }
 0x201   :  { %488 = vperm.xlu2 %1279, %v1734_v43   ;;  %419 = vperm.xlu0 %1291, %v1724_v27  }
 0x205   :  { %v243_v21 = vpop.permute.xlu0 %242 }
 0x206   :  { %v276_v13 = vmul.f32 %v243_v21, %v228_v41  ;;  %v1358_v21 = vpop.eup %1357 }
 0x207   :  { %1280 = vset.pattern.permute.xlu1 %v1372_v25 }
 0x208   :  { %v310_v8 = vpop.permute.xlu2 %309  ;;  %529 = vperm.xlu1 %1280, %v1720_v45   ;;  %v227_v45 = vld [vmem:[%s2350_s3] sm:$0xff] }
 0x209   :  { %v334_v28 = vmul.f32 %v1162_v23, %v310_v8  ;;  %500 = vperm.xlu2 %1279, %v1743_v52   ;;  %439 = vperm.xlu0 %1291, %v1740_v56   ;;  %v275_v46 = vmul.f32 %v238_v15, %v227_v45  ;;  %v1170_v15 = vld [vmem:[%s2350_s3 + $0x90] sm:$0xff] }
 0x20a   :  { %v1166_v8 = vld [vmem:[%s2350_s3 + $0x70] sm:$0xff] }
 0x20b   :  { %v342_v31 = vadd.f32 %v334_v28, %v277_v10  ;;  %v1360_v10 = vpop.eup %1359  ;;  %v1893_v28 = vmul.f32 %v1358_v21, %v1699_v29 }
 0x20c   :  { %v1900_v45 = vmul.f32 %v1360_v10, %v1685_v60  ;;  %v1169_v60 = vld [vmem:[%s2350_s3 + $0x88] sm:$0xff]  ;;  %v1176_v10 = vld [vmem:[%s2350_s3 + $0xc0] sm:$0xff] }
 0x20d   :  { %v253_v32 = vpop.permute.xlu0 %252  ;;  %v263_v36 = vpop.permute.xlu1 %262 }
 0x20e   :  { %v278_v51 = vmul.f32 %v253_v32, %v230_v61 }
 0x210   :  { %v318_v37 = vpop.permute.xlu2 %317  ;;  %541 = vperm.xlu1 %1280, %v1728_v53  }
 0x211   :  { %v336_v42 = vmul.f32 %v1164_v34, %v318_v37  ;;  %1281 = vset.pattern.permute.xlu2 %v1372_v25  ;;  %942 = vperm.xlu0 %1291, %v1785_v11   ;;  %v280_v34 = vmul.f32 %v263_v36, %v232_v48  ;;  %v1362_v36 = vpop.eup %1361 }
 0x212   :  { %537 = vperm.xlu2 %1281, %v1716_v40  }
 0x213   :  { %v1834_v44 = vadd.f32 %v336_v42, %v279_v50  ;;  %v1172_v42 = vld [vmem:[%s2350_s3 + $0xa0] sm:$0xff] }
 0x215   :  { %v268_v14 = vpop.permute.xlu0 %267 }
 0x216   :  { %v302_v40 = vpop.permute.xlu1 %301  ;;  %v281_v37 = vmul.f32 %v268_v14, %v233_v22 }
 0x217   :  { %v332_v47 = vmul.f32 %v1160_v6, %v302_v40  ;;  %v1914_v40 = vmul.f32 %v1362_v36, %v1703_v30 }
 0x218   :  { %v330_v49 = vpop.permute.xlu2 %329  ;;  %549 = vperm.xlu1 %1280, %v1731_v54   ;;  %v1161_v54 = vld [vmem:[%s2350_s3 + $0x48] sm:$0xff] }
 0x219   :  { %v339_v53 = vmul.f32 %v1167_v18, %v330_v49  ;;  %v1849_v55 = vadd.f32 %v332_v47, %v275_v46  ;;  %962 = vperm.xlu0 %1291, %v1778_v4   ;;  %v1364_v18 = vpop.eup %1363  ;;  %v1175_v46 = vld [vmem:[%s2350_s3 + $0xb8] sm:$0xff] }
 0x21a   :  { %545 = vperm.xlu2 %1281, %v1734_v43  }
 0x21b   :  { %v1856_v39 = vadd.f32 %v339_v53, %v282_v17  ;;  %v1921_v17 = vmul.f32 %v1364_v18, %v1693_v26  ;;  %v1171_v26 = vld [vmem:[%s2350_s3 + $0x98] sm:$0xff] }
 0x21e   :  { %v306_v43 = vpop.permute.xlu0 %305  ;;  %v314_v2 = vpop.permute.xlu1 %313 }
 0x21f   :  { %v333_v3 = vmul.f32 %v1161_v54, %v306_v43  ;;  %v335_v9 = vmul.f32 %v1163_v35, %v314_v2  ;;  %v1366_v35 = vpop.eup %1365 }
 0x220   :  { %1284 = vset.pattern.permute.xlu1 %v1368_v1 }
 0x221   :  { %v341_v59 = vadd.f32 %v333_v3, %v276_v13  ;;  %v1873_v7 = vadd.f32 %v335_v9, %v278_v51  ;;  %v367_v19 = vpop.permute.xlu2 %366  ;;  %766 = vperm.xlu1 %1284, %v1785_v11   ;;  %1294 = vset.pattern.permute.xlu0 %v1371_v12  ;;  %v1940_v3 = vmul.f32 %v1366_v35, %v1701_v38  ;;  %v1173_v38 = vld [vmem:[%s2350_s3 + $0xa8] sm:$0xff] }
 0x222   :  { %v391_v63 = vmul.f32 %v1170_v15, %v367_v19  ;;  %557 = vperm.xlu2 %1281, %v1743_v52   ;;  %476 = vperm.xlu0 %1294, %v1724_v27   ;;  %v1165_v52 = vld [vmem:[%s2350_s3 + $0x68] sm:$0xff] }
 0x224   :  { %v399_v23 = vadd.f32 %v391_v63, %v342_v31 }
 0x226   :  { %v326_v32 = vpop.permute.xlu0 %325  ;;  %v322_v33 = vpop.permute.xlu1 %321 }
 0x227   :  { %v338_v50 = vmul.f32 %v1166_v8, %v326_v32  ;;  %v337_v31 = vmul.f32 %v1165_v52, %v322_v33  ;;  %v1183_v32 = vld [vmem:[%s2350_s3 + $0xf8] sm:$0xff] }
 0x229   :  { %v346_v6 = vadd.f32 %v338_v50, %v281_v37  ;;  %v345_v62 = vadd.f32 %v337_v31, %v280_v34  ;;  %v375_v24 = vpop.permute.xlu2 %374  ;;  %776 = vperm.xlu1 %1284, %v1893_v28  }
 0x22a   :  { %v393_v29 = vmul.f32 %v1172_v42, %v375_v24  ;;  %1283 = vset.pattern.permute.xlu2 %v1368_v1  ;;  %496 = vperm.xlu0 %1294, %v1740_v56   ;;  %v1179_v42 = vld [vmem:[%s2350_s3 + $0xd8] sm:$0xff]  ;;  %v1186_v24 = vld [vmem:[%s2350_s3 + $0x110] sm:$0xff] }
 0x22b   :  { %761 = vperm.xlu2 %1283, %v1900_v45  }
 0x22c   :  { %v401_v14 = vadd.f32 %v393_v29, %v1834_v44 }
 0x22f   :  { %v363_v1 = vpop.permute.xlu0 %362  ;;  %v359_v47 = vpop.permute.xlu1 %358 }
 0x230   :  { %v390_v44 = vmul.f32 %v1169_v60, %v363_v1  ;;  %v389_v49 = vmul.f32 %v1168_v58, %v359_v47  ;;  %v1181_v58 = vld [vmem:[%s2350_s3 + $0xe8] sm:$0xff] }
 0x231   :  { %v387_v53 = vpop.permute.xlu2 %386  ;;  %786 = vperm.xlu1 %1284, %v1914_v40  }
 0x232   :  { %v1924_v41 = vadd.f32 %v390_v44, %v341_v59  ;;  %v396_v30 = vmul.f32 %v1175_v46, %v387_v53  ;;  %v397_v61 = vadd.f32 %v389_v49, %v1849_v55  ;;  %999 = vperm.xlu0 %1294, %v1785_v11   ;;  %v1178_v55 = vld [vmem:[%s2350_s3 + $0xd0] sm:$0xff]  ;;  %v1188_v46 = vld [vmem:[%s2350_s3 + $0x120] sm:$0xff] }
 0x233   :  { %771 = vperm.xlu2 %1283, %v1921_v17  }
 0x234   :  { %v404_v54 = vadd.f32 %v396_v30, %v1856_v39  ;;  %v1184_v30 = vld [vmem:[%s2350_s3 + $0x100] sm:$0xff] }
 0x237   :  { %v383_v43 = vpop.permute.xlu0 %382  ;;  %v371_v2 = vpop.permute.xlu1 %370 }
 0x238   :  { %v395_v13 = vmul.f32 %v1174_v16, %v383_v43  ;;  %v392_v51 = vmul.f32 %v1171_v26, %v371_v2  ;;  %v1187_v2 = vld [vmem:[%s2350_s3 + $0x118] sm:$0xff] }
 0x239   :  { %1286 = vset.pattern.permute.xlu1 %v1367_v0 }
 0x23a   :  { %v1943_v39 = vadd.f32 %v395_v13, %v346_v6  ;;  %v400_v9 = vadd.f32 %v392_v51, %v1873_v7  ;;  %v424_v15 = vpop.permute.xlu2 %423  ;;  %824 = vperm.xlu1 %1286, %v1900_v45   ;;  %1019 = vperm.xlu0 %1294, %v1778_v4   ;;  %v1180_v7 = vld [vmem:[%s2350_s3 + $0xe0] sm:$0xff] }
 0x23b   :  { %v448_v59 = vmul.f32 %v1178_v55, %v424_v15  ;;  %781 = vperm.xlu2 %1283, %v1940_v3   ;;  %v1194_v55 = vld [vmem:[%s2350_s3 + $0x150] sm:$0xff] }
 0x23d   :  { %v456_v19 = vadd.f32 %v448_v59, %v399_v23 }
 0x23f   :  { %v379_v63 = vpop.permute.xlu1 %378 }
 0x240   :  { %v394_v21 = vmul.f32 %v1173_v38, %v379_v63  ;;  %v1952_v48 = vpop.permute.xlu0 %756  ;;  %v1189_v63 = vld [vmem:[%s2350_s3 + $0x128] sm:$0xff] }
 0x242   :  { %v402_v22 = vadd.f32 %v394_v21, %v345_v62  ;;  %v432_v8 = vpop.permute.xlu2 %431  ;;  %836 = vperm.xlu1 %1286, %v1893_v28   ;;  %1297 = vset.pattern.permute.xlu0 %v1372_v25 }
 0x243   :  { %v450_v52 = vmul.f32 %v1180_v7, %v432_v8  ;;  %1285 = vset.pattern.permute.xlu2 %v1367_v0  ;;  %533 = vperm.xlu0 %1297, %v1724_v27   ;;  %v1177_v7 = vld [vmem:[%s2350_s3 + $0xc8] sm:$0xff]  ;;  %v1196_v8 = vld [vmem:[%s2350_s3 + $0x160] sm:$0xff] }
 0x244   :  { %820 = vperm.xlu2 %1285, %v1771_v20  }
 0x245   :  { %v458_v23 = vadd.f32 %v450_v52, %v401_v14 }
 0x248   :  { %v1968_v33 = vpop.permute.xlu0 %791  ;;  %v416_v34 = vpop.permute.xlu1 %415 }
 0x249   :  { %v446_v37 = vmul.f32 %v1176_v10, %v416_v34 }
 0x24a   :  { %v444_v50 = vpop.permute.xlu2 %443  ;;  %844 = vperm.xlu1 %1286, %v1914_v40  }
 0x24b   :  { %v453_v0 = vmul.f32 %v1183_v32, %v444_v50  ;;  %v454_v27 = vadd.f32 %v446_v37, %v397_v61  ;;  %553 = vperm.xlu0 %1297, %v1740_v56   ;;  %v1191_v61 = vld [vmem:[%s2350_s3 + $0x138] sm:$0xff] }
 0x24c   :  { %832 = vperm.xlu2 %1285, %v1921_v17  }
 0x24d   :  { %v461_v31 = vadd.f32 %v453_v0, %v404_v54  ;;  %v1192_v0 = vld [vmem:[%s2350_s3 + $0x140] sm:$0xff] }
 0x250   :  { %v428_v6 = vpop.permute.xlu1 %427 }
 0x251   :  { %v449_v62 = vmul.f32 %v1179_v42, %v428_v6  ;;  %v1979_v29 = vpop.permute.xlu0 %828 }
 0x252   :  { %1289 = vset.pattern.permute.xlu1 %v1369_v57 }
 0x253   :  { %v457_v36 = vadd.f32 %v449_v62, %v400_v9  ;;  %v481_v14 = vpop.permute.xlu2 %480  ;;  %881 = vperm.xlu1 %1289, %v1900_v45   ;;  %1056 = vperm.xlu0 %1297, %v1785_v11   ;;  %v1215_v62 = vld [vmem:[%s2350_s3 + $0x1b8] sm:$0xff] }
 0x254   :  { %v505_v56 = vmul.f32 %v1186_v24, %v481_v14  ;;  %840 = vperm.xlu2 %1285, %v1940_v3  }
 0x256   :  { %v513_v60 = vadd.f32 %v505_v56, %v456_v19 }
 0x258   :  { %v436_v18 = vpop.permute.xlu1 %435 }
 0x259   :  { %v451_v1 = vmul.f32 %v1181_v58, %v436_v18  ;;  %v1991_v47 = vpop.permute.xlu0 %848  ;;  %v1223_v58 = vld [vmem:[%s2350_s3 + $0x1f8] sm:$0xff] }
 0x25b   :  { %v459_v44 = vadd.f32 %v451_v1, %v402_v22  ;;  %v489_v49 = vpop.permute.xlu2 %488  ;;  %893 = vperm.xlu1 %1289, %v1893_v28   ;;  %1076 = vperm.xlu0 %1297, %v1778_v4   ;;  %v801_v1 = vmul.f32 %v1215_v62, %v1968_v33 }
 0x25c   :  { %v507_v11 = vmul.f32 %v1188_v46, %v489_v49  ;;  %1288 = vset.pattern.permute.xlu2 %v1369_v57  ;;  %v1231_v49 = vld [vmem:[%s2350_s3 + $0x238] sm:$0xff] }
 0x25d   :  { %877 = vperm.xlu2 %1288, %v1771_v20  }
 0x25e   :  { %v515_v53 = vadd.f32 %v507_v11, %v458_v23  ;;  %v858_v11 = vmul.f32 %v1223_v58, %v1991_v47  ;;  %v1197_v47 = vld [vmem:[%s2350_s3 + $0x168] sm:$0xff] }
 0x261   :  { %v473_v54 = vpop.permute.xlu1 %472 }
 0x262   :  { %v503_v16 = vmul.f32 %v1184_v30, %v473_v54  ;;  %v2003_v26 = vpop.permute.xlu0 %885 }
 0x263   :  { %v501_v35 = vpop.permute.xlu2 %500  ;;  %901 = vperm.xlu1 %1289, %v1914_v40  }
 0x264   :  { %v510_v4 = vmul.f32 %v1191_v61, %v501_v35  ;;  %v511_v57 = vadd.f32 %v503_v16, %v454_v27  ;;  %v1182_v27 = vld [vmem:[%s2350_s3 + $0xf0] sm:$0xff] }
 0x265   :  { %889 = vperm.xlu2 %1288, %v1921_v17  }
 0x266   :  { %v518_v43 = vadd.f32 %v510_v4, %v461_v31  ;;  %v1208_v31 = vld [vmem:[%s2350_s3 + $0x180] sm:$0xff] }
 0x267   :  { %v794_v14 = vmul.f32 %v1208_v31, %v1952_v48  ;;  %v1195_v48 = vld [vmem:[%s2350_s3 + $0x158] sm:$0xff] }
 0x269   :  { %v485_v13 = vpop.permute.xlu1 %484 }
 0x26a   :  { %v506_v51 = vmul.f32 %v1187_v2, %v485_v13  ;;  %v906_v9 = vpop.permute.xlu0 %905  ;;  %v1211_v2 = vld [vmem:[%s2350_s3 + $0x198] sm:$0xff] }
 0x26b   :  { %1293 = vset.pattern.permute.xlu1 %v1370_v5 }
 0x26c   :  { %v514_v15 = vadd.f32 %v506_v51, %v457_v36  ;;  %v538_v59 = vpop.permute.xlu2 %537  ;;  %938 = vperm.xlu1 %1293, %v1900_v45  }
 0x26d   :  { %v562_v19 = vmul.f32 %v1194_v55, %v538_v59  ;;  %897 = vperm.xlu2 %1288, %v1940_v3   ;;  %v1210_v59 = vld [vmem:[%s2350_s3 + $0x190] sm:$0xff] }
 0x26f   :  { %v2016_v38 = vadd.f32 %v562_v19, %v513_v60  ;;  %v1185_v19 = vld [vmem:[%s2350_s3 + $0x108] sm:$0xff] }
 0x271   :  { %v493_v21 = vpop.permute.xlu1 %492 }
 0x272   :  { %v508_v22 = vmul.f32 %v1189_v63, %v493_v21  ;;  %v1218_v63 = vld [vmem:[%s2350_s3 + $0x1d0] sm:$0xff]  ;;  %v1213_v21 = vld [vmem:[%s2350_s3 + $0x1a8] sm:$0xff] }
 0x273   :  { %v420_v52 = vpop.permute.xlu0 %419 }
 0x274   :  { %v516_v23 = vadd.f32 %v508_v22, %v459_v44  ;;  %v546_v10 = vpop.permute.xlu2 %545  ;;  %v447_v32 = vmul.f32 %v1177_v7, %v420_v52  ;;  %950 = vperm.xlu1 %1293, %v1893_v28  }
 0x275   :  { %v564_v34 = vmul.f32 %v1196_v8, %v546_v10  ;;  %1292 = vset.pattern.permute.xlu2 %v1370_v5  ;;  %v1199_v5 = vld [vmem:[%s2350_s3 + $0x178] sm:$0xff]  ;;  %v1226_v8 = vld [vmem:[%s2350_s3 + $0x210] sm:$0xff]  ;;  %v853_v10 = vmul.f32 %v1218_v63, %v1979_v29 }
 0x276   :  { %v2030_v37 = vadd.f32 %v447_v32, %v1924_v41  ;;  %934 = vperm.xlu2 %1292, %v1771_v20  }
 0x277   :  { %v2033_v50 = vadd.f32 %v564_v34, %v515_v53 }
 0x27a   :  { %v530_v41 = vpop.permute.xlu1 %529 }
 0x27b   :  { %v560_v42 = vmul.f32 %v1192_v0, %v530_v41  ;;  %v440_v6 = vpop.permute.xlu0 %439  ;;  %v1212_v41 = vld [vmem:[%s2350_s3 + $0x1a0] sm:$0xff] }
 0x27c   :  { %v558_v24 = vpop.permute.xlu2 %557  ;;  %v452_v36 = vmul.f32 %v1182_v27, %v440_v6  ;;  %958 = vperm.xlu1 %1293, %v1914_v40   ;;  %v910_v27 = vmul.f32 %v1226_v8, %v2003_v26  ;;  %v1222_v8 = vld [vmem:[%s2350_s3 + $0x1f0] sm:$0xff] }
 0x27d   :  { %v567_v56 = vmul.f32 %v1199_v5, %v558_v24  ;;  %v568_v60 = vadd.f32 %v560_v42, %v511_v57  ;;  %v1190_v42 = vld [vmem:[%s2350_s3 + $0x130] sm:$0xff] }
 0x27e   :  { %v2056_v18 = vadd.f32 %v452_v36, %v1943_v39  ;;  %946 = vperm.xlu2 %1292, %v1921_v17   ;;  %v915_v39 = vmul.f32 %v1231_v49, %v906_v9 }
 0x27f   :  { %v575_v46 = vadd.f32 %v567_v56, %v518_v43  ;;  %v802_v44 = vadd.f32 %v794_v14, %v568_v60 }
 0x281   :  { %v809_v53 = vadd.f32 %v801_v1, %v575_v46  ;;  %v1219_v1 = vld [vmem:[%s2350_s3 + $0x1d8] sm:$0xff] }
 0x282   :  { %v542_v30 = vpop.permute.xlu1 %541 }
 0x283   :  { %v563_v61 = vmul.f32 %v1195_v48, %v542_v30  ;;  %v2067_v54 = vpop.permute.xlu0 %942  ;;  %v866_v16 = vadd.f32 %v858_v11, %v809_v53 }
 0x284   :  { %1296 = vset.pattern.permute.xlu1 %v1371_v12 }
 0x285   :  { %v571_v33 = vadd.f32 %v563_v61, %v514_v15  ;;  %v2070_v35 = vpop.permute.xlu2 %761  ;;  %995 = vperm.xlu1 %1296, %v1900_v45   ;;  %v2073_v4 = vadd.f32 %v915_v39, %v866_v16  ;;  %v1209_v39 = vld [vmem:[%s2350_s3 + $0x188] sm:$0xff] }
 0x286   :  { %954 = vperm.xlu2 %1292, %v1940_v3  }
 0x28a   :  { %v550_v57 = vpop.permute.xlu1 %549 }
 0x28b   :  { %v565_v43 = vmul.f32 %v1197_v47, %v550_v57  ;;  %v2082_v13 = vpop.permute.xlu0 %962 }
 0x28d   :  { %v573_v51 = vadd.f32 %v565_v43, %v516_v23  ;;  %v772_v55 = vpop.permute.xlu2 %771  ;;  %1007 = vperm.xlu1 %1296, %v1893_v28   ;;  %v795_v43 = vmul.f32 %v1209_v39, %v2070_v35  ;;  %v1227_v35 = vld [vmem:[%s2350_s3 + $0x218] sm:$0xff] }
 0x28e   :  { %v797_v9 = vmul.f32 %v1211_v2, %v772_v55  ;;  %1295 = vset.pattern.permute.xlu2 %v1371_v12 }
 0x28f   :  { %991 = vperm.xlu2 %1295, %v1771_v20  }
 0x290   :  { %v805_v15 = vadd.f32 %v797_v9, %v571_v33  ;;  %v1217_v33 = vld [vmem:[%s2350_s3 + $0x1c8] sm:$0xff] }
 0x293   :  { %v767_v12 = vpop.permute.xlu1 %766 }
 0x294   :  { %v796_v7 = vmul.f32 %v1210_v59, %v767_v12  ;;  %v477_v22 = vpop.permute.xlu0 %476  ;;  %v1198_v59 = vld [vmem:[%s2350_s3 + $0x170] sm:$0xff] }
 0x295   :  { %v782_v52 = vpop.permute.xlu2 %781  ;;  %v504_v23 = vmul.f32 %v1185_v19, %v477_v22  ;;  %1015 = vperm.xlu1 %1296, %v1914_v40   ;;  %v1242_v22 = vld [vmem:[%s2350_s3 + $0x290] sm:$0xff] }
 0x296   :  { %v799_v32 = vmul.f32 %v1213_v21, %v782_v52  ;;  %v804_v34 = vadd.f32 %v796_v7, %v2016_v38  ;;  %v1214_v21 = vld [vmem:[%s2350_s3 + $0x1b0] sm:$0xff] }
 0x297   :  { %v512_v0 = vadd.f32 %v504_v23, %v2030_v37  ;;  %1003 = vperm.xlu2 %1295, %v1921_v17   ;;  %v1216_v37 = vld [vmem:[%s2350_s3 + $0x1c0] sm:$0xff] }
 0x298   :  { %v807_v31 = vadd.f32 %v799_v32, %v573_v51  ;;  %v861_v5 = vadd.f32 %v853_v10, %v804_v34 }
 0x29a   :  { %v2114_v29 = vadd.f32 %v910_v27, %v861_v5 }
 0x29b   :  { %v777_v6 = vpop.permute.xlu1 %776 }
 0x29c   :  { %v798_v38 = vmul.f32 %v1212_v41, %v777_v6  ;;  %v497_v62 = vpop.permute.xlu0 %496  ;;  %v1250_v41 = vld [vmem:[%s2350_s3 + $0x2d0] sm:$0xff] }
 0x29d   :  { %v509_v26 = vmul.f32 %v1190_v42, %v497_v62  ;;  %1299 = vset.pattern.permute.xlu1 %v1372_v25  ;;  %v1225_v42 = vld [vmem:[%s2350_s3 + $0x208] sm:$0xff] }
 0x29e   :  { %v806_v24 = vadd.f32 %v798_v38, %v2033_v50  ;;  %v821_v36 = vpop.permute.xlu2 %820  ;;  %1052 = vperm.xlu1 %1299, %v1900_v45   ;;  %v1221_v50 = vld [vmem:[%s2350_s3 + $0x1e8] sm:$0xff] }
 0x29f   :  { %v851_v14 = vmul.f32 %v1216_v37, %v821_v36  ;;  %v517_v56 = vadd.f32 %v509_v26, %v2056_v18  ;;  %1011 = vperm.xlu2 %1295, %v1940_v3   ;;  %v1229_v37 = vld [vmem:[%s2350_s3 + $0x228] sm:$0xff] }
 0x2a1   :  { %v859_v60 = vadd.f32 %v851_v14, %v802_v44 }
 0x2a3   :  { %v787_v58 = vpop.permute.xlu1 %786 }
 0x2a4   :  { %v1000_v46 = vpop.permute.xlu0 %999  ;;  %v800_v23 = vmul.f32 %v1214_v21, %v787_v58 }
 0x2a6   :  { %v833_v49 = vpop.permute.xlu2 %832  ;;  %1064 = vperm.xlu1 %1299, %v1893_v28  }
 0x2a7   :  { %v854_v48 = vmul.f32 %v1219_v1, %v833_v49  ;;  %1298 = vset.pattern.permute.xlu2 %v1372_v25  ;;  %v1220_v25 = vld [vmem:[%s2350_s3 + $0x1e0] sm:$0xff] }
 0x2a8   :  { %1048 = vperm.xlu2 %1298, %v1771_v20   ;;  %v1193_v20 = vld [vmem:[%s2350_s3 + $0x148] sm:$0xff]  ;;  %v2197_v1 = vld [vmem:[%s2351_s4] ss:$0 sm:$0xff] }
 0x2a9   :  { %v862_v45 = vadd.f32 %v854_v48, %v805_v15 }
 0x2ac   :  { %v1020_v18 = vpop.permute.xlu0 %1019  ;;  %v825_v44 = vpop.permute.xlu1 %824 }
 0x2ad   :  { %v852_v55 = vmul.f32 %v1217_v33, %v825_v44 }
 0x2ae   :  { %v841_v11 = vpop.permute.xlu2 %840  ;;  %1072 = vperm.xlu1 %1299, %v1914_v40   ;;  %v1224_v40 = vld [vmem:[%s2350_s3 + $0x200] sm:$0xff] }
 0x2af   :  { %v856_v53 = vmul.f32 %v1221_v50, %v841_v11  ;;  %v2206_v50 = vld [vmem:[%s2352_s5] ss:$0 sm:$0xff] }
 0x2b0   :  { %1060 = vperm.xlu2 %1298, %v1921_v17   ;;  %v1228_v11 = vld [vmem:[%s2350_s3 + $0x220] sm:$0xff] }
 0x2b1   :  { %v864_v30 = vadd.f32 %v856_v53, %v807_v31 }
 0x2b4   :  { %v837_v28 = vpop.permute.xlu1 %836 }
 0x2b5   :  { %v855_v61 = vmul.f32 %v1220_v25, %v837_v28  ;;  %v534_v17 = vpop.permute.xlu0 %533 }
 0x2b6   :  { %v561_v16 = vmul.f32 %v1193_v20, %v534_v17 }
 0x2b7   :  { %v2150_v47 = vadd.f32 %v855_v61, %v806_v24  ;;  %v878_v57 = vpop.permute.xlu2 %877 }
 0x2b8   :  { %v908_v2 = vmul.f32 %v1224_v40, %v878_v57  ;;  %v569_v51 = vadd.f32 %v561_v16, %v512_v0  ;;  %1068 = vperm.xlu2 %1298, %v1940_v3   ;;  %v1234_v3 = vld [vmem:[%s2350_s3 + $0x250] sm:$0xff]  ;;  %v1024_v0 = vmul.f32 %v1242_v22, %v1000_v46 }
 0x2b9   :  { %v967_v34 = vmul.f32 %v1234_v3, %v2067_v54  ;;  %v1239_v54 = vld [vmem:[%s2350_s3 + $0x278] sm:$0xff] }
 0x2ba   :  { %v2154_v9 = vadd.f32 %v908_v2, %v859_v60  ;;  %v803_v15 = vadd.f32 %v795_v43, %v569_v51  ;;  %v1230_v2 = vld [vmem:[%s2350_s3 + $0x230] sm:$0xff] }
 0x2bb   :  { %v975_v6 = vadd.f32 %v967_v34, %v2114_v29  ;;  %v972_v29 = vmul.f32 %v1239_v54, %v2082_v13  ;;  %v1255_v13 = vld [vmem:[%s2350_s3 + $0x2f8] sm:$0xff] }
 0x2bc   :  { %v845_v19 = vpop.permute.xlu1 %844  ;;  %v860_v63 = vadd.f32 %v852_v55, %v803_v15 }
 0x2bd   :  { %v554_v12 = vpop.permute.xlu0 %553  ;;  %v857_v27 = vmul.f32 %v1222_v8, %v845_v19  ;;  %v1032_v24 = vadd.f32 %v1024_v0, %v975_v6  ;;  %v980_v53 = vadd.f32 %v972_v29, %v2073_v4 }
 0x2be   :  { %v566_v7 = vmul.f32 %v1198_v59, %v554_v12 }
 0x2bf   :  { %v890_v52 = vpop.permute.xlu2 %889 }
 0x2c0   :  { %v911_v10 = vmul.f32 %v1227_v35, %v890_v52  ;;  %v574_v32 = vadd.f32 %v566_v7, %v517_v56  ;;  %v1247_v56 = vld [vmem:[%s2350_s3 + $0x2b8] sm:$0xff] }
 0x2c1   :  { %v1029_v48 = vmul.f32 %v1247_v56, %v1020_v18  ;;  %v2218_v18 = vld [vmem:[%s2353_s6] ss:$0 sm:$0xff]  ;;  %v1251_v56 = vld [vmem:[%s2350_s3 + $0x2d8] sm:$0xff] }
 0x2c2   :  { %v2175_v31 = vadd.f32 %v911_v10, %v862_v45  ;;  %v808_v5 = vadd.f32 %v800_v23, %v574_v32  ;;  %v1232_v10 = vld [vmem:[%s2350_s3 + $0x240] sm:$0xff] }
 0x2c3   :  { %v1037_v28 = vadd.f32 %v1029_v48, %v980_v53  ;;  %v1240_v32 = vld [vmem:[%s2350_s3 + $0x280] sm:$0xff] }
 0x2c4   :  { %v865_v38 = vadd.f32 %v857_v27, %v808_v5  ;;  %v1248_v5 = vld [vmem:[%s2350_s3 + $0x2c0] sm:$0xff] }
 0x2c5   :  { %v1057_v62 = vpop.permute.xlu0 %1056  ;;  %v882_v26 = vpop.permute.xlu1 %881 }
 0x2c6   :  { %v1081_v36 = vmul.f32 %v1250_v41, %v1057_v62  ;;  %v909_v14 = vmul.f32 %v1225_v42, %v882_v26  ;;  %v1235_v42 = vld [vmem:[%s2350_s3 + $0x258] sm:$0xff] }
 0x2c7   :  { %v898_v60 = vpop.permute.xlu2 %897 }
 0x2c8   :  { %v913_v58 = vmul.f32 %v1229_v37, %v898_v60  ;;  %v1089_v46 = vadd.f32 %v1081_v36, %v1032_v24  ;;  %v2199_v49 = vadd.f32 %v909_v14, %v860_v63  ;;  %v1243_v37 = vld [vmem:[%s2350_s3 + $0x298] sm:$0xff] }
 0x2ca   :  { %v2201_v45 = vadd.f32 %v913_v58, %v864_v30  ;;  %v1097_v44 = vmul.f32 0.5, %v1089_v46  ;;  %v1237_v58 = vld [vmem:[%s2350_s3 + $0x268] sm:$0xff] }
 0x2cb   :  { %v1241_v46 = vld [vmem:[%s2350_s3 + $0x288] sm:$0xff] }
 0x2cc   :  { %v1109_v30 = vadd.f32 %v2197_v1, %v1097_v44 }
 0x2cd   :  { %v1077_v25 = vpop.permute.xlu0 %1076  ;;  %v894_v20 = vpop.permute.xlu1 %893 }
 0x2ce   :  { %v1121_v39 = vmul.f32 %v2206_v50, %v1109_v30  ;;  %v1086_v61 = vmul.f32 %v1255_v13, %v1077_v25  ;;  %v912_v40 = vmul.f32 %v1228_v11, %v894_v20 }
 0x2d0   :  { %v1133_v17 = vadd.f32 %v2218_v18, %v1121_v39  ;;  %v1094_v16 = vadd.f32 %v1086_v61, %v1037_v28  ;;  %v2224_v33 = vadd.f32 %v912_v40, %v2150_v47  ;;  %v935_v4 = vpop.permute.xlu2 %934  ;;  %v1249_v39 = vld [vmem:[%s2350_s3 + $0x2c8] sm:$0xff]  ;;  %v1236_v40 = vld [vmem:[%s2350_s3 + $0x260] sm:$0xff] }
 0x2d1   :  { %v965_v34 = vmul.f32 %v1232_v10, %v935_v4 }
 0x2d2   :  { %v1141_v57 = vmax.f32 %v1133_v17, 0.0  ;;  %v1102_v43 = vmul.f32 0.5, %v1094_v16 }
 0x2d3   :  { %v973_v41 = vadd.f32 %v965_v34, %v2154_v9  ;;  %v1233_v9 = vld [vmem:[%s2350_s3 + $0x248] sm:$0xff] }
 0x2d4   :  { %1150 = vst.msk [vmem:[%s2354_s7 + $0x10] sm:$0xff] %vm1147_vm2, %v1141_v57  ;;  %v1114_v51 = vadd.f32 %v2197_v1, %v1102_v43  ;;  %v1253_v57 = vld [vmem:[%s2350_s3 + $0x2e8] sm:$0xff] }
 0x2d5   :  { %v902_v55 = vpop.permute.xlu1 %901 }
 0x2d6   :  { %v1126_v15 = vmul.f32 %v2206_v50, %v1114_v51  ;;  %v914_v47 = vmul.f32 %v1230_v2, %v902_v55 }
 0x2d8   :  { %v1138_v59 = vadd.f32 %v2218_v18, %v1126_v15  ;;  %v2236_v19 = vadd.f32 %v914_v47, %v865_v38  ;;  %v947_v63 = vpop.permute.xlu2 %946  ;;  %v1244_v47 = vld [vmem:[%s2350_s3 + $0x2a0] sm:$0xff] }
 0x2d9   :  { %v968_v62 = vmul.f32 %v1235_v42, %v947_v63 }
 0x2da   :  { %v1146_v21 = vmax.f32 %v1138_v59, 0.0 }
 0x2db   :  { %v976_v60 = vadd.f32 %v968_v62, %v2175_v31  ;;  %v1245_v31 = vld [vmem:[%s2350_s3 + $0x2a8] sm:$0xff] }
 0x2dc   :  { %1155 = vst.msk [vmem:[%s2354_s7 + $0x38] sm:$0xff] %vm1147_vm2, %v1146_v21 }
 0x2de   :  { %v939_v35 = vpop.permute.xlu1 %938 }
 0x2df   :  { %v966_v44 = vmul.f32 %v1233_v9, %v939_v35 }
 0x2e0   :  { %v955_v12 = vpop.permute.xlu2 %954 }
 0x2e1   :  { %v970_v30 = vmul.f32 %v1237_v58, %v955_v12  ;;  %v974_v61 = vadd.f32 %v966_v44, %v2199_v49 }
 0x2e3   :  { %v978_v2 = vadd.f32 %v970_v30, %v2201_v45 }
 0x2e6   :  { %v951_v3 = vpop.permute.xlu1 %950 }
 0x2e7   :  { %v969_v15 = vmul.f32 %v1236_v40, %v951_v3 }
 0x2e9   :  { %v992_v7 = vpop.permute.xlu2 %991  ;;  %v977_v3 = vadd.f32 %v969_v15, %v2224_v33 }
 0x2ea   :  { %v1022_v0 = vmul.f32 %v1240_v32, %v992_v7 }
 0x2ec   :  { %v1030_v38 = vadd.f32 %v1022_v0, %v973_v41  ;;  %v1238_v0 = vld [vmem:[%s2350_s3 + $0x270] sm:$0xff] }
 0x2ee   :  { %v2242_v22 = vpop.permute.xlu1 %958 }
 0x2f1   :  { %v1004_v8 = vpop.permute.xlu2 %1003 }
 0x2f2   :  { %v1025_v24 = vmul.f32 %v1243_v37, %v1004_v8 }
 0x2f4   :  { %v1033_v13 = vadd.f32 %v1025_v24, %v976_v60 }
 0x2f7   :  { %v996_v52 = vpop.permute.xlu1 %995 }
 0x2f8   :  { %v1023_v25 = vmul.f32 %v1241_v46, %v996_v52 }
 0x2f9   :  { %v1012_v23 = vpop.permute.xlu2 %1011 }
 0x2fa   :  { %v1027_v17 = vmul.f32 %v1245_v31, %v1012_v23  ;;  %v1031_v51 = vadd.f32 %v1023_v25, %v974_v61  ;;  %v1252_v23 = vld [vmem:[%s2350_s3 + $0x2e0] sm:$0xff] }
 0x2fc   :  { %v1035_v63 = vadd.f32 %v1027_v17, %v978_v2 }
 0x2ff   :  { %v1008_v27 = vpop.permute.xlu1 %1007 }
 0x300   :  { %v1026_v12 = vmul.f32 %v1244_v47, %v1008_v27 }
 0x302   :  { %v1049_v6 = vpop.permute.xlu2 %1048  ;;  %v1034_v27 = vadd.f32 %v1026_v12, %v977_v3 }
 0x303   :  { %v1079_v54 = vmul.f32 %v1248_v5, %v1049_v6  ;;  %v1246_v6 = vld [vmem:[%s2350_s3 + $0x2b0] sm:$0xff] }
 0x305   :  { %v1087_v26 = vadd.f32 %v1079_v54, %v1030_v38  ;;  %v971_v38 = vmul.f32 %v1238_v0, %v2242_v22 }
 0x307   :  { %v1095_v36 = vmul.f32 0.5, %v1087_v26  ;;  %v1016_v14 = vpop.permute.xlu1 %1015  ;;  %v979_v60 = vadd.f32 %v971_v38, %v2236_v19 }
 0x308   :  { %v1028_v26 = vmul.f32 %v1246_v6, %v1016_v14 }
 0x309   :  { %v1107_v29 = vadd.f32 %v2197_v1, %v1095_v36 }
 0x30a   :  { %v1061_v48 = vpop.permute.xlu2 %1060  ;;  %v1036_v14 = vadd.f32 %v1028_v26, %v979_v60 }
 0x30b   :  { %v1119_v11 = vmul.f32 %v2206_v50, %v1107_v29  ;;  %v1082_v53 = vmul.f32 %v1251_v56, %v1061_v48  ;;  %v1254_v56 = vld [vmem:[%s2350_s3 + $0x2f0] sm:$0xff] }
 0x30d   :  { %v1131_v20 = vadd.f32 %v2218_v18, %v1119_v11  ;;  %v1090_v28 = vadd.f32 %v1082_v53, %v1033_v13 }
 0x30f   :  { %v1139_v16 = vmax.f32 %v1131_v20, 0.0  ;;  %v1098_v4 = vmul.f32 0.5, %v1090_v28 }
 0x310   :  { %v1053_v43 = vpop.permute.xlu1 %1052 }
 0x311   :  { %1148 = vst.msk [vmem:[%s2354_s7] sm:$0xff] %vm1147_vm2, %v1139_v16  ;;  %v1110_v49 = vadd.f32 %v2197_v1, %v1098_v4  ;;  %v1080_v55 = vmul.f32 %v1249_v39, %v1053_v43 }
 0x312   :  { %v1069_v59 = vpop.permute.xlu2 %1068 }
 0x313   :  { %v1122_v21 = vmul.f32 %v2206_v50, %v1110_v49  ;;  %v1084_v35 = vmul.f32 %v1253_v57, %v1069_v59  ;;  %v1088_v45 = vadd.f32 %v1080_v55, %v1031_v51 }
 0x315   :  { %v1134_v7 = vadd.f32 %v2218_v18, %v1122_v21  ;;  %v1092_v8 = vadd.f32 %v1084_v35, %v1035_v63  ;;  %v1096_v52 = vmul.f32 0.5, %v1088_v45 }
 0x317   :  { %v1142_v10 = vmax.f32 %v1134_v7, 0.0  ;;  %v1100_v32 = vmul.f32 0.5, %v1092_v8  ;;  %v1108_v34 = vadd.f32 %v2197_v1, %v1096_v52 }
 0x318   :  { %v1065_v5 = vpop.permute.xlu1 %1064 }
 0x319   :  { %1151 = vst.msk [vmem:[%s2354_s7 + $0x18] sm:$0xff] %vm1147_vm2, %v1142_v10  ;;  %v1112_v41 = vadd.f32 %v2197_v1, %v1100_v32  ;;  %v1120_v42 = vmul.f32 %v2206_v50, %v1108_v34  ;;  %v1083_v33 = vmul.f32 %v1252_v23, %v1065_v5 }
 0x31b   :  { %v1124_v54 = vmul.f32 %v2206_v50, %v1112_v41  ;;  %v1132_v37 = vadd.f32 %v2218_v18, %v1120_v42  ;;  %v1091_v62 = vadd.f32 %v1083_v33, %v1034_v27 }
 0x31d   :  { %v1136_v24 = vadd.f32 %v2218_v18, %v1124_v54  ;;  %v1140_v36 = vmax.f32 %v1132_v37, 0.0  ;;  %v1099_v9 = vmul.f32 0.5, %v1091_v62 }
 0x31f   :  { %v1144_v29 = vmax.f32 %v1136_v24, 0.0  ;;  %1149 = vst.msk [vmem:[%s2354_s7 + $0x8] sm:$0xff] %vm1147_vm2, %v1140_v36  ;;  %v1111_v22 = vadd.f32 %v2197_v1, %v1099_v9 }
 0x320   :  { %v1073_v58 = vpop.permute.xlu1 %1072 }
 0x321   :  { %1153 = vst.msk [vmem:[%s2354_s7 + $0x28] sm:$0xff] %vm1147_vm2, %v1144_v29  ;;  %v1123_v46 = vmul.f32 %v2206_v50, %v1111_v22  ;;  %v1085_v48 = vmul.f32 %v1254_v56, %v1073_v58 }
 0x323   :  { %v1135_v19 = vadd.f32 %v2218_v18, %v1123_v46  ;;  %v1093_v44 = vadd.f32 %v1085_v48, %v1036_v14 }
 0x325   :  { %v1143_v13 = vmax.f32 %v1135_v19, 0.0  ;;  %v1101_v11 = vmul.f32 0.5, %v1093_v44 }
 0x327   :  { %1152 = vst.msk [vmem:[%s2354_s7 + $0x20] sm:$0xff] %vm1147_vm2, %v1143_v13  ;;  %v1113_v53 = vadd.f32 %v2197_v1, %v1101_v11 }
 0x329   :  { %v1125_v31 = vmul.f32 %v2206_v50, %v1113_v53 }
 0x32b   :  { %v1137_v30 = vadd.f32 %v2218_v18, %v1125_v31 }
 0x32d   :  { %v1145_v25 = vmax.f32 %v1137_v30, 0.0 }
 0x32f   :  { %1154 = vst.msk [vmem:[%s2354_s7 + $0x30] sm:$0xff] %vm1147_vm2, %v1145_v25 }

// kernel: _lambda_.16
= control target key start
LH: loop header
LB: loop body
LE: loop exit
PB: predicated region body
PF: predicated region fallthrough
CT: control target
= control target key end

     0   :  { %s821_s12 = smov 0   ;;  %s905_s0 = inlined_call_operand.vmem [shape: bf16[4,4,16,4], index: 0, kind: input, shape index: {}]   ;;  %s906_s1 = inlined_call_operand.vmem [shape: bf16[4,4,16,4], index: 1, kind: input, shape index: {}]   ;;  %s907_s2 = inlined_call_operand.vmem [shape: bf16[4,4,16,4], index: 2, kind: input, shape index: {}]   ;;  %s908_s3 = inlined_call_operand.vmem [shape: f32[4,4,16,4], index: 3, kind: output, shape index: {}]  }
   0x1 LB: > { %s666_s13 = sadd.s32 4294967295, %s799_s12   ;;  %p670_p0 = scmp.ge.s32.totalorder %s799_s12, 1  ;;  %s799_s12 = sphi %s821_s12, %s13_s12  }
   0x2   : > { %p157_p1 = scmp.lt.s32.totalorder %s799_s12, 5 }
   0x4   : > { %p158_p2 = pnand %p670_p0, %p157_p1 }
   0x5   : > { %p191_p3 = scmp.lt.s32.totalorder (!%p158_p2), %s666_s13, 3 }
   0x6   : > { %161 = sbr.rel (%p158_p2) target bundleno = 569 (0x239), region = 32 }
   0xb   : > { %s910_s13 = smov (!%p191_p3, %s666_s13), 3  ;;  %vm246_vm0 = vcmask 31744   ;;  %v357_v12 = vlaneseq  ;;  %vm370_vm2 = vcmask 130048  }
   0xc   : > { %s832_s14 = sshll.u32 %s910_s13, 5  ;;  %s740_s24 = sshll.u32 %s910_s13, 6 }
   0xd   : > { %s200_s17 = scalar_lea.vmem %s906_s1, %s832_s14  ;;  %s195_s20 = scalar_lea.vmem %s905_s0, %s832_s14  ;;  %v358_v13 = vand.u32 127, %v357_v12 }
   0xe   : > { %v745_v0 = vld [vmem:[%s200_s17] sm:$0xff]  ;;  %v747_v1 = vld [vmem:[%s200_s17 + $0x10] sm:$0xff]  ;;  %v748_v2 = vld [vmem:[%s200_s17 + $0x18] sm:$0xff]  ;;  %s205_s23 = scalar_lea.vmem %s907_s2, %s832_s14  ;;  %s210_s27 = scalar_lea.vmem %s908_s3, %s740_s24 }
   0xf   : > { %v746_v3 = vld [vmem:[%s200_s17 + $0x8] sm:$0xff]  ;;  %v251_v4 = vsel %vm246_vm0, %v745_v0, 0  ;;  %v311_v5 = vsel %vm246_vm0, %v747_v1, 0  ;;  %v341_v6 = vsel %vm246_vm0, %v748_v2, 0  ;;  %v741_v8 = vld [vmem:[%s195_s20] sm:$0xff]  ;;  %v743_v9 = vld [vmem:[%s195_s20 + $0x10] sm:$0xff] }
  0x10   : > { %260 = vmatpush.bf16.xpose.msra.mxu0 %v251_v4  ;;  %320 = vmatpush.bf16.xpose.msra.mxu2 %v311_v5  ;;  %v281_v7 = vsel %vm246_vm0, %v746_v3, 0  ;;  %v744_v10 = vld [vmem:[%s195_s20 + $0x18] sm:$0xff]  ;;  %v742_v11 = vld [vmem:[%s195_s20 + $0x8] sm:$0xff]  ;;  %vm359_vm1 = vcmp.lt.s32.totalorder %v358_v13, 10 }
  0x11   : > { %350 = vmatpush.bf16.xpose.msra.mxu3 %v341_v6  ;;  %290 = vmatpush.bf16.xpose.msra.mxu1 %v281_v7 }
  0x17   : > { %687 = vmatmul.msk.bf16.vlgmr.msra.gmra.mxu0 %vm246_vm0, %v741_v8  ;;  %705 = vmatmul.msk.bf16.vlgmr.msra.gmra.mxu2 %vm246_vm0, %v743_v9 }
  0x18   : > { %714 = vmatmul.msk.bf16.vlgmr.msra.gmra.mxu3 %vm246_vm0, %v744_v10  ;;  %696 = vmatmul.msk.bf16.vlgmr.msra.gmra.mxu1 %vm246_vm0, %v742_v11 }
  0x94   : > { %v262_v14 = vpop.f32.mrf.mxu0 }
  0x95   : > { %v362_v15 = vsel %vm359_vm1, %v262_v14, -1e+30  ;;  %v292_v23 = vpop.f32.mrf.mxu1  ;;  %v751_v14 = vld [vmem:[%s205_s23 + $0x10] sm:$0xff] }
  0x96   : > { %v371_v16 = vsel %vm370_vm2, %v362_v15, -inf  ;;  %v364_v34 = vsel %vm359_vm1, %v292_v23, -1e+30  ;;  %544 = vmatpush.bf16.msrb.mxu2 %v751_v14 }
  0x97   : > { %372 = vmax.xlane.f32.xlu2 %v371_v16  ;;  %v377_v36 = vsel %vm370_vm2, %v364_v34, -inf  ;;  %v749_v16 = vld [vmem:[%s205_s23] sm:$0xff] }
  0x98   : > { %488 = vmatpush.bf16.msrb.mxu0 %v749_v16 }
  0x9a   : > { %v322_v17 = vpop.f32.mrf.mxu2 }
  0x9b   : > { %v366_v18 = vsel %vm359_vm1, %v322_v17, -1e+30  ;;  %v352_v19 = vpop.f32.mrf.mxu3  ;;  %v750_v17 = vld [vmem:[%s205_s23 + $0x8] sm:$0xff] }
  0x9c   : > { %v368_v20 = vsel %vm359_vm1, %v352_v19, -1e+30  ;;  %v264_v21 = vpop.f32.mrf.mxu0  ;;  %v383_v22 = vsel %vm370_vm2, %v366_v18, -inf  ;;  %516 = vmatpush.bf16.msrb.mxu1 %v750_v17 }
  0x9d   : > { %v363_v24 = vsel %vm359_vm1, %v264_v21, -1e+30  ;;  %v389_v25 = vsel %vm370_vm2, %v368_v20, -inf  ;;  %384 = vmax.xlane.f32.xlu0 %v383_v22  ;;  %v294_v33 = vpop.f32.mrf.mxu1 }
  0x9e   : > { %390 = vmax.xlane.f32.xlu1 %v389_v25  ;;  %v374_v26 = vsel %vm370_vm2, %v363_v24, -inf  ;;  %v365_v35 = vsel %vm359_vm1, %v294_v33, -1e+30 }
  0x9f   : > { %375 = vmax.xlane.f32.xlu2 %v374_v26  ;;  %v380_v37 = vsel %vm370_vm2, %v365_v35, -inf }
  0xa2   : > { %v324_v27 = vpop.f32.mrf.mxu2 }
  0xa3   : > { %v367_v28 = vsel %vm359_vm1, %v324_v27, -1e+30  ;;  %v354_v29 = vpop.f32.mrf.mxu3 }
  0xa4   : > { %v369_v30 = vsel %vm359_vm1, %v354_v29, -1e+30  ;;  %v386_v31 = vsel %vm370_vm2, %v367_v28, -inf }
  0xa5   : > { %v392_v32 = vsel %vm370_vm2, %v369_v30, -inf  ;;  %387 = vmax.xlane.f32.xlu0 %v386_v31 }
  0xa6   : > { %393 = vmax.xlane.f32.xlu1 %v392_v32 }
  0xad   : > { %378 = vmax.xlane.f32.xlu0 %v377_v36 }
  0xae   : > { %381 = vmax.xlane.f32.xlu1 %v380_v37 }
 0x10a   : > { %v373_v38 = vpop.xlane.xlu2 %372 }
 0x10b   : > { %v395_v39 = vsub.f32 %v362_v15, %v373_v38  ;;  %v752_v15 = vld [vmem:[%s205_s23 + $0x18] sm:$0xff] }
 0x10c   : > { %572 = vmatpush.bf16.msrb.mxu3 %v752_v15 }
 0x10d   : > { %v403_v40 = vmul.f32 1.442695, %v395_v39 }
 0x10f   : > { %761 = vpow2.f32 %v403_v40 }
 0x110   : > { %v385_v41 = vpop.xlane.xlu0 %384 }
 0x111   : > { %v391_v42 = vpop.xlane.xlu1 %390  ;;  %v399_v43 = vsub.f32 %v366_v18, %v385_v41 }
 0x112   : > { %v401_v44 = vsub.f32 %v368_v20, %v391_v42  ;;  %v376_v45 = vpop.xlane.xlu2 %375 }
 0x113   : > { %v411_v46 = vmul.f32 1.442695, %v399_v43  ;;  %v396_v48 = vsub.f32 %v363_v24, %v376_v45 }
 0x114   : > { %v415_v47 = vmul.f32 1.442695, %v401_v44 }
 0x115   : > { %v866_v49 = vpop.eup %761  ;;  %763 = vpow2.f32 %v411_v46  ;;  %v405_v51 = vmul.f32 1.442695, %v396_v48 }
 0x116   : > { %765 = vpow2.f32 %v415_v47  ;;  %v419_v50 = vsel %vm370_vm2, %v866_v49, 0.0 }
 0x117   : > { %420 = vadd.xlane.f32.xlu0 %v419_v50  ;;  %767 = vpow2.f32 %v405_v51 }
 0x118   : > { %v388_v52 = vpop.xlane.xlu0 %387 }
 0x119   : > { %v394_v53 = vpop.xlane.xlu1 %393  ;;  %v400_v54 = vsub.f32 %v367_v28, %v388_v52 }
 0x11a   : > { %v402_v55 = vsub.f32 %v369_v30, %v394_v53 }
 0x11b   : > { %v764_v56 = vpop.eup %763  ;;  %v413_v57 = vmul.f32 1.442695, %v400_v54 }
 0x11c   : > { %v766_v58 = vpop.eup %765  ;;  %v417_v59 = vmul.f32 1.442695, %v402_v55  ;;  %v431_v60 = vsel %vm370_vm2, %v764_v56, 0.0 }
 0x11d   : > { %769 = vpow2.f32 %v413_v57  ;;  %v437_v61 = vsel %vm370_vm2, %v766_v58, 0.0  ;;  %432 = vadd.xlane.f32.xlu2 %v431_v60  ;;  %v768_v1 = vpop.eup %767 }
 0x11e   : > { %771 = vpow2.f32 %v417_v59  ;;  %438 = vadd.xlane.f32.xlu1 %v437_v61  ;;  %v422_v9 = vsel %vm370_vm2, %v768_v1, 0.0 }
 0x120   : > { %v379_v62 = vpop.xlane.xlu0 %378 }
 0x121   : > { %v397_v63 = vsub.f32 %v364_v34, %v379_v62  ;;  %v382_v0 = vpop.xlane.xlu1 %381 }
 0x122   : > { %v398_v2 = vsub.f32 %v365_v35, %v382_v0 }
 0x123   : > { %v770_v3 = vpop.eup %769  ;;  %v407_v4 = vmul.f32 1.442695, %v397_v63 }
 0x124   : > { %v772_v5 = vpop.eup %771  ;;  %v409_v6 = vmul.f32 1.442695, %v398_v2  ;;  %v434_v7 = vsel %vm370_vm2, %v770_v3, 0.0 }
 0x125   : > { %773 = vpow2.f32 %v407_v4  ;;  %435 = vadd.xlane.f32.xlu0 %v434_v7  ;;  %v440_v8 = vsel %vm370_vm2, %v772_v5, 0.0 }
 0x126   : > { %775 = vpow2.f32 %v409_v6  ;;  %441 = vadd.xlane.f32.xlu2 %v440_v8  ;;  %423 = vadd.xlane.f32.xlu1 %v422_v9 }
 0x12b   : > { %v875_v10 = vpop.eup %773 }
 0x12c   : > { %v776_v11 = vpop.eup %775  ;;  %v425_v12 = vsel %vm370_vm2, %v875_v10, 0.0 }
 0x12d   : > { %v428_v13 = vsel %vm370_vm2, %v776_v11, 0.0 }
 0x12e   : > { %429 = vadd.xlane.f32.xlu0 %v428_v13  ;;  %426 = vadd.xlane.f32.xlu2 %v425_v12 }
 0x18a   : > { %v421_v18 = vpop.xlane.xlu0 %420 }
 0x190   : > { %v433_v19 = vpop.xlane.xlu2 %432 }
 0x191   : > { %v439_v20 = vpop.xlane.xlu1 %438  ;;  %777 = vrcp.f32 %v433_v19 }
 0x192   : > { %779 = vrcp.f32 %v421_v18 }
 0x193   : > { %781 = vrcp.f32 %v439_v20 }
 0x197   : > { %v778_v22 = vpop.eup %777 }
 0x198   : > { %v436_v21 = vpop.xlane.xlu0 %435  ;;  %v780_v25 = vpop.eup %779  ;;  %v455_v27 = vmul.f32 %v778_v22, %v764_v56 }
 0x199   : > { %783 = vrcp.f32 %v436_v21  ;;  %v424_v23 = vpop.xlane.xlu1 %423  ;;  %v442_v24 = vpop.xlane.xlu2 %441  ;;  %v451_v28 = vmul.f32 %v780_v25, %v866_v49 }
 0x19a   : > { %785 = vrcp.f32 %v424_v23  ;;  %v782_v26 = vpop.eup %781  ;;  %v463_v32 = vpack.c.bf16 %v455_v27, %v455_v27 }
 0x19b   : > { %787 = vrcp.f32 %v442_v24  ;;  %v457_v29 = vmul.f32 %v782_v26, %v766_v58  ;;  %v459_v35 = vpack.c.bf16 %v451_v28, %v451_v28 }
 0x19c   : > { %v525_v43 = vunpack.c.l.b16 %v463_v32 }
 0x19d   : > { %v465_v39 = vpack.c.bf16 %v457_v29, %v457_v29  ;;  %v469_v46 = vunpack.c.l.b16 %v459_v35 }
 0x19f   : > { %v784_v30 = vpop.eup %783  ;;  %v553_v48 = vunpack.c.l.b16 %v465_v39 }
 0x1a0   : > { %v786_v31 = vpop.eup %785  ;;  %v456_v33 = vmul.f32 %v784_v30, %v770_v3 }
 0x1a1   : > { %v788_v34 = vpop.eup %787  ;;  %v452_v36 = vmul.f32 %v786_v31, %v768_v1  ;;  %v430_v37 = vpop.xlane.xlu0 %429 }
 0x1a2   : > { %v427_v38 = vpop.xlane.xlu2 %426  ;;  %v464_v40 = vpack.c.bf16 %v456_v33, %v456_v33  ;;  %v458_v41 = vmul.f32 %v788_v34, %v772_v5  ;;  %789 = vrcp.f32 %v430_v37 }
 0x1a3   : > { %v460_v42 = vpack.c.bf16 %v452_v36, %v452_v36  ;;  %791 = vrcp.f32 %v427_v38 }
 0x1a4   : > { %v526_v44 = vunpack.c.l.b16 %v464_v40  ;;  %v466_v45 = vpack.c.bf16 %v458_v41, %v458_v41 }
 0x1a5   : > { %v470_v47 = vunpack.c.l.b16 %v460_v42 }
 0x1a6   : > { %v554_v49 = vunpack.c.l.b16 %v466_v45  ;;  %v527_v50 = vpack.c.b16 %v526_v44, %v525_v43 }
 0x1a7   : > { %v471_v51 = vpack.c.b16 %v470_v47, %v469_v46 }
 0x1a8   : > { %v790_v52 = vpop.eup %789  ;;  %729 = vmatmul.msk.bf16.vlgmr.msrb.gmra.mxu2 %vm370_vm2, %v527_v50  ;;  %v555_v53 = vpack.c.b16 %v554_v49, %v553_v48 }
 0x1a9   : > { %v792_v54 = vpop.eup %791  ;;  %v454_v55 = vmul.f32 %v790_v52, %v776_v11  ;;  %719 = vmatmul.msk.bf16.vlgmr.msrb.gmra.mxu0 %vm370_vm2, %v471_v51 }
 0x1aa   : > { %v453_v56 = vmul.f32 %v792_v54, %v875_v10  ;;  %734 = vmatmul.msk.bf16.vlgmr.msrb.gmra.mxu3 %vm370_vm2, %v555_v53 }
 0x1ab   : > { %v462_v57 = vpack.c.bf16 %v454_v55, %v454_v55 }
 0x1ac   : > { %v461_v58 = vpack.c.bf16 %v453_v56, %v453_v56 }
 0x1ad   : > { %v498_v59 = vunpack.c.l.b16 %v462_v57 }
 0x1ae   : > { %v497_v60 = vunpack.c.l.b16 %v461_v58 }
 0x1b0   : > { %v499_v61 = vpack.c.b16 %v498_v59, %v497_v60 }
 0x1b2   : > { %724 = vmatmul.msk.bf16.vlgmr.msrb.gmra.mxu1 %vm370_vm2, %v499_v61 }
 0x226   : > { %v490_v62 = vpop.f32.mrf.mxu0 }
 0x227   : > { %579 = vst.msk [vmem:[%s210_s27] sm:$0xff] %vm246_vm0, %v490_v62 }
 0x22b   : > { %v546_v63 = vpop.f32.mrf.mxu2 }
 0x22c   : > { %583 = vst.msk [vmem:[%s210_s27 + $0x20] sm:$0xff] %vm246_vm0, %v546_v63 }
 0x22d   : > { %v574_v0 = vpop.f32.mrf.mxu3 }
 0x22e   : > { %585 = vst.msk [vmem:[%s210_s27 + $0x30] sm:$0xff] %vm246_vm0, %v574_v0  ;;  %v492_v1 = vpop.f32.mrf.mxu0 }
 0x22f   : > { %580 = vst.msk [vmem:[%s210_s27 + $0x8] sm:$0xff] %vm246_vm0, %v492_v1  ;;  %v518_v2 = vpop.f32.mrf.mxu1 }
 0x230   : > { %581 = vst.msk [vmem:[%s210_s27 + $0x10] sm:$0xff] %vm246_vm0, %v518_v2 }
 0x233   : > { %v548_v3 = vpop.f32.mrf.mxu2 }
 0x234   : > { %584 = vst.msk [vmem:[%s210_s27 + $0x28] sm:$0xff] %vm246_vm0, %v548_v3 }
 0x235   : > { %v576_v4 = vpop.f32.mrf.mxu3 }
 0x236   : > { %586 = vst.msk [vmem:[%s210_s27 + $0x38] sm:$0xff] %vm246_vm0, %v576_v4 }
 0x237   : > { %v520_v5 = vpop.f32.mrf.mxu1 }
 0x238   : > { %582 = vst.msk [vmem:[%s210_s27 + $0x18] sm:$0xff] %vm246_vm0, %v520_v5 }
 0x239 PF: > { %s13_s12 = sadd.s32 1, %s799_s12  }
 0x23a   : > { %p10_p4 = scmp.ge.s32.totalorder %s13_s12, 6  }
 0x23c   :  { %12 = sbr.rel (!%p10_p4) target bundleno = 1 (0x1), region = 68 }

// kernel: _lambda_.17
= control target key start
LH: loop header
LB: loop body
LE: loop exit
PB: predicated region body
PF: predicated region fallthrough
CT: control target
= control target key end

     0   :  { %vm54_vm0 = vcmask 130048   ;;  %v277_v33 = vmov 16.0   ;;  %s407_s1 = inlined_call_operand.vmem [shape: bf16[16,16], index: 1, kind: input, shape index: {}]   ;;  %s408_s0 = inlined_call_operand.vmem [shape: bf16[40,16], index: 0, kind: input, shape index: {}]   ;;  %s409_s2 = inlined_call_operand.vmem [shape: f32[1,16], index: 2, kind: input, shape index: {}, may-alias: {2,5}]   ;;  %s410_s3 = inlined_call_operand.vmem [shape: f32[40,16], index: 3, kind: input, shape index: {}]   ;;  %s411_s4 = inlined_call_operand.vmem [shape: f32[1,16], index: 4, kind: input, shape index: {}]   ;;  %s412_s5 = inlined_call_operand.vmem [shape: f32[1,16], index: 5, kind: input, shape index: {}, may-alias: {2,5}]   ;;  %s413_s6 = inlined_call_operand.vmem [shape: f32[40,16], index: 6, kind: output, shape index: {}]  }
   0x1   :  { %v258_v0 = vld [vmem:[%s407_s1] sm:$0xff]  ;;  %v257_v2 = vld [vmem:[%s408_s0 + $0x8] sm:$0xff]  ;;  %v28_v3 = vld [vmem:[%s408_s0 + $0x10] sm:$0xf]  ;;  %265 = vrcp.f32 %v277_v33 }
   0x2   :  { %v256_v1 = vld [vmem:[%s408_s0] sm:$0xff]  ;;  %71 = vmatpush.bf16.msra.mxu0 %v258_v0  ;;  %259 = vmatpush.bf16.msra.mxu1 %v258_v0  ;;  %v44_v4 = vunpack.c.l.b16 %v28_v3  ;;  %v89_v9 = vld [vmem:[%s410_s3 + $0x10] sm:$0xff]  ;;  %v90_v22 = vld [vmem:[%s410_s3 + $0x18] sm:$0xff] }
   0x3   :  { %260 = vmatpush.bf16.msra.mxu2 %v258_v0  ;;  %v262_v6 = vld [vmem:[%s409_s2] ss:$0 sm:$0xff]  ;;  %v88_v23 = vld [vmem:[%s410_s3 + $0x8] sm:$0xff] }
   0x4   :  { %v47_v5 = vpack.c.b16 %v44_v4, %v44_v4  ;;  %v87_v10 = vld [vmem:[%s410_s3] sm:$0xff] }
   0x5   :  { %253 = vmatmul.msk.bf16.vlgmr.msra.gmra.mxu0 %vm54_vm0, %v256_v1  ;;  %254 = vmatmul.msk.bf16.vlgmr.msra.gmra.mxu1 %vm54_vm0, %v257_v2  ;;  %v91_v18 = vld [vmem:[%s410_s3 + $0x20] sm:$0xff] }
   0x6   :  { %255 = vmatmul.msk.bf16.vlgmr.msra.gmra.mxu2 %vm54_vm0, %v47_v5 }
   0x7   :  { %v266_v34 = vpop.eup %265 }
   0x8   :  { %v113_v35 = vmul.f32 16.0, %v266_v34  ;;  %vm117_vm1 = vweird.f32 %v266_v34 }
   0xa   :  { %v114_v36 = vsub.f32 1.0, %v113_v35  ;;  %v264_v35 = vld [vmem:[%s412_s5] ss:$0 sm:$0xff] }
   0xc   :  { %v115_v37 = vmul.f32 %v266_v34, %v114_v36 }
   0xe   :  { %v116_v38 = vadd.f32 %v266_v34, %v115_v37 }
  0x10   :  { %v118_v39 = vsel %vm117_vm1, %v266_v34, %v116_v38 }
  0x82   :  { %v73_v7 = vpop.f32.mrf.mxu0  ;;  %v78_v8 = vpop.f32.mrf.mxu1 }
  0x83   :  { %v74_v11 = vadd.f32 %v262_v6, %v73_v7  ;;  %v79_v12 = vadd.f32 %v262_v6, %v78_v8 }
  0x85   :  { %v94_v13 = vadd.f32 %v89_v9, %v79_v12  ;;  %v92_v14 = vadd.f32 %v87_v10, %v74_v11 }
  0x87   :  { %v103_v15 = vsel %vm54_vm0, %v94_v13, 0.0  ;;  %v97_v16 = vsel %vm54_vm0, %v92_v14, 0.0 }
  0x88   :  { %104 = vadd.xlane.f32.xlu1 %v103_v15  ;;  %98 = vadd.xlane.f32.xlu0 %v97_v16 }
  0x89   :  { %v83_v17 = vpop.f32.mrf.mxu2 }
  0x8a   :  { %v84_v19 = vadd.f32 %v262_v6, %v83_v17  ;;  %v75_v20 = vpop.f32.mrf.mxu0  ;;  %v80_v21 = vpop.f32.mrf.mxu1 }
  0x8b   :  { %v76_v24 = vadd.f32 %v262_v6, %v75_v20  ;;  %v81_v25 = vadd.f32 %v262_v6, %v80_v21 }
  0x8c   :  { %v96_v26 = vadd.f32 %v91_v18, %v84_v19 }
  0x8d   :  { %v95_v27 = vadd.f32 %v90_v22, %v81_v25  ;;  %v93_v28 = vadd.f32 %v88_v23, %v76_v24 }
  0x8e   :  { %v109_v29 = vsel %vm54_vm0, %v96_v26, 0.0 }
  0x8f   :  { %110 = vadd.xlane.f32.xlu2 %v109_v29  ;;  %v106_v30 = vsel %vm54_vm0, %v95_v27, 0.0  ;;  %v100_v31 = vsel %vm54_vm0, %v93_v28, 0.0 }
  0x90   :  { %107 = vadd.xlane.f32.xlu1 %v106_v30  ;;  %101 = vadd.xlane.f32.xlu0 %v100_v31  ;;  %v263_v30 = vld [vmem:[%s411_s4] ss:$0 sm:$0xff] }
  0x91   :  { %v85_v32 = vpop.f32.mrf.mxu2 }
  0xfb   :  { %v105_v40 = vpop.xlane.xlu1 %104  ;;  %v99_v41 = vpop.xlane.xlu0 %98 }
  0xfc   :  { %v121_v42 = vmul.f32 %v118_v39, %v105_v40  ;;  %v119_v43 = vmul.f32 %v118_v39, %v99_v41 }
  0xfe   :  { %v351_v44 = vsub.f32 %v94_v13, %v121_v42  ;;  %v353_v45 = vsub.f32 %v92_v14, %v119_v43 }
 0x100   :  { %v131_v46 = vmul.f32 %v351_v44, %v351_v44  ;;  %v129_v47 = vmul.f32 %v353_v45, %v353_v45 }
 0x102   :  { %v111_v48 = vpop.xlane.xlu2 %110  ;;  %v140_v49 = vsel %vm54_vm0, %v131_v46, 0.0  ;;  %v134_v50 = vsel %vm54_vm0, %v129_v47, 0.0 }
 0x103   :  { %141 = vadd.xlane.f32.xlu1 %v140_v49  ;;  %v108_v51 = vpop.xlane.xlu1 %107  ;;  %135 = vadd.xlane.f32.xlu2 %v134_v50  ;;  %v102_v52 = vpop.xlane.xlu0 %101  ;;  %v123_v55 = vmul.f32 %v118_v39, %v111_v48 }
 0x104   :  { %v122_v53 = vmul.f32 %v118_v39, %v108_v51  ;;  %v120_v54 = vmul.f32 %v118_v39, %v102_v52 }
 0x105   :  { %v369_v60 = vsub.f32 %v96_v26, %v123_v55 }
 0x106   :  { %v361_v56 = vsub.f32 %v95_v27, %v122_v53  ;;  %v363_v57 = vsub.f32 %v93_v28, %v120_v54 }
 0x107   :  { %v133_v63 = vmul.f32 %v369_v60, %v369_v60 }
 0x108   :  { %v132_v58 = vmul.f32 %v361_v56, %v361_v56  ;;  %v130_v59 = vmul.f32 %v363_v57, %v363_v57 }
 0x109   :  { %v146_v0 = vsel %vm54_vm0, %v133_v63, 0.0 }
 0x10a   :  { %v143_v61 = vsel %vm54_vm0, %v132_v58, 0.0  ;;  %v137_v62 = vsel %vm54_vm0, %v130_v59, 0.0 }
 0x10b   :  { %144 = vadd.xlane.f32.xlu2 %v143_v61  ;;  %138 = vadd.xlane.f32.xlu0 %v137_v62 }
 0x113   :  { %147 = vadd.xlane.f32.xlu0 %v146_v0 }
 0x176   :  { %v142_v1 = vpop.xlane.xlu1 %141  ;;  %v136_v2 = vpop.xlane.xlu2 %135 }
 0x177   :  { %v151_v3 = vmul.f32 %v142_v1, %v118_v39  ;;  %v149_v4 = vmul.f32 %v136_v2, %v118_v39 }
 0x179   :  { %v156_v5 = vadd.f32 1e-05, %v151_v3  ;;  %v154_v6 = vadd.f32 1e-05, %v149_v4 }
 0x17b   :  { %267 = vrsqrt.f32 %v156_v5  ;;  %vm185_vm4 = vweird.f32 %v156_v5  ;;  %vm165_vm6 = vweird.f32 %v154_v6 }
 0x17c   :  { %269 = vrsqrt.f32 %v154_v6 }
 0x17e   :  { %v145_v7 = vpop.xlane.xlu2 %144  ;;  %v139_v8 = vpop.xlane.xlu0 %138 }
 0x17f   :  { %v152_v9 = vmul.f32 %v145_v7, %v118_v39  ;;  %v150_v10 = vmul.f32 %v139_v8, %v118_v39 }
 0x181   :  { %v268_v11 = vpop.eup %267  ;;  %v157_v12 = vadd.f32 1e-05, %v152_v9  ;;  %v155_v13 = vadd.f32 1e-05, %v150_v10 }
 0x182   :  { %v270_v14 = vpop.eup %269  ;;  %v180_v15 = vmul.f32 %v268_v11, %v156_v5  ;;  %vm186_vm2 = vweird.f32 %v268_v11 }
 0x183   :  { %v160_v16 = vmul.f32 %v270_v14, %v154_v6  ;;  %271 = vrsqrt.f32 %v157_v12  ;;  %vm166_vm3 = vweird.f32 %v270_v14  ;;  %vm187_vm5 = vmor %vm185_vm4, %vm186_vm2  ;;  %vm195_vm10 = vweird.f32 %v157_v12 }
 0x184   :  { %v181_v17 = vmul.f32 %v268_v11, %v180_v15  ;;  %273 = vrsqrt.f32 %v155_v13  ;;  %vm167_vm7 = vmor %vm165_vm6, %vm166_vm3  ;;  %vm175_vm12 = vweird.f32 %v155_v13 }
 0x185   :  { %v161_v18 = vmul.f32 %v270_v14, %v160_v16 }
 0x186   :  { %v182_v19 = vmul.f32 0.5, %v181_v17  ;;  %v148_v20 = vpop.xlane.xlu0 %147 }
 0x187   :  { %v162_v21 = vmul.f32 0.5, %v161_v18  ;;  %v153_v22 = vmul.f32 %v148_v20, %v118_v39 }
 0x188   :  { %v183_v23 = vsub.f32 1.5, %v182_v19 }
 0x189   :  { %v272_v24 = vpop.eup %271  ;;  %v163_v25 = vsub.f32 1.5, %v162_v21  ;;  %v158_v26 = vadd.f32 1e-05, %v153_v22 }
 0x18a   :  { %v274_v27 = vpop.eup %273  ;;  %v184_v28 = vmul.f32 %v268_v11, %v183_v23  ;;  %v190_v29 = vmul.f32 %v272_v24, %v157_v12  ;;  %vm196_vm8 = vweird.f32 %v272_v24 }
 0x18b   :  { %v164_v31 = vmul.f32 %v270_v14, %v163_v25  ;;  %v170_v32 = vmul.f32 %v274_v27, %v155_v13  ;;  %275 = vrsqrt.f32 %v158_v26  ;;  %vm176_vm9 = vweird.f32 %v274_v27  ;;  %vm197_vm11 = vmor %vm195_vm10, %vm196_vm8 }
 0x18c   :  { %v188_v33 = vsel %vm187_vm5, %v268_v11, %v184_v28  ;;  %v191_v34 = vmul.f32 %v272_v24, %v190_v29  ;;  %vm177_vm13 = vmor %vm175_vm12, %vm176_vm9  ;;  %vm205_vm15 = vweird.f32 %v158_v26 }
 0x18d   :  { %v211_v36 = vmul.f32 %v188_v33, %v351_v44  ;;  %v168_v37 = vsel %vm167_vm7, %v270_v14, %v164_v31  ;;  %v171_v38 = vmul.f32 %v274_v27, %v170_v32 }
 0x18e   :  { %v209_v39 = vmul.f32 %v168_v37, %v353_v45  ;;  %v192_v40 = vmul.f32 0.5, %v191_v34 }
 0x18f   :  { %v220_v41 = vmul.f32 %v263_v30, %v211_v36  ;;  %v172_v42 = vmul.f32 0.5, %v171_v38 }
 0x190   :  { %v218_v43 = vmul.f32 %v263_v30, %v209_v39  ;;  %v193_v46 = vsub.f32 1.5, %v192_v40 }
 0x191   :  { %v276_v47 = vpop.eup %275  ;;  %v229_v48 = vadd.f32 %v264_v35, %v220_v41  ;;  %v173_v49 = vsub.f32 1.5, %v172_v42 }
 0x192   :  { %v227_v50 = vadd.f32 %v264_v35, %v218_v43  ;;  %v194_v51 = vmul.f32 %v272_v24, %v193_v46  ;;  %v200_v52 = vmul.f32 %v276_v47, %v158_v26  ;;  %vm206_vm14 = vweird.f32 %v276_v47 }
 0x193   :  { %234 = vst.msk [vmem:[%s413_s6 + $0x10] sm:$0xff] %vm54_vm0, %v229_v48  ;;  %v174_v44 = vmul.f32 %v274_v27, %v173_v49  ;;  %vm207_vm1 = vmor %vm205_vm15, %vm206_vm14 }
 0x194   :  { %232 = vst.msk [vmem:[%s413_s6] sm:$0xff] %vm54_vm0, %v227_v50  ;;  %v198_v45 = vsel %vm197_vm11, %v272_v24, %v194_v51  ;;  %v201_v53 = vmul.f32 %v276_v47, %v200_v52 }
 0x195   :  { %v212_v54 = vmul.f32 %v198_v45, %v361_v56  ;;  %v178_v55 = vsel %vm177_vm13, %v274_v27, %v174_v44 }
 0x196   :  { %v210_v58 = vmul.f32 %v178_v55, %v363_v57  ;;  %v202_v59 = vmul.f32 0.5, %v201_v53 }
 0x197   :  { %v221_v61 = vmul.f32 %v263_v30, %v212_v54 }
 0x198   :  { %v219_v62 = vmul.f32 %v263_v30, %v210_v58  ;;  %v203_v63 = vsub.f32 1.5, %v202_v59 }
 0x199   :  { %v230_v0 = vadd.f32 %v264_v35, %v221_v61 }
 0x19a   :  { %v228_v1 = vadd.f32 %v264_v35, %v219_v62  ;;  %v204_v2 = vmul.f32 %v276_v47, %v203_v63 }
 0x19b   :  { %235 = vst.msk [vmem:[%s413_s6 + $0x18] sm:$0xff] %vm54_vm0, %v230_v0 }
 0x19c   :  { %233 = vst.msk [vmem:[%s413_s6 + $0x8] sm:$0xff] %vm54_vm0, %v228_v1  ;;  %v208_v56 = vsel %vm207_vm1, %v276_v47, %v204_v2 }
 0x19d   :  { %v213_v57 = vmul.f32 %v208_v56, %v369_v60 }
 0x19f   :  { %v222_v3 = vmul.f32 %v263_v30, %v213_v57 }
 0x1a1   :  { %v231_v4 = vadd.f32 %v264_v35, %v222_v3 }
 0x1a3   :  { %236 = vst.msk [vmem:[%s413_s6 + $0x20] sm:$0xff] %vm54_vm0, %v231_v4 }

// kernel: _lambda_.18
= control target key start
LH: loop header
LB: loop body
LE: loop exit
PB: predicated region body
PF: predicated region fallthrough
CT: control target
= control target key end

     0   :  { %vm167_vm0 = vcmask 130048   ;;  %s4153_s1 = inlined_call_operand.vmem [shape: bf16[16,2048], index: 1, kind: input, shape index: {}]   ;;  %s4154_s0 = inlined_call_operand.vmem [shape: f32[40,16], index: 0, kind: input, shape index: {}]   ;;  %s4155_s3 = inlined_call_operand.vmem [shape: bf16[2048,16], index: 3, kind: input, shape index: {}]   ;;  %s4156_s2 = inlined_call_operand.vmem [shape: f32[1,2048], index: 2, kind: input, shape index: {}]   ;;  %s4157_s4 = inlined_call_operand.vmem [shape: f32[1,16], index: 4, kind: input, shape index: {}, may-alias: {4,6}]   ;;  %s4158_s5 = inlined_call_operand.vmem [shape: f32[1,16], index: 5, kind: input, shape index: {}]   ;;  %s4159_s6 = inlined_call_operand.vmem [shape: f32[1,16], index: 6, kind: input, shape index: {}, may-alias: {4,6}]   ;;  %s4160_s7 = inlined_call_operand.vmem [shape: f32[40,16], index: 7, kind: output, shape index: {}]  }
   0x1   :  { %v2220_v0 = vld [vmem:[%s4153_s1] sm:$0xf]  ;;  %v2842_v2 = vld [vmem:[%s4153_s1 + $0x4] sm:$0xf]  ;;  %v2228_v5 = vld [vmem:[%s4153_s1 + $0x8] sm:$0xf] }
   0x2   :  { %v2850_v1 = vld [vmem:[%s4153_s1 + $0x3c] sm:$0xf0]  ;;  %v2222_v4 = vld [vmem:[%s4153_s1 + $0x40] sm:$0xf0]  ;;  %v2851_v6 = vld [vmem:[%s4153_s1 + $0x44] sm:$0xf0] }
   0x3   :  { %v2221_v3 = vor.u32 %v2850_v1, %v2220_v0  ;;  %v2225_v7 = vor.u32 %v2842_v2, %v2222_v4  ;;  %v2229_v8 = vor.u32 %v2851_v6, %v2228_v5  ;;  %v2843_v9 = vld [vmem:[%s4153_s1 + $0xc] sm:$0xf]  ;;  %v27_v11 = vld [vmem:[%s4154_s0] sm:$0xff]  ;;  %v2244_v14 = vld [vmem:[%s4153_s1 + $0x18] sm:$0xf] }
   0x4   :  { %v2230_v10 = vld [vmem:[%s4153_s1 + $0x48] sm:$0xf0]  ;;  %v2853_v15 = vld [vmem:[%s4153_s1 + $0x54] sm:$0xf0]  ;;  %v2236_v18 = vld [vmem:[%s4153_s1 + $0x10] sm:$0xf] }
   0x5   :  { %184 = vmatpush.bf16.msra.mxu0 %v2221_v3  ;;  %v2233_v12 = vor.u32 %v2843_v9, %v2230_v10  ;;  %v28_v13 = vld [vmem:[%s4154_s0 + $0x8] sm:$0xff]  ;;  %207 = vmatpush.bf16.msra.mxu1 %v2225_v7  ;;  %v2245_v17 = vor.u32 %v2853_v15, %v2244_v14  ;;  %v2852_v19 = vld [vmem:[%s4153_s1 + $0x4c] sm:$0xf0]  ;;  %v2845_v20 = vld [vmem:[%s4153_s1 + $0x1c] sm:$0xf] }
   0x6   :  { %230 = vmatpush.bf16.msra.mxu2 %v2229_v8  ;;  %v3084_v16 = vpack.c.bf16 %v28_v13, %v27_v11  ;;  %v2237_v21 = vor.u32 %v2852_v19, %v2236_v18  ;;  %v2246_v22 = vld [vmem:[%s4153_s1 + $0x58] sm:$0xf0]  ;;  %v2844_v23 = vld [vmem:[%s4153_s1 + $0x14] sm:$0xf]  ;;  %v2260_v30 = vld [vmem:[%s4153_s1 + $0x28] sm:$0xf] }
   0x7   :  { %253 = vmatpush.bf16.msra.mxu3 %v2233_v12  ;;  %v2238_v24 = vld [vmem:[%s4153_s1 + $0x50] sm:$0xf0]  ;;  %v2249_v25 = vor.u32 %v2845_v20, %v2246_v22  ;;  %v30_v28 = vld [vmem:[%s4154_s0 + $0x18] sm:$0xff]  ;;  %v2855_v31 = vld [vmem:[%s4153_s1 + $0x64] sm:$0xf0] }
   0x8   :  { %2282 = vmatmul.msk.bf16.vlgmr.msra.gmra.mxu0 %vm167_vm0, %v3084_v16  ;;  %v2241_v26 = vor.u32 %v2844_v23, %v2238_v24  ;;  %2285 = vmatmul.msk.bf16.vlgmr.msra.gmra.mxu1 %vm167_vm0, %v3084_v16  ;;  %v29_v27 = vld [vmem:[%s4154_s0 + $0x10] sm:$0xff]  ;;  %v2252_v32 = vld [vmem:[%s4153_s1 + $0x20] sm:$0xf]  ;;  %v2261_v33 = vor.u32 %v2855_v31, %v2260_v30  ;;  %v2847_v35 = vld [vmem:[%s4153_s1 + $0x2c] sm:$0xf] }
   0x9   :  { %2288 = vmatmul.msk.bf16.vlgmr.msra.gmra.mxu2 %vm167_vm0, %v3084_v16  ;;  %276 = vmatpush.bf16.msrb.mxu0 %v2237_v21  ;;  %v3118_v29 = vpack.c.bf16 %v30_v28, %v29_v27  ;;  %v2854_v34 = vld [vmem:[%s4153_s1 + $0x5c] sm:$0xf0]  ;;  %v2262_v36 = vld [vmem:[%s4153_s1 + $0x68] sm:$0xf0]  ;;  %v2846_v39 = vld [vmem:[%s4153_s1 + $0x24] sm:$0xf] }
   0xa   :  { %322 = vmatpush.bf16.msrb.mxu2 %v2245_v17  ;;  %2291 = vmatmul.msk.bf16.vlgmr.msra.gmra.mxu3 %vm167_vm0, %v3084_v16  ;;  %v2253_v37 = vor.u32 %v2854_v34, %v2252_v32  ;;  %v2265_v38 = vor.u32 %v2847_v35, %v2262_v36  ;;  %v2254_v40 = vld [vmem:[%s4153_s1 + $0x60] sm:$0xf0]  ;;  %v2276_v44 = vld [vmem:[%s4153_s1 + $0x38] sm:$0xf]  ;;  %v2268_v46 = vld [vmem:[%s4153_s1 + $0x30] sm:$0xf] }
   0xb   :  { %345 = vmatpush.bf16.msrb.mxu3 %v2249_v25  ;;  %299 = vmatpush.bf16.msrb.mxu1 %v2241_v26  ;;  %v2257_v41 = vor.u32 %v2846_v39, %v2254_v40  ;;  %v31_v42 = vld [vmem:[%s4154_s0 + $0x20] sm:$0xff]  ;;  %v2857_v45 = vld [vmem:[%s4153_s1 + $0x74] sm:$0xf0]  ;;  %v2856_v48 = vld [vmem:[%s4153_s1 + $0x6c] sm:$0xf0] }
   0xc   :  { %v3155_v43 = vpack.c.bf16 %v31_v42, %v31_v42  ;;  %v2277_v47 = vor.u32 %v2857_v45, %v2276_v44  ;;  %v2849_v49 = vld [vmem:[%s4153_s1 + $0x3c] sm:$0xf]  ;;  %v2269_v51 = vor.u32 %v2856_v48, %v2268_v46  ;;  %v2848_v53 = vld [vmem:[%s4153_s1 + $0x34] sm:$0xf]  ;;  %v2879_v2 = vld [vmem:[%s4155_s3 + $0xa8] sm:$0xff] }
   0xd   :  { %368 = vmatpush.bf16.msra.mxu0 %v2253_v37  ;;  %v2278_v50 = vld [vmem:[%s4153_s1 + $0x78] sm:$0xf0]  ;;  %v2270_v54 = vld [vmem:[%s4153_s1 + $0x70] sm:$0xf0]  ;;  %v2863_v3 = vld [vmem:[%s4155_s3 + $0x28] sm:$0xff] }
   0xe   :  { %414 = vmatpush.bf16.msra.mxu2 %v2261_v33  ;;  %v2281_v52 = vor.u32 %v2849_v49, %v2278_v50  ;;  %v2273_v55 = vor.u32 %v2848_v53, %v2270_v54  ;;  %v2881_v56 = vld [vmem:[%s4155_s3 + $0xb8] sm:$0xff]  ;;  %v2880_v60 = vld [vmem:[%s4155_s3 + $0xb0] sm:$0xff]  ;;  %v2887_v4 = vld [vmem:[%s4155_s3 + $0xe8] sm:$0xff] }
   0xf   :  { %437 = vmatpush.bf16.msra.mxu3 %v2265_v38  ;;  %391 = vmatpush.bf16.msra.mxu1 %v2257_v41  ;;  %v2865_v57 = vld [vmem:[%s4155_s3 + $0x38] sm:$0xff]  ;;  %v2864_v61 = vld [vmem:[%s4155_s3 + $0x30] sm:$0xff]  ;;  %v2871_v5 = vld [vmem:[%s4155_s3 + $0x68] sm:$0xff] }
  0x10   :  { %v2889_v58 = vld [vmem:[%s4155_s3 + $0xf8] sm:$0xff]  ;;  %v2888_v62 = vld [vmem:[%s4155_s3 + $0xf0] sm:$0xff]  ;;  %v2878_v7 = vld [vmem:[%s4155_s3 + $0xa0] sm:$0xff] }
  0x11   :  { %v2873_v59 = vld [vmem:[%s4155_s3 + $0x78] sm:$0xff]  ;;  %v2872_v63 = vld [vmem:[%s4155_s3 + $0x70] sm:$0xff]  ;;  %v2862_v11 = vld [vmem:[%s4155_s3 + $0x20] sm:$0xff] }
  0x12   :  { %v2886_v12 = vld [vmem:[%s4155_s3 + $0xe0] sm:$0xff]  ;;  %v2877_v14 = vld [vmem:[%s4155_s3 + $0x98] sm:$0xff]  ;;  %v2876_v23 = vld [vmem:[%s4155_s3 + $0x90] sm:$0xff] }
  0x13   :  { %v2870_v13 = vld [vmem:[%s4155_s3 + $0x60] sm:$0xff]  ;;  %v2885_v17 = vld [vmem:[%s4155_s3 + $0xd8] sm:$0xff]  ;;  %v2860_v24 = vld [vmem:[%s4155_s3 + $0x10] sm:$0xff] }
  0x14   :  { %v2861_v21 = vld [vmem:[%s4155_s3 + $0x18] sm:$0xff]  ;;  %v2884_v25 = vld [vmem:[%s4155_s3 + $0xd0] sm:$0xff]  ;;  %v2875_v31 = vld [vmem:[%s4155_s3 + $0x88] sm:$0xff] }
  0x15   :  { %v2869_v22 = vld [vmem:[%s4155_s3 + $0x58] sm:$0xff]  ;;  %v2868_v26 = vld [vmem:[%s4155_s3 + $0x50] sm:$0xff]  ;;  %v2859_v32 = vld [vmem:[%s4155_s3 + $0x8] sm:$0xff] }
  0x16   :  { %v2883_v33 = vld [vmem:[%s4155_s3 + $0xc8] sm:$0xff]  ;;  %v2874_v35 = vld [vmem:[%s4155_s3 + $0x80] sm:$0xff]  ;;  %v2913_v44 = vld [vmem:[%s4155_s3 + $0x1b8] sm:$0xff] }
  0x17   :  { %v2867_v34 = vld [vmem:[%s4155_s3 + $0x48] sm:$0xff]  ;;  %v2858_v39 = vld [vmem:[%s4155_s3] sm:$0xff]  ;;  %v2897_v45 = vld [vmem:[%s4155_s3 + $0x138] sm:$0xff] }
  0x18   :  { %2283 = vmatmul.msk.bf16.gmra.mxu0 %vm167_vm0, %v3118_v29  ;;  %2286 = vmatmul.msk.bf16.gmra.mxu1 %vm167_vm0, %v3118_v29  ;;  %v2882_v40 = vld [vmem:[%s4155_s3 + $0xc0] sm:$0xff]  ;;  %v2921_v46 = vld [vmem:[%s4155_s3 + $0x1f8] sm:$0xff]  ;;  %v2920_v53 = vld [vmem:[%s4155_s3 + $0x1f0] sm:$0xff] }
  0x19   :  { %2289 = vmatmul.msk.bf16.gmra.mxu2 %vm167_vm0, %v3118_v29  ;;  %v2866_v41 = vld [vmem:[%s4155_s3 + $0x40] sm:$0xff]  ;;  %v2905_v50 = vld [vmem:[%s4155_s3 + $0x178] sm:$0xff]  ;;  %v2904_v54 = vld [vmem:[%s4155_s3 + $0x170] sm:$0xff] }
  0x1a   :  { %2292 = vmatmul.msk.bf16.gmra.mxu3 %vm167_vm0, %v3118_v29 }
  0x28   :  { %2284 = vmatmul.msk.bf16.gmra.mxu0 %vm167_vm0, %v3155_v43  ;;  %2287 = vmatmul.msk.bf16.gmra.mxu1 %vm167_vm0, %v3155_v43 }
  0x29   :  { %2290 = vmatmul.msk.bf16.gmra.mxu2 %vm167_vm0, %v3155_v43 }
  0x2a   :  { %2293 = vmatmul.msk.bf16.gmra.mxu3 %vm167_vm0, %v3155_v43 }
  0x38   :  { %2294 = vmatmul.msk.bf16.vlgmr.msrb.gmra.mxu0 %vm167_vm0, %v3084_v16  ;;  %2297 = vmatmul.msk.bf16.vlgmr.msrb.gmra.mxu1 %vm167_vm0, %v3084_v16 }
  0x39   :  { %2300 = vmatmul.msk.bf16.vlgmr.msrb.gmra.mxu2 %vm167_vm0, %v3084_v16  ;;  %460 = vmatpush.bf16.msrb.mxu0 %v2269_v51  ;;  %v2912_v51 = vld [vmem:[%s4155_s3 + $0x1b0] sm:$0xff] }
  0x3a   :  { %2303 = vmatmul.msk.bf16.vlgmr.msrb.gmra.mxu3 %vm167_vm0, %v3084_v16  ;;  %506 = vmatpush.bf16.msrb.mxu2 %v2277_v47 }
  0x3b   :  { %529 = vmatpush.bf16.msrb.mxu3 %v2281_v52  ;;  %483 = vmatpush.bf16.msrb.mxu1 %v2273_v55  ;;  %v2896_v52 = vld [vmem:[%s4155_s3 + $0x130] sm:$0xff] }
  0x48   :  { %2295 = vmatmul.msk.bf16.gmra.mxu0 %vm167_vm0, %v3118_v29  ;;  %2298 = vmatmul.msk.bf16.gmra.mxu1 %vm167_vm0, %v3118_v29 }
  0x49   :  { %2301 = vmatmul.msk.bf16.gmra.mxu2 %vm167_vm0, %v3118_v29 }
  0x4a   :  { %2304 = vmatmul.msk.bf16.gmra.mxu3 %vm167_vm0, %v3118_v29 }
  0x58   :  { %2296 = vmatmul.msk.bf16.gmra.mxu0 %vm167_vm0, %v3155_v43  ;;  %2299 = vmatmul.msk.bf16.gmra.mxu1 %vm167_vm0, %v3155_v43 }
  0x59   :  { %2302 = vmatmul.msk.bf16.gmra.mxu2 %vm167_vm0, %v3155_v43 }
  0x5a   :  { %2305 = vmatmul.msk.bf16.gmra.mxu3 %vm167_vm0, %v3155_v43 }
  0x68   :  { %2306 = vmatmul.msk.bf16.vlgmr.msra.gmra.mxu0 %vm167_vm0, %v3084_v16  ;;  %2309 = vmatmul.msk.bf16.vlgmr.msra.gmra.mxu1 %vm167_vm0, %v3084_v16 }
  0x69   :  { %2312 = vmatmul.msk.bf16.vlgmr.msra.gmra.mxu2 %vm167_vm0, %v3084_v16  ;;  %1701 = vmatpush.bf16.msra.mxu0 %v2865_v57 }
  0x6a   :  { %2315 = vmatmul.msk.bf16.vlgmr.msra.gmra.mxu3 %vm167_vm0, %v3084_v16  ;;  %1747 = vmatpush.bf16.msra.mxu2 %v2881_v56 }
  0x6b   :  { %1770 = vmatpush.bf16.msra.mxu3 %v2889_v58  ;;  %1724 = vmatpush.bf16.msra.mxu1 %v2873_v59  ;;  %v2911_v59 = vld [vmem:[%s4155_s3 + $0x1a8] sm:$0xff] }
  0x6d   :  { %1702 = vmatpush.bf16.msra.mxu0 %v2864_v61  ;;  %v2895_v61 = vld [vmem:[%s4155_s3 + $0x128] sm:$0xff] }
  0x6e   :  { %1748 = vmatpush.bf16.msra.mxu2 %v2880_v60  ;;  %v3425_v60 = vld [vmem:[%s4156_s2] sm:$0xff] }
  0x6f   :  { %1771 = vmatpush.bf16.msra.mxu3 %v2888_v62  ;;  %1725 = vmatpush.bf16.msra.mxu1 %v2872_v63  ;;  %v2919_v62 = vld [vmem:[%s4155_s3 + $0x1e8] sm:$0xff] }
  0x70   :  { %v2903_v63 = vld [vmem:[%s4155_s3 + $0x168] sm:$0xff] }
  0x71   :  { %1703 = vmatpush.bf16.msra.mxu0 %v2863_v3 }
  0x72   :  { %1749 = vmatpush.bf16.msra.mxu2 %v2879_v2  ;;  %v3443_v2 = vperm.slane %v3425_v60, 0 }
  0x73   :  { %1772 = vmatpush.bf16.msra.mxu3 %v2887_v4  ;;  %1726 = vmatpush.bf16.msra.mxu1 %v2871_v5  ;;  %v3451_v4 = vperm.slane %v3425_v60, 1  ;;  %v3454_v5 = vperm.slane %v3425_v60, 2 }
  0x75   :  { %1704 = vmatpush.bf16.msra.mxu0 %v2862_v11 }
  0x76   :  { %1750 = vmatpush.bf16.msra.mxu2 %v2878_v7 }
  0x77   :  { %1773 = vmatpush.bf16.msra.mxu3 %v2886_v12  ;;  %1727 = vmatpush.bf16.msra.mxu1 %v2870_v13  ;;  %v3461_v12 = vperm.slane %v3425_v60, 3 }
  0x78   :  { %2307 = vmatmul.msk.bf16.gmra.mxu0 %vm167_vm0, %v3118_v29  ;;  %2310 = vmatmul.msk.bf16.gmra.mxu1 %vm167_vm0, %v3118_v29 }
  0x79   :  { %2313 = vmatmul.msk.bf16.gmra.mxu2 %vm167_vm0, %v3118_v29  ;;  %1705 = vmatpush.bf16.msra.mxu0 %v2861_v21 }
  0x7a   :  { %2316 = vmatmul.msk.bf16.gmra.mxu3 %vm167_vm0, %v3118_v29  ;;  %1751 = vmatpush.bf16.msra.mxu2 %v2877_v14 }
  0x7b   :  { %1774 = vmatpush.bf16.msra.mxu3 %v2885_v17  ;;  %1728 = vmatpush.bf16.msra.mxu1 %v2869_v22 }
  0x7d   :  { %1706 = vmatpush.bf16.msra.mxu0 %v2860_v24 }
  0x7e   :  { %1752 = vmatpush.bf16.msra.mxu2 %v2876_v23 }
  0x7f   :  { %1775 = vmatpush.bf16.msra.mxu3 %v2884_v25  ;;  %1729 = vmatpush.bf16.msra.mxu1 %v2868_v26 }
  0x81   :  { %1707 = vmatpush.bf16.msra.mxu0 %v2859_v32 }
  0x82   :  { %1753 = vmatpush.bf16.msra.mxu2 %v2875_v31 }
  0x83   :  { %1776 = vmatpush.bf16.msra.mxu3 %v2883_v33  ;;  %1730 = vmatpush.bf16.msra.mxu1 %v2867_v34  ;;  %v2917_v33 = vld [vmem:[%s4155_s3 + $0x1d8] sm:$0xff] }
  0x85   :  { %v3253_v0 = vpop.f32.mrf.mxu0  ;;  %v3255_v1 = vpop.f32.mrf.mxu1  ;;  %1708 = vmatpush.bf16.msra.mxu0 %v2858_v39 }
  0x86   :  { %1754 = vmatpush.bf16.msra.mxu2 %v2874_v35  ;;  %v187_v22 = vadd.f32 %v3253_v0, %v3443_v2  ;;  %v210_v24 = vadd.f32 %v3255_v1, %v3451_v4  ;;  %v2918_v0 = vld [vmem:[%s4155_s3 + $0x1e0] sm:$0xff] }
  0x87   :  { %1777 = vmatpush.bf16.msra.mxu3 %v2882_v40  ;;  %1731 = vmatpush.bf16.msra.mxu1 %v2866_v41 }
  0x88   :  { %2308 = vmatmul.msk.bf16.gmra.mxu0 %vm167_vm0, %v3155_v43  ;;  %2311 = vmatmul.msk.bf16.gmra.mxu1 %vm167_vm0, %v3155_v43  ;;  %v546_v34 = vmax.f32 %v210_v24, 0.0 }
  0x89   :  { %2314 = vmatmul.msk.bf16.gmra.mxu2 %vm167_vm0, %v3155_v43 }
  0x8a   :  { %2317 = vmatmul.msk.bf16.gmra.mxu3 %vm167_vm0, %v3155_v43 }
  0x8c   :  { %v3277_v6 = vpop.f32.mrf.mxu2 }
  0x8d   :  { %v3282_v8 = vpop.f32.mrf.mxu3  ;;  %v3284_v9 = vpop.f32.mrf.mxu0 }
  0x8e   :  { %v3286_v10 = vpop.f32.mrf.mxu1  ;;  %v189_v13 = vadd.f32 %v3284_v9, %v3443_v2  ;;  %v233_v9 = vadd.f32 %v3277_v6, %v3454_v5  ;;  %v256_v25 = vadd.f32 %v3282_v8, %v3461_v12  ;;  %v2909_v6 = vld [vmem:[%s4155_s3 + $0x198] sm:$0xff]  ;;  %v545_v8 = vmax.f32 %v187_v22, 0.0 }
  0x8f   :  { %v212_v17 = vadd.f32 %v3286_v10, %v3451_v4  ;;  %v2894_v10 = vld [vmem:[%s4155_s3 + $0x120] sm:$0xff] }
  0x90   :  { %v561_v26 = vmax.f32 %v189_v13, 0.0  ;;  %v547_v35 = vmax.f32 %v233_v9, 0.0  ;;  %v548_v41 = vmax.f32 %v256_v25, 0.0 }
  0x91   :  { %v562_v1 = vmax.f32 %v212_v17, 0.0 }
  0x94   :  { %v3300_v15 = vpop.f32.mrf.mxu2 }
  0x95   :  { %v3305_v18 = vpop.f32.mrf.mxu3  ;;  %v3307_v19 = vpop.f32.mrf.mxu0  ;;  %v235_v21 = vadd.f32 %v3300_v15, %v3454_v5  ;;  %v2902_v15 = vld [vmem:[%s4155_s3 + $0x160] sm:$0xff] }
  0x96   :  { %v3309_v20 = vpop.f32.mrf.mxu1  ;;  %v258_v23 = vadd.f32 %v3305_v18, %v3461_v12  ;;  %v192_v17 = vadd.f32 %v3307_v19, %v3443_v2  ;;  %v2915_v19 = vld [vmem:[%s4155_s3 + $0x1c8] sm:$0xff] }
  0x97   :  { %v563_v18 = vmax.f32 %v235_v21, 0.0  ;;  %v215_v22 = vadd.f32 %v3309_v20, %v3451_v4 }
  0x98   :  { %2318 = vmatmul.msk.bf16.vlgmr.msrb.gmra.mxu0 %vm167_vm0, %v3084_v16  ;;  %2321 = vmatmul.msk.bf16.vlgmr.msrb.gmra.mxu1 %vm167_vm0, %v3084_v16  ;;  %v564_v31 = vmax.f32 %v258_v23, 0.0  ;;  %v577_v25 = vmax.f32 %v192_v17, 0.0  ;;  %v2944_v17 = vld [vmem:[%s4155_s3 + $0x2b0] sm:$0xff] }
  0x99   :  { %2324 = vmatmul.msk.bf16.vlgmr.msrb.gmra.mxu2 %vm167_vm0, %v3084_v16  ;;  %1793 = vmatpush.bf16.msrb.mxu0 %v2897_v45 }
  0x9a   :  { %2327 = vmatmul.msk.bf16.vlgmr.msrb.gmra.mxu3 %vm167_vm0, %v3084_v16  ;;  %1839 = vmatpush.bf16.msrb.mxu2 %v2913_v44  ;;  %v625_v44 = vpack.c.bf16 %v561_v26, %v545_v8  ;;  %v2898_v8 = vld [vmem:[%s4155_s3 + $0x140] sm:$0xff] }
  0x9b   :  { %1862 = vmatpush.bf16.msrb.mxu3 %v2921_v46  ;;  %1816 = vmatpush.bf16.msrb.mxu1 %v2905_v50  ;;  %v2893_v46 = vld [vmem:[%s4155_s3 + $0x118] sm:$0xff] }
  0x9c   :  { %v3337_v27 = vpop.f32.mrf.mxu2  ;;  %v2901_v50 = vld [vmem:[%s4155_s3 + $0x158] sm:$0xff] }
  0x9d   :  { %v3339_v28 = vpop.f32.mrf.mxu3  ;;  %v3341_v16 = vpop.f32.mrf.mxu0  ;;  %1794 = vmatpush.bf16.msrb.mxu0 %v2896_v52  ;;  %v2908_v52 = vld [vmem:[%s4155_s3 + $0x190] sm:$0xff] }
  0x9e   :  { %v3343_v30 = vpop.f32.mrf.mxu1  ;;  %1840 = vmatpush.bf16.msrb.mxu2 %v2912_v51  ;;  %v628_v51 = vpack.c.bf16 %v564_v31, %v548_v41  ;;  %v261_v23 = vadd.f32 %v3339_v28, %v3461_v12 }
  0x9f   :  { %1863 = vmatpush.bf16.msrb.mxu3 %v2920_v53  ;;  %1817 = vmatpush.bf16.msrb.mxu1 %v2904_v54  ;;  %v2892_v53 = vld [vmem:[%s4155_s3 + $0x110] sm:$0xff] }
  0xa0   :  { %v2916_v54 = vld [vmem:[%s4155_s3 + $0x1d0] sm:$0xff]  ;;  %v580_v31 = vmax.f32 %v261_v23, 0.0  ;;  %v2943_v23 = vld [vmem:[%s4155_s3 + $0x2a8] sm:$0xff] }
  0xa1   :  { %1795 = vmatpush.bf16.msrb.mxu0 %v2895_v61 }
  0xa2   :  { %1841 = vmatpush.bf16.msrb.mxu2 %v2911_v59 }
  0xa3   :  { %1864 = vmatpush.bf16.msrb.mxu3 %v2919_v62  ;;  %1818 = vmatpush.bf16.msrb.mxu1 %v2903_v63  ;;  %v194_v62 = vadd.f32 %v3341_v16, %v3443_v2  ;;  %v2907_v16 = vld [vmem:[%s4155_s3 + $0x188] sm:$0xff] }
  0xa4   :  { %v3360_v36 = vpop.f32.mrf.mxu2 }
  0xa5   :  { %v3362_v37 = vpop.f32.mrf.mxu3  ;;  %v3364_v38 = vpop.f32.mrf.mxu0  ;;  %1796 = vmatpush.bf16.msrb.mxu0 %v2894_v10  ;;  %v240_v13 = vadd.f32 %v3360_v36, %v3454_v5  ;;  %v2891_v36 = vld [vmem:[%s4155_s3 + $0x108] sm:$0xff]  ;;  %v593_v24 = vmax.f32 %v194_v62, 0.0 }
  0xa6   :  { %v3375_v42 = vpop.f32.mrf.mxu1  ;;  %v263_v21 = vadd.f32 %v3362_v37, %v3461_v12  ;;  %v2899_v37 = vld [vmem:[%s4155_s3 + $0x148] sm:$0xff] }
  0xa7   :  { %1865 = vmatpush.bf16.msrb.mxu3 %v2918_v0  ;;  %1819 = vmatpush.bf16.msrb.mxu1 %v2902_v15  ;;  %v595_v9 = vmax.f32 %v240_v13, 0.0  ;;  %v578_v0 = vmax.f32 %v215_v22, 0.0  ;;  %v2937_v13 = vld [vmem:[%s4155_s3 + $0x278] sm:$0xff] }
  0xa8   :  { %2319 = vmatmul.msk.bf16.gmra.mxu0 %vm167_vm0, %v3118_v29  ;;  %2322 = vmatmul.msk.bf16.gmra.mxu1 %vm167_vm0, %v3118_v29  ;;  %v596_v26 = vmax.f32 %v263_v21, 0.0 }
  0xa9   :  { %2325 = vmatmul.msk.bf16.gmra.mxu2 %vm167_vm0, %v3118_v29  ;;  %1797 = vmatpush.bf16.msrb.mxu0 %v2893_v46  ;;  %v2945_v46 = vld [vmem:[%s4155_s3 + $0x2b8] sm:$0xff] }
  0xaa   :  { %2328 = vmatmul.msk.bf16.gmra.mxu3 %vm167_vm0, %v3118_v29 }
  0xab   :  { %1866 = vmatpush.bf16.msrb.mxu3 %v2917_v33  ;;  %1820 = vmatpush.bf16.msrb.mxu1 %v2901_v50 }
  0xac   :  { %v3394_v47 = vpop.f32.mrf.mxu2 }
  0xad   :  { %v3396_v48 = vpop.f32.mrf.mxu3  ;;  %v198_v49 = vpop.f32.mrf.mxu0  ;;  %1798 = vmatpush.bf16.msrb.mxu0 %v2892_v53  ;;  %v197_v53 = vadd.f32 %v3364_v38, %v3443_v2  ;;  %v243_v62 = vadd.f32 %v3394_v47, %v3454_v5  ;;  %v2928_v38 = vld [vmem:[%s4155_s3 + $0x230] sm:$0xff] }
  0xae   :  { %v221_v29 = vpop.f32.mrf.mxu1  ;;  %v626_v49 = vpack.c.bf16 %v562_v1, %v546_v34  ;;  %v641_v34 = vpack.c.bf16 %v593_v24, %v577_v25  ;;  %v2927_v24 = vld [vmem:[%s4155_s3 + $0x228] sm:$0xff] }
  0xaf   :  { %v627_v29 = vpack.c.bf16 %v563_v18, %v547_v35  ;;  %1867 = vmatpush.bf16.msrb.mxu3 %v2916_v54  ;;  %v2890_v18 = vld [vmem:[%s4155_s3 + $0x100] sm:$0xff]  ;;  %v609_v47 = vmax.f32 %v197_v53, 0.0 }
  0xb1   :  { %1799 = vmatpush.bf16.msrb.mxu0 %v2891_v36  ;;  %v657_v22 = vpack.c.bf16 %v609_v47, %v609_v47  ;;  %v2925_v47 = vld [vmem:[%s4155_s3 + $0x218] sm:$0xff] }
  0xb3   :  { %1868 = vmatpush.bf16.msrb.mxu3 %v2915_v19 }
  0xb4   :  { %v244_v55 = vpop.f32.mrf.mxu2 }
  0xb5   :  { %v267_v56 = vpop.f32.mrf.mxu3  ;;  %v3413_v57 = vpop.f32.mrf.mxu0  ;;  %v2900_v55 = vld [vmem:[%s4155_s3 + $0x150] sm:$0xff]  ;;  %1800 = vmatpush.bf16.msrb.mxu0 %v2890_v18 }
  0xb6   :  { %v3415_v58 = vpop.f32.mrf.mxu1  ;;  %1821 = vmatpush.bf16.msrb.mxu1 %v2900_v55  ;;  %v220_v55 = vadd.f32 %v3375_v42, %v3451_v4  ;;  %v2952_v42 = vld [vmem:[%s4155_s3 + $0x2f0] sm:$0xff] }
  0xb8   :  { %2320 = vmatmul.msk.bf16.gmra.mxu0 %vm167_vm0, %v3155_v43  ;;  %2323 = vmatmul.msk.bf16.gmra.mxu1 %vm167_vm0, %v3155_v43  ;;  %v610_v2 = vmax.f32 %v220_v55, 0.0 }
  0xb9   :  { %2326 = vmatmul.msk.bf16.gmra.mxu2 %vm167_vm0, %v3155_v43 }
  0xba   :  { %2329 = vmatmul.msk.bf16.gmra.mxu3 %vm167_vm0, %v3155_v43  ;;  %v2910_v43 = vld [vmem:[%s4155_s3 + $0x1a0] sm:$0xff]  ;;  %1822 = vmatpush.bf16.msrb.mxu1 %v2899_v37  ;;  %v658_v36 = vpack.c.bf16 %v610_v2, %v610_v2 }
  0xbb   :  { %1842 = vmatpush.bf16.msrb.mxu2 %v2910_v43  ;;  %v217_v43 = vadd.f32 %v3343_v30, %v3451_v4  ;;  %v238_v30 = vadd.f32 %v3337_v27, %v3454_v5  ;;  %v2906_v27 = vld [vmem:[%s4155_s3 + $0x180] sm:$0xff]  ;;  %v611_v4 = vmax.f32 %v243_v62, 0.0 }
  0xbc   :  { %v3445_v3 = vpop.f32.mrf.mxu2 }
  0xbd   :  { %v3456_v7 = vpop.f32.mrf.mxu3  ;;  %v3458_v11 = vpop.f32.mrf.mxu0  ;;  %v594_v20 = vmax.f32 %v217_v43, 0.0  ;;  %v579_v15 = vmax.f32 %v238_v30, 0.0  ;;  %v266_v43 = vadd.f32 %v3396_v48, %v3461_v12  ;;  %v2936_v48 = vld [vmem:[%s4155_s3 + $0x270] sm:$0xff]  ;;  %v659_v19 = vpack.c.bf16 %v611_v4, %v611_v4  ;;  %v2933_v4 = vld [vmem:[%s4155_s3 + $0x258] sm:$0xff] }
  0xbe   :  { %v3465_v14 = vpop.f32.mrf.mxu1  ;;  %1823 = vmatpush.bf16.msrb.mxu1 %v2898_v8  ;;  %v3649_v8 = vperm.slane %v3425_v60, 7 }
  0xbf   :  { %1843 = vmatpush.bf16.msrb.mxu2 %v2909_v6  ;;  %v2914_v6 = vld [vmem:[%s4155_s3 + $0x1c0] sm:$0xff]  ;;  %v642_v35 = vpack.c.bf16 %v594_v20, %v578_v0  ;;  %v643_v41 = vpack.c.bf16 %v595_v9, %v579_v15  ;;  %v612_v5 = vmax.f32 %v266_v43, 0.0  ;;  %v2951_v20 = vld [vmem:[%s4155_s3 + $0x2e8] sm:$0xff]  ;;  %v3639_v0 = vperm.slane %v3425_v60, 5 }
  0xc0   :  { %1869 = vmatpush.bf16.msrb.mxu3 %v2914_v6  ;;  %v2935_v9 = vld [vmem:[%s4155_s3 + $0x268] sm:$0xff]  ;;  %v3642_v15 = vperm.slane %v3425_v60, 6 }
  0xc1   :  { %v660_v37 = vpack.c.bf16 %v612_v5, %v612_v5 }
  0xc3   :  { %1844 = vmatpush.bf16.msrb.mxu2 %v2908_v52 }
  0xc4   :  { %v3493_v32 = vpop.f32.mrf.mxu2 }
  0xc5   :  { %v3498_v39 = vpop.f32.mrf.mxu3  ;;  %v3500_v40 = vpop.f32.mrf.mxu0 }
  0xc6   :  { %v3502_v45 = vpop.f32.mrf.mxu1 }
  0xc7   :  { %1845 = vmatpush.bf16.msrb.mxu2 %v2907_v16 }
  0xc8   :  { %1709 = vmatmul.bf16.vlgmr.msra.gmra.mxu0 %v625_v44  ;;  %1732 = vmatmul.bf16.vlgmr.msra.gmra.mxu1 %v626_v49  ;;  %v644_v44 = vpack.c.bf16 %v596_v26, %v580_v31  ;;  %v2929_v49 = vld [vmem:[%s4155_s3 + $0x238] sm:$0xff]  ;;  %v2942_v26 = vld [vmem:[%s4155_s3 + $0x2a0] sm:$0xff] }
  0xc9   :  { %1755 = vmatmul.bf16.vlgmr.msra.gmra.mxu2 %v627_v29  ;;  %v2953_v29 = vld [vmem:[%s4155_s3 + $0x2f8] sm:$0xff]  ;;  %1885 = vmatpush.bf16.msra.mxu0 %v2929_v49  ;;  %v348_v49 = vadd.f32 %v3456_v7, %v3649_v8 }
  0xca   :  { %1778 = vmatmul.bf16.vlgmr.msra.gmra.mxu3 %v628_v51  ;;  %1908 = vmatpush.bf16.msra.mxu1 %v2937_v13 }
  0xcb   :  { %1846 = vmatpush.bf16.msrb.mxu2 %v2906_v27  ;;  %1954 = vmatpush.bf16.msra.mxu3 %v2953_v29  ;;  %v3631_v27 = vperm.slane %v3425_v60, 4  ;;  %v350_v60 = vadd.f32 %v3498_v39, %v3649_v8 }
  0xcc   :  { %v3522_v56 = vpop.f32.mrf.mxu2 }
  0xcd   :  { %v3524_v59 = vpop.f32.mrf.mxu3  ;;  %v3526_v61 = vpop.f32.mrf.mxu0  ;;  %1886 = vmatpush.bf16.msra.mxu0 %v2928_v38  ;;  %v281_v31 = vadd.f32 %v3458_v11, %v3631_v27  ;;  %v325_v11 = vadd.f32 %v3445_v3, %v3642_v15  ;;  %v2941_v3 = vld [vmem:[%s4155_s3 + $0x298] sm:$0xff] }
  0xce   :  { %v3530_v63 = vpop.f32.mrf.mxu1  ;;  %1909 = vmatpush.bf16.msra.mxu1 %v2936_v48 }
  0xcf   :  { %1931 = vmatpush.bf16.msra.mxu2 %v2945_v46  ;;  %1955 = vmatpush.bf16.msra.mxu3 %v2952_v42  ;;  %v302_v46 = vadd.f32 %v3415_v58, %v3639_v0  ;;  %v565_v29 = vmax.f32 %v281_v31, 0.0  ;;  %v551_v62 = vmax.f32 %v325_v11, 0.0  ;;  %v284_v31 = vadd.f32 %v3500_v40, %v3631_v27  ;;  %v2947_v40 = vld [vmem:[%s4155_s3 + $0x2c8] sm:$0xff] }
  0xd1   :  { %1887 = vmatpush.bf16.msra.mxu0 %v2927_v24  ;;  %v550_v55 = vmax.f32 %v302_v46, 0.0  ;;  %v286_v24 = vadd.f32 %v3526_v61, %v3631_v27  ;;  %v2939_v61 = vld [vmem:[%s4155_s3 + $0x288] sm:$0xff]  ;;  %v581_v11 = vmax.f32 %v284_v31, 0.0 }
  0xd2   :  { %1910 = vmatpush.bf16.msra.mxu1 %v2935_v9  ;;  %v309_v9 = vadd.f32 %v3530_v63, %v3639_v0  ;;  %v330_v63 = vadd.f32 %v3522_v56, %v3642_v15  ;;  %v2938_v56 = vld [vmem:[%s4155_s3 + $0x280] sm:$0xff] }
  0xd3   :  { %1932 = vmatpush.bf16.msra.mxu2 %v2944_v17  ;;  %1956 = vmatpush.bf16.msra.mxu3 %v2951_v20  ;;  %v552_v17 = vmax.f32 %v348_v49, 0.0 }
  0xd4   :  { %v3561_v10 = vpop.f32.mrf.mxu2 }
  0xd5   :  { %v3563_v1 = vpop.f32.mrf.mxu3  ;;  %v3565_v28 = vpop.f32.mrf.mxu0 }
  0xd6   :  { %v3576_v33 = vpop.f32.mrf.mxu1 }
  0xd7   :  { %1933 = vmatpush.bf16.msra.mxu2 %v2943_v23 }
  0xd8   :  { %1714 = vmatmul.bf16.gmra.mxu0 %v641_v34  ;;  %1737 = vmatmul.bf16.gmra.mxu1 %v642_v35  ;;  %v304_v35 = vadd.f32 %v3465_v14, %v3639_v0  ;;  %v2926_v14 = vld [vmem:[%s4155_s3 + $0x220] sm:$0xff] }
  0xd9   :  { %1760 = vmatmul.bf16.gmra.mxu2 %v643_v41  ;;  %v327_v41 = vadd.f32 %v3493_v32, %v3642_v15  ;;  %v2934_v32 = vld [vmem:[%s4155_s3 + $0x260] sm:$0xff]  ;;  %1888 = vmatpush.bf16.msra.mxu0 %v2926_v14 }
  0xda   :  { %1783 = vmatmul.bf16.gmra.mxu3 %v644_v44  ;;  %v279_v44 = vadd.f32 %v3413_v57, %v3631_v27  ;;  %v2950_v57 = vld [vmem:[%s4155_s3 + $0x2e0] sm:$0xff]  ;;  %v566_v58 = vmax.f32 %v304_v35, 0.0  ;;  %1911 = vmatpush.bf16.msra.mxu1 %v2934_v32  ;;  %v355_v35 = vadd.f32 %v3563_v1, %v3649_v8  ;;  %v2931_v1 = vld [vmem:[%s4155_s3 + $0x248] sm:$0xff] }
  0xdb   :  { %1934 = vmatpush.bf16.msra.mxu2 %v2942_v26  ;;  %v567_v39 = vmax.f32 %v327_v41, 0.0  ;;  %1957 = vmatpush.bf16.msra.mxu3 %v2950_v57  ;;  %v332_v26 = vadd.f32 %v3561_v10, %v3642_v15  ;;  %v307_v41 = vadd.f32 %v3502_v45, %v3639_v0  ;;  %v2923_v10 = vld [vmem:[%s4155_s3 + $0x208] sm:$0xff]  ;;  %v598_v45 = vmax.f32 %v309_v9, 0.0  ;;  %v2969_v9 = vld [vmem:[%s4155_s3 + $0x378] sm:$0xff] }
  0xdc   :  { %v3587_v50 = vpop.f32.mrf.mxu2  ;;  %v549_v7 = vmax.f32 %v279_v44, 0.0  ;;  %v630_v48 = vpack.c.bf16 %v566_v58, %v550_v55  ;;  %v353_v44 = vadd.f32 %v3524_v59, %v3649_v8  ;;  %v600_v49 = vmax.f32 %v355_v35, 0.0  ;;  %v2922_v58 = vld [vmem:[%s4155_s3 + $0x200] sm:$0xff] }
  0xdd   :  { %v3589_v51 = vpop.f32.mrf.mxu3  ;;  %v290_v52 = vpop.f32.mrf.mxu0  ;;  %v631_v2 = vpack.c.bf16 %v567_v39, %v551_v62  ;;  %1889 = vmatpush.bf16.msra.mxu0 %v2925_v47  ;;  %v599_v46 = vmax.f32 %v332_v26, 0.0  ;;  %v582_v14 = vmax.f32 %v307_v41, 0.0  ;;  %v583_v57 = vmax.f32 %v330_v63, 0.0  ;;  %v2946_v39 = vld [vmem:[%s4155_s3 + $0x2c0] sm:$0xff]  ;;  %v2961_v47 = vld [vmem:[%s4155_s3 + $0x338] sm:$0xff]  ;;  %v2976_v26 = vld [vmem:[%s4155_s3 + $0x3b0] sm:$0xff] }
  0xde   :  { %v313_v54 = vpop.f32.mrf.mxu1  ;;  %v568_v52 = vmax.f32 %v350_v60, 0.0  ;;  %v629_v38 = vpack.c.bf16 %v565_v29, %v549_v7  ;;  %1912 = vmatpush.bf16.msra.mxu1 %v2933_v4  ;;  %v597_v60 = vmax.f32 %v286_v24, 0.0  ;;  %v584_v7 = vmax.f32 %v353_v44, 0.0  ;;  %v3812_v44 = vld [vmem:[%s4156_s2 + $0x8] sm:$0xff] }
  0xdf   :  { %v2949_v54 = vld [vmem:[%s4155_s3 + $0x2d8] sm:$0xff]  ;;  %1935 = vmatpush.bf16.msra.mxu2 %v2941_v3  ;;  %v2930_v3 = vld [vmem:[%s4155_s3 + $0x240] sm:$0xff]  ;;  %v646_v55 = vpack.c.bf16 %v598_v45, %v582_v14  ;;  %v647_v62 = vpack.c.bf16 %v599_v46, %v583_v57  ;;  %v358_v24 = vadd.f32 %v3589_v51, %v3649_v8  ;;  %v2968_v51 = vld [vmem:[%s4155_s3 + $0x370] sm:$0xff]  ;;  %v3832_v14 = vperm.slane %v3812_v44, 1 }
  0xe0   :  { %v632_v5 = vpack.c.bf16 %v568_v52, %v552_v17  ;;  %1958 = vmatpush.bf16.msra.mxu3 %v2949_v54  ;;  %v645_v54 = vpack.c.bf16 %v597_v60, %v581_v11  ;;  %v648_v17 = vpack.c.bf16 %v600_v49, %v584_v7  ;;  %v2959_v60 = vld [vmem:[%s4155_s3 + $0x328] sm:$0xff]  ;;  %v2974_v49 = vld [vmem:[%s4155_s3 + $0x3a0] sm:$0xff]  ;;  %v3835_v57 = vperm.slane %v3812_v44, 2 }
  0xe1   :  { %v2983_v45 = vld [vmem:[%s4155_s3 + $0x3e8] sm:$0xff] }
  0xe2   :  { %v2967_v46 = vld [vmem:[%s4155_s3 + $0x368] sm:$0xff] }
  0xe4   :  { %v336_v12 = vpop.f32.mrf.mxu2 }
  0xe5   :  { %v359_v21 = vpop.f32.mrf.mxu3  ;;  %v3614_v16 = vpop.f32.mrf.mxu0  ;;  %v2940_v12 = vld [vmem:[%s4155_s3 + $0x290] sm:$0xff] }
  0xe6   :  { %v3616_v30 = vpop.f32.mrf.mxu1  ;;  %v2924_v21 = vld [vmem:[%s4155_s3 + $0x210] sm:$0xff]  ;;  %1936 = vmatpush.bf16.msra.mxu2 %v2940_v12  ;;  %v289_v12 = vadd.f32 %v3565_v28, %v3631_v27 }
  0xe7   :  { %1890 = vmatpush.bf16.msra.mxu0 %v2924_v21  ;;  %v2960_v28 = vld [vmem:[%s4155_s3 + $0x330] sm:$0xff] }
  0xe8   :  { %1719 = vmatmul.bf16.gmra.mxu0 %v657_v22  ;;  %1742 = vmatmul.bf16.gmra.mxu1 %v658_v36  ;;  %v2948_v22 = vld [vmem:[%s4155_s3 + $0x2d0] sm:$0xff] }
  0xe9   :  { %1765 = vmatmul.bf16.gmra.mxu2 %v659_v19  ;;  %v2932_v36 = vld [vmem:[%s4155_s3 + $0x250] sm:$0xff]  ;;  %1959 = vmatpush.bf16.msra.mxu3 %v2948_v22  ;;  %v312_v22 = vadd.f32 %v3576_v33, %v3639_v0 }
  0xea   :  { %1788 = vmatmul.bf16.gmra.mxu3 %v660_v37  ;;  %1913 = vmatpush.bf16.msra.mxu1 %v2932_v36  ;;  %v335_v36 = vadd.f32 %v3587_v50, %v3642_v15  ;;  %v2984_v33 = vld [vmem:[%s4155_s3 + $0x3f0] sm:$0xff]  ;;  %v613_v50 = vmax.f32 %v289_v12, 0.0  ;;  %v616_v15 = vmax.f32 %v358_v24, 0.0 }
  0xeb   :  { %1937 = vmatpush.bf16.msra.mxu2 %v2939_v61  ;;  %1891 = vmatpush.bf16.msra.mxu0 %v2923_v10  ;;  %v614_v27 = vmax.f32 %v312_v22, 0.0  ;;  %v2981_v22 = vld [vmem:[%s4155_s3 + $0x3d8] sm:$0xff] }
  0xec   :  { %v3633_v25 = vpop.f32.mrf.mxu2  ;;  %v615_v0 = vmax.f32 %v335_v36, 0.0  ;;  %v661_v61 = vpack.c.bf16 %v613_v50, %v613_v50 }
  0xed   :  { %v3644_v18 = vpop.f32.mrf.mxu3  ;;  %v3646_v6 = vpop.f32.mrf.mxu0  ;;  %1960 = vmatpush.bf16.msra.mxu3 %v2947_v40  ;;  %v662_v63 = vpack.c.bf16 %v614_v27, %v614_v27  ;;  %v664_v40 = vpack.c.bf16 %v616_v15, %v616_v15  ;;  %v2965_v15 = vld [vmem:[%s4155_s3 + $0x358] sm:$0xff] }
  0xee   :  { %v3653_v34 = vpop.f32.mrf.mxu1  ;;  %1914 = vmatpush.bf16.msra.mxu1 %v2931_v1  ;;  %v663_v10 = vpack.c.bf16 %v615_v0, %v615_v0  ;;  %v2975_v1 = vld [vmem:[%s4155_s3 + $0x3a8] sm:$0xff] }
  0xef   :  { %1938 = vmatpush.bf16.msra.mxu2 %v2938_v56  ;;  %1892 = vmatpush.bf16.msra.mxu0 %v2922_v58  ;;  %v3824_v56 = vperm.slane %v3812_v44, 0 }
  0xf1   :  { %1961 = vmatpush.bf16.msra.mxu3 %v2946_v39  ;;  %v373_v7 = vadd.f32 %v3646_v6, %v3824_v56  ;;  %v417_v6 = vadd.f32 %v3633_v25, %v3835_v57  ;;  %v2973_v25 = vld [vmem:[%s4155_s3 + $0x398] sm:$0xff] }
  0xf2   :  { %1915 = vmatpush.bf16.msra.mxu1 %v2930_v3  ;;  %v3842_v3 = vperm.slane %v3812_v44, 3 }
  0xf3   :  { %v555_v24 = vmax.f32 %v417_v6, 0.0 }
  0xf4   :  { %v3681_v53 = vpop.f32.mrf.mxu2 }
  0xf5   :  { %v3686_v43 = vpop.f32.mrf.mxu3  ;;  %v3688_v13 = vpop.f32.mrf.mxu0 }
  0xf6   :  { %v3690_v42 = vpop.f32.mrf.mxu1 }
  0xf8   :  { %1801 = vmatmul.bf16.vlgmr.msrb.gmra.mxu0 %v629_v38  ;;  %1824 = vmatmul.bf16.vlgmr.msrb.gmra.mxu1 %v630_v48  ;;  %v2977_v38 = vld [vmem:[%s4155_s3 + $0x3b8] sm:$0xff] }
  0xf9   :  { %1847 = vmatmul.bf16.vlgmr.msrb.gmra.mxu2 %v631_v2  ;;  %v2985_v48 = vld [vmem:[%s4155_s3 + $0x3f8] sm:$0xff]  ;;  %1977 = vmatpush.bf16.msrb.mxu0 %v2961_v47  ;;  %v394_v47 = vadd.f32 %v3616_v30, %v3832_v14 }
  0xfa   :  { %1870 = vmatmul.bf16.vlgmr.msrb.gmra.mxu3 %v632_v5  ;;  %2023 = vmatpush.bf16.msrb.mxu2 %v2977_v38  ;;  %v442_v38 = vadd.f32 %v3686_v43, %v3842_v3 }
  0xfb   :  { %2046 = vmatpush.bf16.msrb.mxu3 %v2985_v48  ;;  %2000 = vmatpush.bf16.msrb.mxu1 %v2969_v9  ;;  %v440_v48 = vadd.f32 %v3644_v18, %v3842_v3  ;;  %v554_v36 = vmax.f32 %v394_v47, 0.0 }
  0xfc   :  { %v3710_v19 = vpop.f32.mrf.mxu2  ;;  %v572_v12 = vmax.f32 %v442_v38, 0.0  ;;  %v399_v38 = vadd.f32 %v3690_v42, %v3832_v14 }
  0xfd   :  { %v3712_v37 = vpop.f32.mrf.mxu3  ;;  %v3714_v23 = vpop.f32.mrf.mxu0  ;;  %1978 = vmatpush.bf16.msrb.mxu0 %v2960_v28  ;;  %v556_v28 = vmax.f32 %v440_v48, 0.0 }
  0xfe   :  { %v3718_v20 = vpop.f32.mrf.mxu1  ;;  %2024 = vmatpush.bf16.msrb.mxu2 %v2976_v26  ;;  %v445_v47 = vadd.f32 %v3712_v37, %v3842_v3  ;;  %v2954_v37 = vld [vmem:[%s4155_s3 + $0x300] sm:$0xff] }
  0xff   :  { %2047 = vmatpush.bf16.msrb.mxu3 %v2984_v33  ;;  %2001 = vmatpush.bf16.msrb.mxu1 %v2968_v51  ;;  %v2957_v51 = vld [vmem:[%s4155_s3 + $0x318] sm:$0xff] }
 0x101   :  { %1979 = vmatpush.bf16.msrb.mxu0 %v2959_v60 }
 0x102   :  { %2025 = vmatpush.bf16.msrb.mxu2 %v2975_v1 }
 0x103   :  { %2048 = vmatpush.bf16.msrb.mxu3 %v2983_v45  ;;  %2002 = vmatpush.bf16.msrb.mxu1 %v2967_v46  ;;  %v378_v45 = vadd.f32 %v3714_v23, %v3824_v56 }
 0x104   :  { %v3749_v29 = vpop.f32.mrf.mxu2 }
 0x105   :  { %v3751_v32 = vpop.f32.mrf.mxu3  ;;  %v3753_v59 = vpop.f32.mrf.mxu0  ;;  %v601_v6 = vmax.f32 %v378_v45, 0.0  ;;  %v3974_v45 = vld [vmem:[%s4157_s4] ss:$0 sm:$0xff] }
 0x106   :  { %v3764_v52 = vpop.f32.mrf.mxu1  ;;  %2026 = vmatpush.bf16.msrb.mxu2 %v2974_v49  ;;  %v401_v49 = vadd.f32 %v3718_v20, %v3832_v14  ;;  %v447_v23 = vadd.f32 %v3751_v32, %v3842_v3  ;;  %v2979_v20 = vld [vmem:[%s4155_s3 + $0x3c8] sm:$0xff]  ;;  %v2970_v32 = vld [vmem:[%s4155_s3 + $0x380] sm:$0xff] }
 0x108   :  { %1806 = vmatmul.bf16.gmra.mxu0 %v645_v54  ;;  %1829 = vmatmul.bf16.gmra.mxu1 %v646_v55  ;;  %v396_v55 = vadd.f32 %v3653_v34, %v3832_v14  ;;  %v2958_v34 = vld [vmem:[%s4155_s3 + $0x320] sm:$0xff]  ;;  %v602_v48 = vmax.f32 %v401_v49, 0.0 }
 0x109   :  { %1852 = vmatmul.bf16.gmra.mxu2 %v647_v62  ;;  %v419_v62 = vadd.f32 %v3681_v53, %v3835_v57  ;;  %v2966_v53 = vld [vmem:[%s4155_s3 + $0x360] sm:$0xff]  ;;  %1980 = vmatpush.bf16.msrb.mxu0 %v2958_v34 }
 0x10a   :  { %1875 = vmatmul.bf16.gmra.mxu3 %v648_v17  ;;  %v371_v17 = vadd.f32 %v3614_v16, %v3824_v56  ;;  %v2982_v16 = vld [vmem:[%s4155_s3 + $0x3e0] sm:$0xff]  ;;  %v570_v30 = vmax.f32 %v396_v55, 0.0  ;;  %2003 = vmatpush.bf16.msrb.mxu1 %v2966_v53  ;;  %v2971_v55 = vld [vmem:[%s4155_s3 + $0x388] sm:$0xff]  ;;  %v586_v53 = vmax.f32 %v399_v38, 0.0  ;;  %v3984_v38 = vperm.slane %v3812_v44, 6 }
 0x10b   :  { %v571_v43 = vmax.f32 %v419_v62, 0.0  ;;  %2049 = vmatpush.bf16.msrb.mxu3 %v2982_v16  ;;  %2027 = vmatpush.bf16.msrb.mxu2 %v2973_v25  ;;  %v376_v62 = vadd.f32 %v3688_v13, %v3824_v56  ;;  %v422_v13 = vadd.f32 %v3710_v19, %v3835_v57  ;;  %v604_v16 = vmax.f32 %v447_v23, 0.0  ;;  %v2978_v25 = vld [vmem:[%s4155_s3 + $0x3c0] sm:$0xff] }
 0x10c   :  { %v3775_v2 = vpop.f32.mrf.mxu2  ;;  %v553_v18 = vmax.f32 %v371_v17, 0.0  ;;  %v634_v27 = vpack.c.bf16 %v570_v30, %v554_v36  ;;  %v2955_v17 = vld [vmem:[%s4155_s3 + $0x308] sm:$0xff] }
 0x10d   :  { %v3777_v4 = vpop.f32.mrf.mxu3  ;;  %v382_v5 = vpop.f32.mrf.mxu0  ;;  %v635_v0 = vpack.c.bf16 %v571_v43, %v555_v24  ;;  %1981 = vmatpush.bf16.msrb.mxu0 %v2957_v51  ;;  %v585_v34 = vmax.f32 %v376_v62, 0.0  ;;  %v587_v19 = vmax.f32 %v422_v13, 0.0  ;;  %v650_v24 = vpack.c.bf16 %v602_v48, %v586_v53 }
 0x10e   :  { %v405_v21 = vpop.f32.mrf.mxu1  ;;  %v569_v5 = vmax.f32 %v373_v7, 0.0  ;;  %2004 = vmatpush.bf16.msrb.mxu1 %v2965_v15  ;;  %v424_v7 = vadd.f32 %v3749_v29, %v3835_v57  ;;  %v2963_v29 = vld [vmem:[%s4155_s3 + $0x348] sm:$0xff]  ;;  %v381_v15 = vadd.f32 %v3753_v59, %v3824_v56 }
 0x10f   :  { %2050 = vmatpush.bf16.msrb.mxu3 %v2981_v22  ;;  %v649_v36 = vpack.c.bf16 %v601_v6, %v585_v34  ;;  %v3987_v6 = vperm.slane %v3812_v44, 7 }
 0x110   :  { %v633_v33 = vpack.c.bf16 %v569_v5, %v553_v18  ;;  %v603_v5 = vmax.f32 %v424_v7, 0.0  ;;  %v2962_v18 = vld [vmem:[%s4155_s3 + $0x340] sm:$0xff] }
 0x114   :  { %v428_v8 = vpop.f32.mrf.mxu2 }
 0x115   :  { %v451_v31 = vpop.f32.mrf.mxu3  ;;  %v3802_v35 = vpop.f32.mrf.mxu0  ;;  %v636_v8 = vpack.c.bf16 %v572_v12, %v556_v28  ;;  %v588_v12 = vmax.f32 %v445_v47, 0.0  ;;  %v651_v28 = vpack.c.bf16 %v603_v5, %v587_v19 }
 0x116   :  { %v3804_v41 = vpop.f32.mrf.mxu1  ;;  %v2972_v31 = vld [vmem:[%s4155_s3 + $0x390] sm:$0xff] }
 0x117   :  { %2028 = vmatpush.bf16.msrb.mxu2 %v2972_v31  ;;  %v404_v31 = vadd.f32 %v3764_v52, %v3832_v14 }
 0x118   :  { %1811 = vmatmul.bf16.gmra.mxu0 %v661_v61  ;;  %1834 = vmatmul.bf16.gmra.mxu1 %v662_v63  ;;  %v2956_v61 = vld [vmem:[%s4155_s3 + $0x310] sm:$0xff] }
 0x119   :  { %1857 = vmatmul.bf16.gmra.mxu2 %v663_v10  ;;  %v2980_v63 = vld [vmem:[%s4155_s3 + $0x3d0] sm:$0xff]  ;;  %1982 = vmatpush.bf16.msrb.mxu0 %v2956_v61  ;;  %v427_v61 = vadd.f32 %v3775_v2, %v3835_v57  ;;  %v618_v49 = vmax.f32 %v404_v31, 0.0 }
 0x11a   :  { %1880 = vmatmul.bf16.gmra.mxu3 %v664_v40  ;;  %v2964_v10 = vld [vmem:[%s4155_s3 + $0x350] sm:$0xff] }
 0x11b   :  { %2051 = vmatpush.bf16.msrb.mxu3 %v2980_v63  ;;  %2005 = vmatpush.bf16.msrb.mxu1 %v2964_v10  ;;  %v450_v63 = vadd.f32 %v3777_v4, %v3842_v3  ;;  %v617_v10 = vmax.f32 %v381_v15, 0.0  ;;  %v619_v7 = vmax.f32 %v427_v61, 0.0  ;;  %v666_v2 = vpack.c.bf16 %v618_v49, %v618_v49 }
 0x11c   :  { %v3826_v11 = vpop.f32.mrf.mxu2  ;;  %2029 = vmatpush.bf16.msrb.mxu2 %v2971_v55  ;;  %v3978_v3 = vperm.slane %v3812_v44, 4 }
 0x11d   :  { %v3837_v58 = vpop.f32.mrf.mxu3  ;;  %v3839_v39 = vpop.f32.mrf.mxu0  ;;  %1983 = vmatpush.bf16.msrb.mxu0 %v2955_v17  ;;  %v620_v55 = vmax.f32 %v450_v63, 0.0  ;;  %v665_v23 = vpack.c.bf16 %v617_v10, %v617_v10  ;;  %v667_v57 = vpack.c.bf16 %v619_v7, %v619_v7 }
 0x11e   :  { %v3846_v54 = vpop.f32.mrf.mxu1  ;;  %v465_v48 = vadd.f32 %v3839_v39, %v3978_v3 }
 0x11f   :  { %2052 = vmatpush.bf16.msrb.mxu3 %v2979_v20  ;;  %2006 = vmatpush.bf16.msrb.mxu1 %v2963_v29  ;;  %v668_v17 = vpack.c.bf16 %v620_v55, %v620_v55  ;;  %v3981_v29 = vperm.slane %v3812_v44, 5 }
 0x120   :  { %2030 = vmatpush.bf16.msrb.mxu2 %v2970_v32 }
 0x121   :  { %1984 = vmatpush.bf16.msrb.mxu0 %v2954_v37  ;;  %v463_v37 = vadd.f32 %v3802_v35, %v3978_v3  ;;  %v486_v39 = vadd.f32 %v3804_v41, %v3981_v29 }
 0x123   :  { %2053 = vmatpush.bf16.msrb.mxu3 %v2978_v25  ;;  %2007 = vmatpush.bf16.msrb.mxu1 %v2962_v18  ;;  %v509_v18 = vadd.f32 %v3826_v11, %v3984_v38  ;;  %v558_v35 = vmax.f32 %v486_v39, 0.0 }
 0x124   :  { %v3874_v21 = vpop.f32.mrf.mxu2 }
 0x125   :  { %v3879_v9 = vpop.f32.mrf.mxu3  ;;  %v3881_v26 = vpop.f32.mrf.mxu0  ;;  %v511_v53 = vadd.f32 %v3874_v21, %v3984_v38 }
 0x126   :  { %v3883_v50 = vpop.f32.mrf.mxu1  ;;  %v534_v44 = vadd.f32 %v3879_v9, %v3987_v6 }
 0x128   :  { %1893 = vmatmul.bf16.vlgmr.msra.gmra.mxu0 %v633_v33  ;;  %1916 = vmatmul.bf16.vlgmr.msra.gmra.mxu1 %v634_v27  ;;  %v652_v33 = vpack.c.bf16 %v604_v16, %v588_v12  ;;  %v488_v16 = vadd.f32 %v3846_v54, %v3981_v29  ;;  %v532_v54 = vadd.f32 %v3837_v58, %v3987_v6  ;;  %v573_v12 = vmax.f32 %v465_v48, 0.0 }
 0x129   :  { %1939 = vmatmul.bf16.vlgmr.msra.gmra.mxu2 %v635_v0 }
 0x12a   :  { %1962 = vmatmul.bf16.vlgmr.msra.gmra.mxu3 %v636_v8  ;;  %v574_v21 = vmax.f32 %v488_v16, 0.0  ;;  %v560_v31 = vmax.f32 %v532_v54, 0.0 }
 0x12c   :  { %v3903_v40 = vpop.f32.mrf.mxu2  ;;  %v638_v11 = vpack.c.bf16 %v574_v21, %v558_v35 }
 0x12d   :  { %v3905_v1 = vpop.f32.mrf.mxu3  ;;  %v3907_v60 = vpop.f32.mrf.mxu0 }
 0x12e   :  { %v3911_v46 = vpop.f32.mrf.mxu1 }
 0x134   :  { %v3942_v42 = vpop.f32.mrf.mxu2 }
 0x135   :  { %v3944_v30 = vpop.f32.mrf.mxu3  ;;  %v3946_v43 = vpop.f32.mrf.mxu0 }
 0x136   :  { %v3957_v22 = vpop.f32.mrf.mxu1  ;;  %v473_v35 = vadd.f32 %v3946_v43, %v3978_v3 }
 0x138   :  { %1898 = vmatmul.bf16.gmra.mxu0 %v649_v36  ;;  %1921 = vmatmul.bf16.gmra.mxu1 %v650_v24  ;;  %v575_v36 = vmax.f32 %v511_v53, 0.0  ;;  %v557_v24 = vmax.f32 %v463_v37, 0.0 }
 0x139   :  { %1944 = vmatmul.bf16.gmra.mxu2 %v651_v28  ;;  %v576_v28 = vmax.f32 %v534_v44, 0.0 }
 0x13a   :  { %1967 = vmatmul.bf16.gmra.mxu3 %v652_v33  ;;  %v637_v61 = vpack.c.bf16 %v573_v12, %v557_v24 }
 0x13b   :  { %v640_v58 = vpack.c.bf16 %v576_v28, %v560_v31  ;;  %v621_v31 = vmax.f32 %v473_v35, 0.0 }
 0x13c   :  { %v3959_v51 = vpop.f32.mrf.mxu2 }
 0x13d   :  { %v3961_v27 = vpop.f32.mrf.mxu3  ;;  %v474_v0 = vpop.f32.mrf.mxu0 }
 0x13e   :  { %v497_v8 = vpop.f32.mrf.mxu1  ;;  %v559_v0 = vmax.f32 %v509_v18, 0.0 }
 0x140   :  { %v639_v10 = vpack.c.bf16 %v575_v36, %v559_v0 }
 0x144   :  { %v520_v59 = vpop.f32.mrf.mxu2 }
 0x145   :  { %v543_v56 = vpop.f32.mrf.mxu3  ;;  %v1710_v62 = vpop.f32.mrf.mxu0 }
 0x146   :  { %v1711_v52 = vadd.f32 %v3974_v45, %v1710_v62  ;;  %v1733_v14 = vpop.f32.mrf.mxu1 }
 0x148   :  { %v1734_v4 = vadd.f32 %v1733_v14, %v1711_v52  ;;  %1903 = vmatmul.bf16.gmra.mxu0 %v665_v23  ;;  %1926 = vmatmul.bf16.gmra.mxu1 %v666_v2  ;;  %v470_v23 = vadd.f32 %v3907_v60, %v3978_v3  ;;  %v493_v2 = vadd.f32 %v3911_v46, %v3981_v29 }
 0x149   :  { %1949 = vmatmul.bf16.gmra.mxu2 %v667_v57  ;;  %v516_v57 = vadd.f32 %v3942_v42, %v3984_v38  ;;  %v491_v60 = vadd.f32 %v3883_v50, %v3981_v29  ;;  %v537_v46 = vadd.f32 %v3905_v1, %v3987_v6 }
 0x14a   :  { %1972 = vmatmul.bf16.gmra.mxu3 %v668_v17  ;;  %v606_v42 = vmax.f32 %v493_v2, 0.0 }
 0x14b   :  { %v607_v48 = vmax.f32 %v516_v57, 0.0 }
 0x14c   :  { %v1756_v20 = vpop.f32.mrf.mxu2 }
 0x14d   :  { %v1757_v13 = vadd.f32 %v1756_v20, %v1734_v4  ;;  %v1779_v32 = vpop.f32.mrf.mxu3  ;;  %v1712_v47 = vpop.f32.mrf.mxu0  ;;  %v468_v4 = vadd.f32 %v3881_v26, %v3978_v3  ;;  %v539_v20 = vadd.f32 %v3944_v30, %v3987_v6  ;;  %v590_v26 = vmax.f32 %v491_v60, 0.0 }
 0x14e   :  { %v1713_v5 = vadd.f32 %v3974_v45, %v1712_v47  ;;  %v1735_v34 = vpop.f32.mrf.mxu1  ;;  %v605_v47 = vmax.f32 %v470_v23, 0.0 }
 0x14f   :  { %v3996_v19 = vadd.f32 %v1779_v32, %v1757_v13  ;;  %v514_v32 = vadd.f32 %v3903_v40, %v3984_v38  ;;  %v654_v54 = vpack.c.bf16 %v606_v42, %v590_v26 }
 0x150   :  { %v1736_v25 = vadd.f32 %v1735_v34, %v1713_v5  ;;  %v589_v5 = vmax.f32 %v468_v4, 0.0  ;;  %v608_v34 = vmax.f32 %v539_v20, 0.0 }
 0x151   :  { %v591_v53 = vmax.f32 %v514_v32, 0.0 }
 0x152   :  { %v653_v18 = vpack.c.bf16 %v605_v47, %v589_v5 }
 0x153   :  { %v655_v12 = vpack.c.bf16 %v607_v48, %v591_v53 }
 0x154   :  { %v1758_v33 = vpop.f32.mrf.mxu2 }
 0x155   :  { %v1759_v15 = vadd.f32 %v1758_v33, %v1736_v25  ;;  %v1781_v9 = vpop.f32.mrf.mxu3  ;;  %v1715_v8 = vpop.f32.mrf.mxu0  ;;  %v592_v25 = vmax.f32 %v537_v46, 0.0 }
 0x156   :  { %v1716_v41 = vadd.f32 %v3974_v45, %v1715_v8  ;;  %v1738_v63 = vpop.f32.mrf.mxu1  ;;  %v542_v8 = vadd.f32 %v3961_v27, %v3987_v6 }
 0x157   :  { %v4009_v49 = vadd.f32 %v1781_v9, %v1759_v15  ;;  %v656_v21 = vpack.c.bf16 %v608_v34, %v592_v25  ;;  %v519_v15 = vadd.f32 %v3959_v51, %v3984_v38 }
 0x158   :  { %v1739_v7 = vadd.f32 %v1738_v63, %v1716_v41  ;;  %1985 = vmatmul.bf16.vlgmr.msrb.gmra.mxu0 %v637_v61  ;;  %2008 = vmatmul.bf16.vlgmr.msrb.gmra.mxu1 %v638_v11  ;;  %v624_v63 = vmax.f32 %v542_v8, 0.0 }
 0x159   :  { %2031 = vmatmul.bf16.vlgmr.msrb.gmra.mxu2 %v639_v10  ;;  %v623_v41 = vmax.f32 %v519_v15, 0.0 }
 0x15a   :  { %2054 = vmatmul.bf16.vlgmr.msrb.gmra.mxu3 %v640_v58 }
 0x15c   :  { %v1761_v55 = vpop.f32.mrf.mxu2 }
 0x15d   :  { %v1762_v59 = vadd.f32 %v1761_v55, %v1739_v7  ;;  %v1784_v56 = vpop.f32.mrf.mxu3  ;;  %v1717_v62 = vpop.f32.mrf.mxu0  ;;  %v669_v7 = vpack.c.bf16 %v621_v31, %v621_v31 }
 0x15e   :  { %v1718_v52 = vadd.f32 %v3974_v45, %v1717_v62  ;;  %v1740_v14 = vpop.f32.mrf.mxu1 }
 0x15f   :  { %v4018_v17 = vadd.f32 %v1784_v56, %v1762_v59 }
 0x160   :  { %v1741_v13 = vadd.f32 %v1740_v14, %v1718_v52 }
 0x164   :  { %v1763_v16 = vpop.f32.mrf.mxu2 }
 0x165   :  { %v1764_v37 = vadd.f32 %v1763_v16, %v1741_v13  ;;  %v1786_v30 = vpop.f32.mrf.mxu3  ;;  %v1720_v44 = vpop.f32.mrf.mxu0 }
 0x166   :  { %v1721_v50 = vadd.f32 %v3974_v45, %v1720_v44  ;;  %v1743_v39 = vpop.f32.mrf.mxu1  ;;  %v496_v45 = vadd.f32 %v3957_v22, %v3981_v29  ;;  %v671_v22 = vpack.c.bf16 %v623_v41, %v623_v41  ;;  %v672_v29 = vpack.c.bf16 %v624_v63, %v624_v63 }
 0x167   :  { %v1787_v40 = vadd.f32 %v1786_v30, %v1764_v37 }
 0x168   :  { %v1744_v1 = vadd.f32 %v1743_v39, %v1721_v50  ;;  %1990 = vmatmul.bf16.gmra.mxu0 %v653_v18  ;;  %2013 = vmatmul.bf16.gmra.mxu1 %v654_v54  ;;  %v622_v61 = vmax.f32 %v496_v45, 0.0 }
 0x169   :  { %2036 = vmatmul.bf16.gmra.mxu2 %v655_v12 }
 0x16a   :  { %2059 = vmatmul.bf16.gmra.mxu3 %v656_v21  ;;  %v670_v55 = vpack.c.bf16 %v622_v61, %v622_v61 }
 0x16c   :  { %v1766_v36 = vpop.f32.mrf.mxu2 }
 0x16d   :  { %v1767_v24 = vadd.f32 %v1766_v36, %v1744_v1  ;;  %v1789_v28 = vpop.f32.mrf.mxu3  ;;  %v1722_v33 = vpop.f32.mrf.mxu0 }
 0x16e   :  { %v1745_v0 = vpop.f32.mrf.mxu1 }
 0x16f   :  { %v1790_v9 = vadd.f32 %v1789_v28, %v1767_v24 }
 0x174   :  { %v1768_v11 = vpop.f32.mrf.mxu2 }
 0x175   :  { %v1791_v10 = vpop.f32.mrf.mxu3  ;;  %v1802_v58 = vpop.f32.mrf.mxu0 }
 0x176   :  { %v1803_v43 = vadd.f32 %v1802_v58, %v3996_v19  ;;  %v1825_v3 = vpop.f32.mrf.mxu1 }
 0x178   :  { %v1826_v59 = vadd.f32 %v1825_v3, %v1803_v43  ;;  %1995 = vmatmul.bf16.gmra.mxu0 %v669_v7  ;;  %2018 = vmatmul.bf16.gmra.mxu1 %v670_v55 }
 0x179   :  { %2041 = vmatmul.bf16.gmra.mxu2 %v671_v22 }
 0x17a   :  { %2064 = vmatmul.bf16.gmra.mxu3 %v672_v29 }
 0x17c   :  { %v1848_v51 = vpop.f32.mrf.mxu2 }
 0x17d   :  { %v1849_v27 = vadd.f32 %v1848_v51, %v1826_v59  ;;  %v1871_v38 = vpop.f32.mrf.mxu3  ;;  %v1804_v6 = vpop.f32.mrf.mxu0 }
 0x17e   :  { %v1805_v56 = vadd.f32 %v1804_v6, %v4009_v49  ;;  %v1827_v62 = vpop.f32.mrf.mxu1 }
 0x17f   :  { %v1872_v23 = vadd.f32 %v1871_v38, %v1849_v27 }
 0x180   :  { %v1828_v52 = vadd.f32 %v1827_v62, %v1805_v56 }
 0x184   :  { %v1850_v14 = vpop.f32.mrf.mxu2 }
 0x185   :  { %v1851_v19 = vadd.f32 %v1850_v14, %v1828_v52  ;;  %v1873_v2 = vpop.f32.mrf.mxu3  ;;  %v1807_v57 = vpop.f32.mrf.mxu0 }
 0x186   :  { %v1808_v4 = vadd.f32 %v1807_v57, %v4018_v17  ;;  %v1830_v20 = vpop.f32.mrf.mxu1 }
 0x187   :  { %v1874_v13 = vadd.f32 %v1873_v2, %v1851_v19 }
 0x188   :  { %v1831_v60 = vadd.f32 %v1830_v20, %v1808_v4 }
 0x18c   :  { %v1853_v32 = vpop.f32.mrf.mxu2 }
 0x18d   :  { %v1854_v46 = vadd.f32 %v1853_v32, %v1831_v60  ;;  %v1876_v47 = vpop.f32.mrf.mxu3  ;;  %v1809_v42 = vpop.f32.mrf.mxu0 }
 0x18e   :  { %v1810_v48 = vadd.f32 %v1809_v42, %v1787_v40  ;;  %v1832_v5 = vpop.f32.mrf.mxu1 }
 0x18f   :  { %v1877_v34 = vadd.f32 %v1876_v47, %v1854_v46 }
 0x190   :  { %v1833_v49 = vadd.f32 %v1832_v5, %v1810_v48 }
 0x194   :  { %v1855_v16 = vpop.f32.mrf.mxu2 }
 0x195   :  { %v1856_v26 = vadd.f32 %v1855_v16, %v1833_v49  ;;  %v1878_v53 = vpop.f32.mrf.mxu3  ;;  %v1812_v37 = vpop.f32.mrf.mxu0  ;;  %v3002_v49 = vld [vmem:[%s4154_s0] sm:$0xff] }
 0x196   :  { %v1813_v30 = vadd.f32 %v1812_v37, %v1790_v9  ;;  %v1835_v44 = vpop.f32.mrf.mxu1 }
 0x197   :  { %v1879_v25 = vadd.f32 %v1878_v53, %v1856_v26 }
 0x198   :  { %v1836_v50 = vadd.f32 %v1835_v44, %v1813_v30 }
 0x19c   :  { %v1858_v17 = vpop.f32.mrf.mxu2 }
 0x19d   :  { %v1859_v39 = vadd.f32 %v1858_v17, %v1836_v50  ;;  %v1881_v18 = vpop.f32.mrf.mxu3  ;;  %v1814_v54 = vpop.f32.mrf.mxu0 }
 0x19e   :  { %v1837_v12 = vpop.f32.mrf.mxu1 }
 0x19f   :  { %v4042_v1 = vadd.f32 %v1881_v18, %v1859_v39 }
 0x1a4   :  { %v1860_v21 = vpop.f32.mrf.mxu2 }
 0x1a5   :  { %v1883_v40 = vpop.f32.mrf.mxu3  ;;  %v1894_v36 = vpop.f32.mrf.mxu0 }
 0x1a6   :  { %v1917_v24 = vpop.f32.mrf.mxu1  ;;  %v1895_v43 = vadd.f32 %v1894_v36, %v1872_v23  ;;  %v3003_v40 = vld [vmem:[%s4154_s0 + $0x8] sm:$0xff] }
 0x1a8   :  { %v1918_v59 = vadd.f32 %v1917_v24, %v1895_v43 }
 0x1ac   :  { %v1940_v28 = vpop.f32.mrf.mxu2 }
 0x1ad   :  { %v1963_v33 = vpop.f32.mrf.mxu3  ;;  %v1896_v35 = vpop.f32.mrf.mxu0  ;;  %v1941_v51 = vadd.f32 %v1940_v28, %v1918_v59 }
 0x1ae   :  { %v1919_v0 = vpop.f32.mrf.mxu1  ;;  %v1897_v27 = vadd.f32 %v1896_v35, %v1874_v13 }
 0x1af   :  { %v1964_v6 = vadd.f32 %v1963_v33, %v1941_v51 }
 0x1b0   :  { %v1920_v14 = vadd.f32 %v1919_v0, %v1897_v27 }
 0x1b4   :  { %v1942_v45 = vpop.f32.mrf.mxu2 }
 0x1b5   :  { %v1965_v15 = vpop.f32.mrf.mxu3  ;;  %v1899_v9 = vpop.f32.mrf.mxu0  ;;  %v1943_v2 = vadd.f32 %v1942_v45, %v1920_v14 }
 0x1b6   :  { %v1922_v8 = vpop.f32.mrf.mxu1  ;;  %v1900_v57 = vadd.f32 %v1899_v9, %v1877_v34 }
 0x1b7   :  { %v1966_v23 = vadd.f32 %v1965_v15, %v1943_v2 }
 0x1b8   :  { %v1923_v42 = vadd.f32 %v1922_v8, %v1900_v57  ;;  %v3006_v57 = vld [vmem:[%s4154_s0 + $0x20] sm:$0xff] }
 0x1bc   :  { %v1945_v31 = vpop.f32.mrf.mxu2 }
 0x1bd   :  { %v1968_v61 = vpop.f32.mrf.mxu3  ;;  %v1901_v41 = vpop.f32.mrf.mxu0  ;;  %v1946_v13 = vadd.f32 %v1945_v31, %v1923_v42 }
 0x1be   :  { %v1924_v63 = vpop.f32.mrf.mxu1  ;;  %v1902_v26 = vadd.f32 %v1901_v41, %v1879_v25 }
 0x1bf   :  { %v1969_v30 = vadd.f32 %v1968_v61, %v1946_v13 }
 0x1c0   :  { %v1925_v18 = vadd.f32 %v1924_v63, %v1902_v26  ;;  %v3004_v63 = vld [vmem:[%s4154_s0 + $0x10] sm:$0xff] }
 0x1c4   :  { %v1947_v11 = vpop.f32.mrf.mxu2 }
 0x1c5   :  { %v1970_v10 = vpop.f32.mrf.mxu3  ;;  %v1904_v58 = vpop.f32.mrf.mxu0  ;;  %v1948_v21 = vadd.f32 %v1947_v11, %v1925_v18 }
 0x1c6   :  { %v1927_v7 = vpop.f32.mrf.mxu1  ;;  %v1905_v36 = vadd.f32 %v1904_v58, %v4042_v1 }
 0x1c7   :  { %v1971_v35 = vadd.f32 %v1970_v10, %v1948_v21 }
 0x1c8   :  { %v1928_v8 = vadd.f32 %v1927_v7, %v1905_v36 }
 0x1cc   :  { %v1950_v3 = vpop.f32.mrf.mxu2 }
 0x1cd   :  { %v4044_v55 = vpop.f32.mrf.mxu3  ;;  %v1906_v22 = vpop.f32.mrf.mxu0  ;;  %v1951_v41 = vadd.f32 %v1950_v3, %v1928_v8  ;;  %v3005_v3 = vld [vmem:[%s4154_s0 + $0x18] sm:$0xff] }
 0x1ce   :  { %v1929_v29 = vpop.f32.mrf.mxu1 }
 0x1cf   :  { %v1974_v10 = vadd.f32 %v4044_v55, %v1951_v41 }
 0x1d4   :  { %v1952_v38 = vpop.f32.mrf.mxu2 }
 0x1d5   :  { %v1975_v56 = vpop.f32.mrf.mxu3  ;;  %v1986_v62 = vpop.f32.mrf.mxu0 }
 0x1d6   :  { %v2009_v52 = vpop.f32.mrf.mxu1  ;;  %v1987_v19 = vadd.f32 %v1986_v62, %v1964_v6 }
 0x1d8   :  { %v2010_v4 = vadd.f32 %v2009_v52, %v1987_v19 }
 0x1dc   :  { %v2032_v20 = vpop.f32.mrf.mxu2 }
 0x1dd   :  { %v2033_v60 = vadd.f32 %v2032_v20, %v2010_v4  ;;  %v2055_v32 = vpop.f32.mrf.mxu3  ;;  %v1988_v46 = vpop.f32.mrf.mxu0 }
 0x1de   :  { %v2011_v47 = vpop.f32.mrf.mxu1  ;;  %v1989_v5 = vadd.f32 %v1988_v46, %v1966_v23 }
 0x1df   :  { %v2056_v48 = vadd.f32 %v2055_v32, %v2033_v60  ;;  %v3007_v32 = vmov 16.0  }
 0x1e0   :  { %v2012_v53 = vadd.f32 %v2011_v47, %v1989_v5  ;;  %2990 = vrcp.f32 %v3007_v32 }
 0x1e1   :  { %v4049_v16 = vadd.f32 %v3002_v49, %v2056_v48 }
 0x1e3   :  { %v2074_v34 = vsel %vm167_vm0, %v4049_v16, 0.0 }
 0x1e4   :  { %v2034_v37 = vpop.f32.mrf.mxu2  ;;  %2075 = vadd.xlane.f32.xlu0 %v2074_v34 }
 0x1e5   :  { %v2035_v44 = vadd.f32 %v2034_v37, %v2012_v53  ;;  %v2057_v50 = vpop.f32.mrf.mxu3  ;;  %v1991_v17 = vpop.f32.mrf.mxu0 }
 0x1e6   :  { %v2014_v39 = vpop.f32.mrf.mxu1  ;;  %v1992_v12 = vadd.f32 %v1991_v17, %v1969_v30  ;;  %v2991_v46 = vpop.eup %2990 }
 0x1e7   :  { %v2058_v54 = vadd.f32 %v2057_v50, %v2035_v44  ;;  %v2090_v47 = vmul.f32 16.0, %v2991_v46  ;;  %vm2094_vm1 = vweird.f32 %v2991_v46 }
 0x1e8   :  { %v2015_v24 = vadd.f32 %v2014_v39, %v1992_v12 }
 0x1e9   :  { %v4056_v25 = vadd.f32 %v3003_v40, %v2058_v54  ;;  %v2091_v42 = vsub.f32 1.0, %v2090_v47 }
 0x1eb   :  { %v2077_v28 = vsel %vm167_vm0, %v4056_v25, 0.0  ;;  %v2092_v48 = vmul.f32 %v2991_v46, %v2091_v42 }
 0x1ec   :  { %v2037_v33 = vpop.f32.mrf.mxu2  ;;  %2078 = vadd.xlane.f32.xlu0 %v2077_v28 }
 0x1ed   :  { %v2038_v0 = vadd.f32 %v2037_v33, %v2015_v24  ;;  %v2060_v45 = vpop.f32.mrf.mxu3  ;;  %v1993_v15 = vpop.f32.mrf.mxu0  ;;  %v2093_v5 = vadd.f32 %v2991_v46, %v2092_v48 }
 0x1ee   :  { %v2016_v9 = vpop.f32.mrf.mxu1  ;;  %v1994_v61 = vadd.f32 %v1993_v15, %v1971_v35 }
 0x1ef   :  { %v2061_v31 = vadd.f32 %v2060_v45, %v2038_v0  ;;  %v4074_v13 = vsel %vm2094_vm1, %v2991_v46, %v2093_v5 }
 0x1f0   :  { %v2017_v11 = vadd.f32 %v2016_v9, %v1994_v61 }
 0x1f1   :  { %v2071_v1 = vadd.f32 %v3004_v63, %v2061_v31 }
 0x1f3   :  { %v2080_v58 = vsel %vm167_vm0, %v2071_v1, 0.0 }
 0x1f4   :  { %v2039_v43 = vpop.f32.mrf.mxu2  ;;  %2081 = vadd.xlane.f32.xlu1 %v2080_v58 }
 0x1f5   :  { %v2040_v22 = vadd.f32 %v2039_v43, %v2017_v11  ;;  %v2062_v29 = vpop.f32.mrf.mxu3  ;;  %v1996_v59 = vpop.f32.mrf.mxu0 }
 0x1f6   :  { %v2019_v51 = vpop.f32.mrf.mxu1  ;;  %v1997_v27 = vadd.f32 %v1996_v59, %v1974_v10 }
 0x1f7   :  { %v2063_v7 = vadd.f32 %v2062_v29, %v2040_v22 }
 0x1f8   :  { %v2020_v6 = vadd.f32 %v2019_v51, %v1997_v27 }
 0x1f9   :  { %v2072_v38 = vadd.f32 %v3005_v3, %v2063_v7  ;;  %v4110_v3 = vld [vmem:[%s4158_s5] ss:$0 sm:$0xff] }
 0x1fb   :  { %v2083_v56 = vsel %vm167_vm0, %v2072_v38, 0.0 }
 0x1fc   :  { %v2042_v62 = vpop.f32.mrf.mxu2  ;;  %2084 = vadd.xlane.f32.xlu1 %v2083_v56  ;;  %v4115_v56 = vld [vmem:[%s4159_s6] ss:$0 sm:$0xff] }
 0x1fd   :  { %v2043_v52 = vadd.f32 %v2042_v62, %v2020_v6  ;;  %v2065_v14 = vpop.f32.mrf.mxu3  ;;  %v1998_v19 = vpop.f32.mrf.mxu0 }
 0x1fe   :  { %v2021_v55 = vpop.f32.mrf.mxu1 }
 0x1ff   :  { %v2066_v2 = vadd.f32 %v2065_v14, %v2043_v52 }
 0x201   :  { %v2073_v4 = vadd.f32 %v3006_v57, %v2066_v2 }
 0x203   :  { %v2086_v20 = vsel %vm167_vm0, %v2073_v4, 0.0 }
 0x204   :  { %v2044_v23 = vpop.f32.mrf.mxu2  ;;  %2087 = vadd.xlane.f32.xlu2 %v2086_v20 }
 0x205   :  { %v2067_v60 = vpop.f32.mrf.mxu3 }
 0x257   :  { %v2076_v49 = vpop.xlane.xlu0 %2075 }
 0x258   :  { %v2096_v26 = vmul.f32 %v4074_v13, %v2076_v49 }
 0x25a   :  { %v2101_v53 = vsub.f32 %v4049_v16, %v2096_v26 }
 0x25c   :  { %v2106_v34 = vmul.f32 %v2101_v53, %v2101_v53 }
 0x25e   :  { %v2111_v37 = vsel %vm167_vm0, %v2106_v34, 0.0 }
 0x25f   :  { %2112 = vadd.xlane.f32.xlu2 %v2111_v37  ;;  %v2079_v30 = vpop.xlane.xlu0 %2078 }
 0x260   :  { %v2097_v44 = vmul.f32 %v4074_v13, %v2079_v30 }
 0x262   :  { %v4081_v50 = vsub.f32 %v4056_v25, %v2097_v44 }
 0x264   :  { %v2107_v17 = vmul.f32 %v4081_v50, %v4081_v50 }
 0x266   :  { %v2114_v39 = vsel %vm167_vm0, %v2107_v17, 0.0 }
 0x267   :  { %v2082_v18 = vpop.xlane.xlu1 %2081  ;;  %2115 = vadd.xlane.f32.xlu0 %v2114_v39 }
 0x268   :  { %v2098_v54 = vmul.f32 %v4074_v13, %v2082_v18 }
 0x26a   :  { %v4087_v16 = vsub.f32 %v2071_v1, %v2098_v54 }
 0x26c   :  { %v2108_v12 = vmul.f32 %v4087_v16, %v4087_v16 }
 0x26e   :  { %v2117_v21 = vsel %vm167_vm0, %v2108_v12, 0.0 }
 0x26f   :  { %2118 = vadd.xlane.f32.xlu1 %v2117_v21  ;;  %v2085_v40 = vpop.xlane.xlu1 %2084 }
 0x270   :  { %v2099_v25 = vmul.f32 %v4074_v13, %v2085_v40 }
 0x272   :  { %v4093_v36 = vsub.f32 %v2072_v38, %v2099_v25 }
 0x274   :  { %v2109_v24 = vmul.f32 %v4093_v36, %v4093_v36 }
 0x276   :  { %v2120_v28 = vsel %vm167_vm0, %v2109_v24, 0.0 }
 0x277   :  { %v2088_v33 = vpop.xlane.xlu2 %2087  ;;  %2121 = vadd.xlane.f32.xlu2 %v2120_v28 }
 0x278   :  { %v2100_v35 = vmul.f32 %v4074_v13, %v2088_v33 }
 0x27a   :  { %v4099_v0 = vsub.f32 %v2073_v4, %v2100_v35 }
 0x27c   :  { %v2110_v45 = vmul.f32 %v4099_v0, %v4099_v0 }
 0x27e   :  { %v2123_v15 = vsel %vm167_vm0, %v2110_v45, 0.0 }
 0x27f   :  { %2124 = vadd.xlane.f32.xlu0 %v2123_v15 }
 0x2d2   :  { %v2113_v9 = vpop.xlane.xlu2 %2112 }
 0x2d3   :  { %v2126_v8 = vmul.f32 %v2113_v9, %v4074_v13 }
 0x2d5   :  { %v2131_v31 = vadd.f32 1e-05, %v2126_v8 }
 0x2d7   :  { %2992 = vrsqrt.f32 %v2131_v31  ;;  %vm2142_vm3 = vweird.f32 %v2131_v31 }
 0x2da   :  { %v2116_v61 = vpop.xlane.xlu0 %2115 }
 0x2db   :  { %v2127_v41 = vmul.f32 %v2116_v61, %v4074_v13 }
 0x2dd   :  { %v2993_v63 = vpop.eup %2992  ;;  %v2132_v1 = vadd.f32 1e-05, %v2127_v41 }
 0x2de   :  { %v2137_v11 = vmul.f32 %v2993_v63, %v2131_v31  ;;  %vm2143_vm2 = vweird.f32 %v2993_v63 }
 0x2df   :  { %2994 = vrsqrt.f32 %v2132_v1  ;;  %vm2144_vm4 = vmor %vm2142_vm3, %vm2143_vm2  ;;  %vm2152_vm6 = vweird.f32 %v2132_v1 }
 0x2e0   :  { %v2138_v58 = vmul.f32 %v2993_v63, %v2137_v11 }
 0x2e2   :  { %v2139_v43 = vmul.f32 0.5, %v2138_v58  ;;  %v2119_v10 = vpop.xlane.xlu1 %2118 }
 0x2e3   :  { %v2128_v22 = vmul.f32 %v2119_v10, %v4074_v13 }
 0x2e4   :  { %v2140_v29 = vsub.f32 1.5, %v2139_v43 }
 0x2e5   :  { %v2995_v59 = vpop.eup %2994  ;;  %v2133_v51 = vadd.f32 1e-05, %v2128_v22 }
 0x2e6   :  { %v2141_v7 = vmul.f32 %v2993_v63, %v2140_v29  ;;  %v2147_v27 = vmul.f32 %v2995_v59, %v2132_v1  ;;  %vm2153_vm5 = vweird.f32 %v2995_v59 }
 0x2e7   :  { %2996 = vrsqrt.f32 %v2133_v51  ;;  %vm2154_vm7 = vmor %vm2152_vm6, %vm2153_vm5  ;;  %vm2162_vm9 = vweird.f32 %v2133_v51 }
 0x2e8   :  { %v2145_v38 = vsel %vm2144_vm4, %v2993_v63, %v2141_v7  ;;  %v2148_v6 = vmul.f32 %v2995_v59, %v2147_v27 }
 0x2e9   :  { %v2186_v62 = vmul.f32 %v2145_v38, %v2101_v53 }
 0x2ea   :  { %v2149_v52 = vmul.f32 0.5, %v2148_v6  ;;  %v2122_v14 = vpop.xlane.xlu2 %2121 }
 0x2eb   :  { %v2195_v19 = vmul.f32 %v4110_v3, %v2186_v62  ;;  %v2129_v55 = vmul.f32 %v2122_v14, %v4074_v13 }
 0x2ec   :  { %v2150_v2 = vsub.f32 1.5, %v2149_v52 }
 0x2ed   :  { %v2997_v57 = vpop.eup %2996  ;;  %v2204_v4 = vadd.f32 %v4115_v56, %v2195_v19  ;;  %v2134_v20 = vadd.f32 1e-05, %v2129_v55 }
 0x2ee   :  { %v2151_v23 = vmul.f32 %v2995_v59, %v2150_v2  ;;  %v2157_v60 = vmul.f32 %v2997_v57, %v2133_v51  ;;  %vm2163_vm8 = vweird.f32 %v2997_v57 }
 0x2ef   :  { %2209 = vst.msk [vmem:[%s4160_s7] sm:$0xff] %vm167_vm0, %v2204_v4  ;;  %2998 = vrsqrt.f32 %v2134_v20  ;;  %vm2164_vm10 = vmor %vm2162_vm9, %vm2163_vm8  ;;  %vm2172_vm12 = vweird.f32 %v2134_v20 }
 0x2f0   :  { %v2155_v32 = vsel %vm2154_vm7, %v2995_v59, %v2151_v23  ;;  %v2158_v46 = vmul.f32 %v2997_v57, %v2157_v60 }
 0x2f1   :  { %v2187_v47 = vmul.f32 %v2155_v32, %v4081_v50 }
 0x2f2   :  { %v2159_v42 = vmul.f32 0.5, %v2158_v46  ;;  %v2125_v48 = vpop.xlane.xlu0 %2124 }
 0x2f3   :  { %v2196_v5 = vmul.f32 %v4110_v3, %v2187_v47  ;;  %v2130_v49 = vmul.f32 %v2125_v48, %v4074_v13 }
 0x2f4   :  { %v2160_v26 = vsub.f32 1.5, %v2159_v42 }
 0x2f5   :  { %v2999_v53 = vpop.eup %2998  ;;  %v2205_v34 = vadd.f32 %v4115_v56, %v2196_v5  ;;  %v2135_v37 = vadd.f32 1e-05, %v2130_v49 }
 0x2f6   :  { %v2161_v30 = vmul.f32 %v2997_v57, %v2160_v26  ;;  %v2167_v44 = vmul.f32 %v2999_v53, %v2134_v20  ;;  %vm2173_vm11 = vweird.f32 %v2999_v53 }
 0x2f7   :  { %2210 = vst.msk [vmem:[%s4160_s7 + $0x8] sm:$0xff] %vm167_vm0, %v2205_v34  ;;  %3000 = vrsqrt.f32 %v2135_v37  ;;  %vm2174_vm13 = vmor %vm2172_vm12, %vm2173_vm11  ;;  %vm2182_vm15 = vweird.f32 %v2135_v37 }
 0x2f8   :  { %v2165_v50 = vsel %vm2164_vm10, %v2997_v57, %v2161_v30  ;;  %v2168_v17 = vmul.f32 %v2999_v53, %v2167_v44 }
 0x2f9   :  { %v2188_v13 = vmul.f32 %v2165_v50, %v4087_v16 }
 0x2fa   :  { %v2169_v39 = vmul.f32 0.5, %v2168_v17 }
 0x2fb   :  { %v2197_v18 = vmul.f32 %v4110_v3, %v2188_v13 }
 0x2fc   :  { %v2170_v54 = vsub.f32 1.5, %v2169_v39 }
 0x2fd   :  { %v3001_v12 = vpop.eup %3000  ;;  %v2206_v21 = vadd.f32 %v4115_v56, %v2197_v18 }
 0x2fe   :  { %v2171_v40 = vmul.f32 %v2999_v53, %v2170_v54  ;;  %v2177_v25 = vmul.f32 %v3001_v12, %v2135_v37  ;;  %vm2183_vm14 = vweird.f32 %v3001_v12 }
 0x2ff   :  { %2211 = vst.msk [vmem:[%s4160_s7 + $0x10] sm:$0xff] %vm167_vm0, %v2206_v21  ;;  %vm2184_vm1 = vmor %vm2182_vm15, %vm2183_vm14 }
 0x300   :  { %v2175_v24 = vsel %vm2174_vm13, %v2999_v53, %v2171_v40  ;;  %v2178_v28 = vmul.f32 %v3001_v12, %v2177_v25 }
 0x301   :  { %v2189_v16 = vmul.f32 %v2175_v24, %v4093_v36 }
 0x302   :  { %v2179_v33 = vmul.f32 0.5, %v2178_v28 }
 0x303   :  { %v2198_v35 = vmul.f32 %v4110_v3, %v2189_v16 }
 0x304   :  { %v2180_v45 = vsub.f32 1.5, %v2179_v33 }
 0x305   :  { %v2207_v15 = vadd.f32 %v4115_v56, %v2198_v35 }
 0x306   :  { %v2181_v9 = vmul.f32 %v3001_v12, %v2180_v45 }
 0x307   :  { %2212 = vst.msk [vmem:[%s4160_s7 + $0x18] sm:$0xff] %vm167_vm0, %v2207_v15 }
 0x308   :  { %v2185_v8 = vsel %vm2184_vm1, %v3001_v12, %v2181_v9 }
 0x309   :  { %v2190_v31 = vmul.f32 %v2185_v8, %v4099_v0 }
 0x30b   :  { %v2199_v36 = vmul.f32 %v4110_v3, %v2190_v31 }
 0x30d   :  { %v2208_v61 = vadd.f32 %v4115_v56, %v2199_v36 }
 0x30f   :  { %2213 = vst.msk [vmem:[%s4160_s7 + $0x20] sm:$0xff] %vm167_vm0, %v2208_v61 }

</bundles_post_ra>
